<compile_context>
chip_gen: v7x
topology: tpu7x:2x2x1
jax: 0.10.0
libtpu: 0.0.40
codegen_flags: <defaults>
</compile_context>

<pallas_src>
import jax
import jax.numpy as jnp
from jax.experimental import pallas as pl
from jax.experimental.pallas import tpu as pltpu

EPS = 1e-5


def _round_up(x, m):
    return ((x + m - 1) // m) * m


def _physical_vmem_cap_bytes():
    """~85% of physical VMEM per core; conservative 64 MiB assumption if unknown."""
    try:
        phys = int(pltpu.get_tpu_info().vmem_capacity_bytes)
    except Exception:
        phys = 64 * 1024 * 1024
    return int(phys * 0.85)


def _vmem_limit_bytes(tile_t, D, K, halo):
    """Explicit VMEM budget from the actual block shapes, generation-aware cap."""
    f32, bf16 = 4, 2
    M = tile_t + 2 * halo
    io = 2 * (tile_t * D + 2 * halo * D + tile_t * D) * f32        # x tile + halos + out, 2-deep
    weights = 2 * (3 * D * D * bf16 + (K + 8) * D * f32)            # w1(D,2D)+w2(D,D) bf16, vectors
    work = 16 * M * D * f32                                         # y/h/g/acc temporaries + spill
    est = 2 * (io + weights + work)                                 # 2x safety margin
    return int(min(max(est, 16 * 1024 * 1024), _physical_vmem_cap_bytes()))


def _make_kernel(tT, D, K, PAD, HALO):
    M = tT + 2 * HALO

    def kernel(xl_ref, xc_ref, xr_ref, ln_g_ref, ln_b_ref, w1_ref, b1_ref,
               wd_ref, shift_ref, w2_ref, b2_ref, o_ref):
        j = pl.program_id(1)
        nj = pl.num_programs(1)

        # Current tile plus HALO rows of the left/right neighbours, processed as
        # one (M, D) slab so LN + PW1 + GLU is a single pass / one MXU push.
        xcat = jnp.concatenate([xl_ref[0], xc_ref[0], xr_ref[0]], axis=0)

        # ---- LayerNorm over D (one-pass: var = E[x^2] - mean^2), f32 math ----
        mean = jnp.mean(xcat, axis=-1, keepdims=True)
        msq = jnp.mean(xcat * xcat, axis=-1, keepdims=True)
        var = msq - mean * mean
        h = (xcat - mean) * jax.lax.rsqrt(var + EPS) * ln_g_ref[...] + ln_b_ref[...]

        # ---- Pointwise conv #1 (D -> 2D): fused bf16 matmul + GLU over channels ----
        y = jnp.dot(h.astype(jnp.bfloat16), w1_ref[...],
                    preferred_element_type=jnp.float32) + b1_ref[...]
        g = y[:, :D] * jax.nn.sigmoid(y[:, D:])              # (M, D) f32

        # Zero halo rows outside [0, T): emulates the depthwise zero padding.
        row = jax.lax.broadcasted_iota(jnp.int32, (M, 1), 0)
        keep = jnp.logical_and(
            jnp.logical_or(row >= HALO, j > 0),               # left halo valid unless first tile
            jnp.logical_or(row < HALO + tT, j < nj - 1))      # right halo valid unless last tile
        g = jnp.where(keep, g, 0.0)

        # ---- Depthwise conv (kernel K, pad (K-1)//2, stride 1) ----
        # Taps grouped by (offset mod 8): one cross-sublane shift per residue
        # class (roll built from two slices + concat; shifted rows never wrap),
        # then sublane-aligned slices within the group.  BatchNorm scale is
        # pre-folded into the taps, BatchNorm shift (incl. depthwise bias) into
        # shift_ref.
        wd = wd_ref[...]                                      # (K, D) f32, BN-folded
        acc = jnp.zeros((tT, D), jnp.float32)
        for s in range(8):
            taps = [k for k in range(K) if (HALO - PAD + k) % 8 == s]
            if not taps:
                continue
            if s == 0:
                gs = g
            else:
                gs = jnp.concatenate([g[s:, :], g[:s, :]], axis=0)  # gs[i] = g[i + s]
            for k in taps:
                o = HALO - PAD + k - s                        # multiple of 8: aligned slice
                acc = acc + gs[o:o + tT, :] * wd[k:k + 1, :]
        z = acc + shift_ref[...]                              # = BatchNorm(conv + bias), eval mode

        # ---- Swish ----
        z = z * jax.nn.sigmoid(z)

        # ---- Pointwise conv #2 (D -> D), bf16 MXU, f32 accumulate ----
        out = jnp.dot(z.astype(jnp.bfloat16), w2_ref[...],
                      preferred_element_type=jnp.float32) + b2_ref[...]

        # Dropout: identity in eval mode.
        o_ref[0] = out

    return kernel


def conv_module_forward(x, params, kernel_size, *, tile_t=128):
    """x: (B, T, D) float32 -> (B, T, D) float32."""
    B, T, D = x.shape
    K = kernel_size
    PAD = (K - 1) // 2                       # assumes odd K (Conformer default)
    HALO = _round_up(max(PAD, 1), 8)         # sublane-aligned halo

    assert K % 2 == 1, "even kernel_size changes output-length semantics"
    assert HALO >= PAD
    assert tile_t % 8 == 0 and T % tile_t == 0, "tile_t must be a multiple of 8 dividing T"
    assert tile_t % HALO == 0, "tile_t must be a multiple of the halo block size"
    nT = T // tile_t
    R = tile_t // HALO                       # halo blocks per tile
    nHB = T // HALO                          # halo blocks in T

    # Host-side folds (eval-mode BatchNorm + depthwise bias -> scale/shift).
    bn_scale = params["bn_g"] * jax.lax.rsqrt(params["bn_v"] + EPS)      # (1, D)
    wd_s = params["wd"] * bn_scale                                       # (K, D)
    bn_shift = params["bn_b"] + (params["bd"] - params["bn_m"]) * bn_scale

    param_list = [
        params["ln_g"], params["ln_b"],
        params["w1"], params["b1"],          # (D, 2D) bf16, (1, 2D) f32
        wd_s, bn_shift,                      # (K, D) f32,  (1, D) f32
        params["w2"], params["b2"],          # (D, D) bf16, (1, D) f32
    ]

    # x is passed three times against the same HBM buffer: a HALO-sized left
    # halo, the current tile, and a HALO-sized right halo (clamped at the
    # edges; clamped rows are zeroed inside the kernel).  Per grid step this
    # reads tile_t + 2*HALO rows instead of 3*tile_t.
    x_specs = [
        pl.BlockSpec((1, HALO, D), lambda b, j: (b, jnp.maximum(j * R - 1, 0), 0)),
        pl.BlockSpec((1, tile_t, D), lambda b, j: (b, j, 0)),
        pl.BlockSpec((1, HALO, D), lambda b, j: (b, jnp.minimum((j + 1) * R, nHB - 1), 0)),
    ]
    # Constant weight/bias blocks (block index never changes, so they are DMA'd once).
    w_specs = [pl.BlockSpec(p.shape, lambda b, j, n=p.ndim: (0,) * n) for p in param_list]

    grid_spec = pltpu.PrefetchScalarGridSpec(
        num_scalar_prefetch=0,
        grid=(B, nT),
        in_specs=x_specs + w_specs,
        out_specs=pl.BlockSpec((1, tile_t, D), lambda b, j: (b, j, 0)),
    )

    return pl.pallas_call(
        _make_kernel(tile_t, D, K, PAD, HALO),
        out_shape=jax.ShapeDtypeStruct((B, T, D), jnp.float32),
        grid_spec=grid_spec,
        compiler_params=pltpu.CompilerParams(
            dimension_semantics=("parallel", "parallel"),   # stateless tiles: both axes parallel
            vmem_limit_bytes=_vmem_limit_bytes(tile_t, D, K, HALO)),
    )(x, x, x, *param_list)


def init_params(key, D, K):
    """Deterministic synthetic parameters (shapes follow the PyTorch module)."""
    ks = jax.random.split(key, 10)
    s = 0.1
    # LayerNorm(D)
    ln_g = jnp.ones((1, D), jnp.float32)
    ln_b = jnp.zeros((1, D), jnp.float32)
    # PointWiseConv1d(D, 2D): torch weight (2D, D, 1) -> packed transposed as (D, 2D);
    # columns [:D] are the GLU value half, [D:] the gate half.  Stored bf16 for the MXU.
    w1 = (s * jax.random.normal(ks[0], (D, 2 * D), jnp.float32)).astype(jnp.bfloat16)
    b1 = s * jax.random.normal(ks[1], (1, 2 * D), jnp.float32)
    # DepthWiseConv1d(D, D, K): torch weight (D, 1, K) -> taps as (K, D)
    wd = s * jax.random.normal(ks[2], (K, D), jnp.float32)
    bd = s * jax.random.normal(ks[3], (1, D), jnp.float32)
    # BatchNorm1d(D): weight, bias, running_mean, running_var (eval mode)
    bn_g = 1.0 + s * jax.random.normal(ks[4], (1, D), jnp.float32)
    bn_b = s * jax.random.normal(ks[5], (1, D), jnp.float32)
    bn_m = s * jax.random.normal(ks[6], (1, D), jnp.float32)
    bn_v = 1.0 + 0.5 * jax.nn.sigmoid(jax.random.normal(ks[7], (1, D), jnp.float32))
    # PointWiseConv1d(D, D): torch weight (D, D, 1) -> transposed (D, D), bf16
    w2 = (s * jax.random.normal(ks[8], (D, D), jnp.float32)).astype(jnp.bfloat16)
    b2 = s * jax.random.normal(ks[9], (1, D), jnp.float32)
    return dict(ln_g=ln_g, ln_b=ln_b, w1=w1, b1=b1, wd=wd, bd=bd,
                bn_g=bn_g, bn_b=bn_b, bn_m=bn_m, bn_v=bn_v, w2=w2, b2=b2)


def reference_forward(x, p, K):
    """Pure-JAX reference mirroring the PyTorch module (eval mode).

    Matmul operands are cast to bf16 (same quantization the kernel applies at the
    MXU boundary); all other math is f32, exactly as in the module.  Expected
    deviation from a pure-f32 PyTorch forward is ~1e-2 relative (bf16 mantissa).
    """
    B, T, D = x.shape
    PAD = (K - 1) // 2
    mean = x.mean(-1, keepdims=True)
    xc = x - mean
    var = (xc * xc).mean(-1, keepdims=True)
    h = xc * jax.lax.rsqrt(var + EPS) * p["ln_g"] + p["ln_b"]
    y = jnp.dot(h.astype(jnp.bfloat16), p["w1"],
                preferred_element_type=jnp.float32) + p["b1"]
    g = y[..., :D] * jax.nn.sigmoid(y[..., D:])
    gp = jnp.pad(g, ((0, 0), (PAD, PAD), (0, 0)))
    conv = sum(gp[:, k:k + T, :] * p["wd"][k] for k in range(K)) + p["bd"]
    z = (conv - p["bn_m"]) * jax.lax.rsqrt(p["bn_v"] + EPS) * p["bn_g"] + p["bn_b"]
    z = z * jax.nn.sigmoid(z)
    return jnp.dot(z.astype(jnp.bfloat16), p["w2"],
                   preferred_element_type=jnp.float32) + p["b2"]


if __name__ == "__main__":
    # Small but representative: D = 128 (full lane width, lane-aligned GLU split),
    # Conformer-style depthwise kernel K = 31, T = 256 tiled into 2 tiles of 128
    # rows (exercises interior halos plus both edge clamps).
    B, T, D, K = 2, 256, 128, 31
    TILE_T = 128

    key = jax.random.PRNGKey(0)
    kx, kp = jax.random.split(key)
    x = jax.random.normal(kx, (B, T, D), jnp.float32)
    params = init_params(kp, D, K)

    out = conv_module_forward(x, params, K, tile_t=TILE_T)
    out = jax.block_until_ready(out)

    ref = reference_forward(x, params, K)
    assert out.shape == (B, T, D)
    max_err = float(jnp.max(jnp.abs(out - ref)))
    assert jnp.allclose(out, ref, atol=1e-2, rtol=1e-2), (
        f"mismatch vs JAX reference, max abs err = {max_err}")

    print("KERNEL_OK")
</pallas_src>

<mosaic_0001>
module attributes {stable_mosaic.version = 11 : i64} {
  func.func @kernel(%arg0: i32, %arg1: i32, %arg2: memref<1x16x128xf32, #tpu.memory_space<vmem>>, %arg3: memref<1x128x128xf32, #tpu.memory_space<vmem>>, %arg4: memref<1x16x128xf32, #tpu.memory_space<vmem>>, %arg5: memref<1x128xf32, #tpu.memory_space<vmem>>, %arg6: memref<1x128xf32, #tpu.memory_space<vmem>>, %arg7: memref<128x256xbf16, #tpu.memory_space<vmem>>, %arg8: memref<1x256xf32, #tpu.memory_space<vmem>>, %arg9: memref<31x128xf32, #tpu.memory_space<vmem>>, %arg10: memref<1x128xf32, #tpu.memory_space<vmem>>, %arg11: memref<128x128xbf16, #tpu.memory_space<vmem>>, %arg12: memref<1x128xf32, #tpu.memory_space<vmem>>, %arg13: memref<1x128x128xf32, #tpu.memory_space<vmem>>) attributes {dimension_semantics = [#tpu.dimension_semantics<parallel>, #tpu.dimension_semantics<parallel>], iteration_bounds = array<i64: 2, 2>, scalar_prefetch = 0 : i64, scratch_operands = 0 : i64, tpu.core_type = #tpu.core_type<tc>, window_params = [{transform_indices = @transform_0, window_bounds = array<i64: 1, 16, 128>}, {transform_indices = @transform_1, window_bounds = array<i64: 1, 128, 128>}, {transform_indices = @transform_2, window_bounds = array<i64: 1, 16, 128>}, {pipeline_mode = #tpu.pipeline_mode<synchronous>, transform_indices = @transform_3, window_bounds = array<i64: 1, 128>}, {pipeline_mode = #tpu.pipeline_mode<synchronous>, transform_indices = @transform_4, window_bounds = array<i64: 1, 128>}, {pipeline_mode = #tpu.pipeline_mode<synchronous>, transform_indices = @transform_5, window_bounds = array<i64: 128, 256>}, {pipeline_mode = #tpu.pipeline_mode<synchronous>, transform_indices = @transform_6, window_bounds = array<i64: 1, 256>}, {pipeline_mode = #tpu.pipeline_mode<synchronous>, transform_indices = @transform_7, window_bounds = array<i64: 31, 128>}, {pipeline_mode = #tpu.pipeline_mode<synchronous>, transform_indices = @transform_8, window_bounds = array<i64: 1, 128>}, {pipeline_mode = #tpu.pipeline_mode<synchronous>, transform_indices = @transform_9, window_bounds = array<i64: 128, 128>}, {pipeline_mode = #tpu.pipeline_mode<synchronous>, transform_indices = @transform_10, window_bounds = array<i64: 1, 128>}, {transform_indices = @transform_11, window_bounds = array<i64: 1, 128, 128>}]} {
    %c0 = arith.constant 0 : index
    %c0_0 = arith.constant 0 : index
    %c0_1 = arith.constant 0 : index
    %0 = vector.load %arg2[%c0, %c0_0, %c0_1] : memref<1x16x128xf32, #tpu.memory_space<vmem>>, vector<1x16x128xf32>
    %1 = vector.shape_cast %0 : vector<1x16x128xf32> to vector<16x128xf32>
    %c0_2 = arith.constant 0 : index
    %c0_3 = arith.constant 0 : index
    %c0_4 = arith.constant 0 : index
    %2 = vector.load %arg3[%c0_2, %c0_3, %c0_4] : memref<1x128x128xf32, #tpu.memory_space<vmem>>, vector<1x128x128xf32>
    %3 = vector.shape_cast %2 : vector<1x128x128xf32> to vector<128x128xf32>
    %c0_5 = arith.constant 0 : index
    %c0_6 = arith.constant 0 : index
    %c0_7 = arith.constant 0 : index
    %4 = vector.load %arg4[%c0_5, %c0_6, %c0_7] : memref<1x16x128xf32, #tpu.memory_space<vmem>>, vector<1x16x128xf32>
    %5 = vector.shape_cast %4 : vector<1x16x128xf32> to vector<16x128xf32>
    %6 = tpu.concatenate %1, %3, %5 in 0 : vector<16x128xf32>, vector<128x128xf32>, vector<16x128xf32> -> vector<160x128xf32>
    %cst = arith.constant dense<0.000000e+00> : vector<160xf32>
    %7 = vector.multi_reduction <add>, %6, %cst [1] : vector<160x128xf32> to vector<160xf32>
    %8 = vector.shape_cast %7 : vector<160xf32> to vector<160x1xf32>
    %cst_8 = arith.constant 1.280000e+02 : f32
    %9 = vector.broadcast %cst_8 : f32 to vector<160x1xf32>
    %10 = arith.divf %8, %9 : vector<160x1xf32>
    %11 = arith.mulf %6, %6 : vector<160x128xf32>
    %cst_9 = arith.constant dense<0.000000e+00> : vector<160xf32>
    %12 = vector.multi_reduction <add>, %11, %cst_9 [1] : vector<160x128xf32> to vector<160xf32>
    %13 = vector.shape_cast %12 : vector<160xf32> to vector<160x1xf32>
    %cst_10 = arith.constant 1.280000e+02 : f32
    %14 = vector.broadcast %cst_10 : f32 to vector<160x1xf32>
    %15 = arith.divf %13, %14 : vector<160x1xf32>
    %16 = arith.mulf %10, %10 : vector<160x1xf32>
    %17 = arith.subf %15, %16 : vector<160x1xf32>
    %18 = vector.broadcast %10 : vector<160x1xf32> to vector<160x128xf32>
    %19 = arith.subf %6, %18 : vector<160x128xf32>
    %cst_11 = arith.constant 9.99999974E-6 : f32
    %20 = vector.broadcast %cst_11 : f32 to vector<160x1xf32>
    %21 = arith.addf %17, %20 : vector<160x1xf32>
    %22 = math.rsqrt %21 : vector<160x1xf32>
    %23 = vector.broadcast %22 : vector<160x1xf32> to vector<160x128xf32>
    %24 = arith.mulf %19, %23 : vector<160x128xf32>
    %c0_12 = arith.constant 0 : index
    %c0_13 = arith.constant 0 : index
    %25 = vector.load %arg5[%c0_12, %c0_13] : memref<1x128xf32, #tpu.memory_space<vmem>>, vector<1x128xf32>
    %26 = vector.broadcast %25 : vector<1x128xf32> to vector<160x128xf32>
    %27 = arith.mulf %24, %26 : vector<160x128xf32>
    %c0_14 = arith.constant 0 : index
    %c0_15 = arith.constant 0 : index
    %28 = vector.load %arg6[%c0_14, %c0_15] : memref<1x128xf32, #tpu.memory_space<vmem>>, vector<1x128xf32>
    %29 = vector.broadcast %28 : vector<1x128xf32> to vector<160x128xf32>
    %30 = arith.addf %27, %29 : vector<160x128xf32>
    %31 = arith.truncf %30 : vector<160x128xf32> to vector<160x128xbf16>
    %c0_16 = arith.constant 0 : index
    %c0_17 = arith.constant 0 : index
    %32 = vector.load %arg7[%c0_16, %c0_17] : memref<128x256xbf16, #tpu.memory_space<vmem>>, vector<128x256xbf16>
    %cst_18 = arith.constant dense<0.000000e+00> : vector<160x256xf32>
    %33 = tpu.matmul %31, %32, %cst_18 {dimension_numbers = #tpu.dot_dimension_numbers<[1], [0], [0], [1], [0, 0, 1, 1], [], []>} : vector<160x128xbf16>, vector<128x256xbf16>, vector<160x256xf32> -> vector<160x256xf32>
    %c0_19 = arith.constant 0 : index
    %c0_20 = arith.constant 0 : index
    %34 = vector.load %arg8[%c0_19, %c0_20] : memref<1x256xf32, #tpu.memory_space<vmem>>, vector<1x256xf32>
    %35 = vector.broadcast %34 : vector<1x256xf32> to vector<160x256xf32>
    %36 = arith.addf %33, %35 : vector<160x256xf32>
    %37 = vector.extract_strided_slice %36 {offsets = [0, 0], sizes = [160, 128], strides = [1, 1]} : vector<160x256xf32> to vector<160x128xf32>
    %38 = vector.extract_strided_slice %36 {offsets = [0, 128], sizes = [160, 128], strides = [1, 1]} : vector<160x256xf32> to vector<160x128xf32>
    %39 = arith.negf %38 : vector<160x128xf32>
    %40 = math.exp %39 : vector<160x128xf32>
    %cst_21 = arith.constant 1.000000e+00 : f32
    %41 = vector.broadcast %cst_21 : f32 to vector<160x128xf32>
    %42 = arith.addf %41, %40 : vector<160x128xf32>
    %43 = arith.divf %41, %42 : vector<160x128xf32>
    %44 = arith.mulf %37, %43 : vector<160x128xf32>
    %45 = tpu.iota {dimensions = array<i32: 0>} : vector<160x1xi32>
    %c16_i32 = arith.constant 16 : i32
    %46 = vector.broadcast %c16_i32 : i32 to vector<160x1xi32>
    %47 = arith.cmpi sge, %45, %46 : vector<160x1xi32>
    %c0_i32 = arith.constant 0 : i32
    %48 = arith.cmpi sgt, %arg1, %c0_i32 : i32
    %49 = vector.broadcast %48 : i1 to vector<160x1xi1>
    %50 = arith.ori %47, %49 : vector<160x1xi1>
    %c144_i32 = arith.constant 144 : i32
    %51 = vector.broadcast %c144_i32 : i32 to vector<160x1xi32>
    %52 = arith.cmpi slt, %45, %51 : vector<160x1xi32>
    %c1_i32 = arith.constant 1 : i32
    %53 = arith.cmpi slt, %arg1, %c1_i32 : i32
    %54 = vector.broadcast %53 : i1 to vector<160x1xi1>
    %55 = arith.ori %52, %54 : vector<160x1xi1>
    %56 = arith.andi %50, %55 : vector<160x1xi1>
    %cst_22 = arith.constant 0.000000e+00 : f32
    %57 = vector.shape_cast %56 : vector<160x1xi1> to vector<160x1xi1>
    %58 = vector.broadcast %57 : vector<160x1xi1> to vector<160x128xi1>
    %59 = vector.broadcast %cst_22 : f32 to vector<160x128xf32>
    %60 = arith.select %58, %44, %59 : vector<160x128xi1>, vector<160x128xf32>
    %c0_23 = arith.constant 0 : index
    %c0_24 = arith.constant 0 : index
    %61 = vector.load %arg9[%c0_23, %c0_24] : memref<31x128xf32, #tpu.memory_space<vmem>>, vector<31x128xf32>
    %cst_25 = arith.constant 0.000000e+00 : f32
    %62 = vector.broadcast %cst_25 : f32 to vector<128x128xf32>
    %63 = vector.extract_strided_slice %60 {offsets = [8, 0], sizes = [128, 128], strides = [1, 1]} : vector<160x128xf32> to vector<128x128xf32>
    %64 = vector.extract_strided_slice %61 {offsets = [7, 0], sizes = [1, 128], strides = [1, 1]} : vector<31x128xf32> to vector<1x128xf32>
    %65 = vector.broadcast %64 : vector<1x128xf32> to vector<128x128xf32>
    %66 = arith.mulf %63, %65 : vector<128x128xf32>
    %67 = arith.addf %62, %66 : vector<128x128xf32>
    %68 = vector.extract_strided_slice %60 {offsets = [16, 0], sizes = [128, 128], strides = [1, 1]} : vector<160x128xf32> to vector<128x128xf32>
    %69 = vector.extract_strided_slice %61 {offsets = [15, 0], sizes = [1, 128], strides = [1, 1]} : vector<31x128xf32> to vector<1x128xf32>
    %70 = vector.broadcast %69 : vector<1x128xf32> to vector<128x128xf32>
    %71 = arith.mulf %68, %70 : vector<128x128xf32>
    %72 = arith.addf %67, %71 : vector<128x128xf32>
    %73 = vector.extract_strided_slice %60 {offsets = [24, 0], sizes = [128, 128], strides = [1, 1]} : vector<160x128xf32> to vector<128x128xf32>
    %74 = vector.extract_strided_slice %61 {offsets = [23, 0], sizes = [1, 128], strides = [1, 1]} : vector<31x128xf32> to vector<1x128xf32>
    %75 = vector.broadcast %74 : vector<1x128xf32> to vector<128x128xf32>
    %76 = arith.mulf %73, %75 : vector<128x128xf32>
    %77 = arith.addf %72, %76 : vector<128x128xf32>
    %78 = vector.extract_strided_slice %60 {offsets = [1, 0], sizes = [159, 128], strides = [1, 1]} : vector<160x128xf32> to vector<159x128xf32>
    %79 = vector.extract_strided_slice %60 {offsets = [0, 0], sizes = [1, 128], strides = [1, 1]} : vector<160x128xf32> to vector<1x128xf32>
    %80 = tpu.concatenate %78, %79 in 0 : vector<159x128xf32>, vector<1x128xf32> -> vector<160x128xf32>
    %81 = vector.extract_strided_slice %80 {offsets = [0, 0], sizes = [128, 128], strides = [1, 1]} : vector<160x128xf32> to vector<128x128xf32>
    %82 = vector.extract_strided_slice %61 {offsets = [0, 0], sizes = [1, 128], strides = [1, 1]} : vector<31x128xf32> to vector<1x128xf32>
    %83 = vector.broadcast %82 : vector<1x128xf32> to vector<128x128xf32>
    %84 = arith.mulf %81, %83 : vector<128x128xf32>
    %85 = arith.addf %77, %84 : vector<128x128xf32>
    %86 = vector.extract_strided_slice %80 {offsets = [8, 0], sizes = [128, 128], strides = [1, 1]} : vector<160x128xf32> to vector<128x128xf32>
    %87 = vector.extract_strided_slice %61 {offsets = [8, 0], sizes = [1, 128], strides = [1, 1]} : vector<31x128xf32> to vector<1x128xf32>
    %88 = vector.broadcast %87 : vector<1x128xf32> to vector<128x128xf32>
    %89 = arith.mulf %86, %88 : vector<128x128xf32>
    %90 = arith.addf %85, %89 : vector<128x128xf32>
    %91 = vector.extract_strided_slice %80 {offsets = [16, 0], sizes = [128, 128], strides = [1, 1]} : vector<160x128xf32> to vector<128x128xf32>
    %92 = vector.extract_strided_slice %61 {offsets = [16, 0], sizes = [1, 128], strides = [1, 1]} : vector<31x128xf32> to vector<1x128xf32>
    %93 = vector.broadcast %92 : vector<1x128xf32> to vector<128x128xf32>
    %94 = arith.mulf %91, %93 : vector<128x128xf32>
    %95 = arith.addf %90, %94 : vector<128x128xf32>
    %96 = vector.extract_strided_slice %80 {offsets = [24, 0], sizes = [128, 128], strides = [1, 1]} : vector<160x128xf32> to vector<128x128xf32>
    %97 = vector.extract_strided_slice %61 {offsets = [24, 0], sizes = [1, 128], strides = [1, 1]} : vector<31x128xf32> to vector<1x128xf32>
    %98 = vector.broadcast %97 : vector<1x128xf32> to vector<128x128xf32>
    %99 = arith.mulf %96, %98 : vector<128x128xf32>
    %100 = arith.addf %95, %99 : vector<128x128xf32>
    %101 = vector.extract_strided_slice %60 {offsets = [2, 0], sizes = [158, 128], strides = [1, 1]} : vector<160x128xf32> to vector<158x128xf32>
    %102 = vector.extract_strided_slice %60 {offsets = [0, 0], sizes = [2, 128], strides = [1, 1]} : vector<160x128xf32> to vector<2x128xf32>
    %103 = tpu.concatenate %101, %102 in 0 : vector<158x128xf32>, vector<2x128xf32> -> vector<160x128xf32>
    %104 = vector.extract_strided_slice %103 {offsets = [0, 0], sizes = [128, 128], strides = [1, 1]} : vector<160x128xf32> to vector<128x128xf32>
    %105 = vector.extract_strided_slice %61 {offsets = [1, 0], sizes = [1, 128], strides = [1, 1]} : vector<31x128xf32> to vector<1x128xf32>
    %106 = vector.broadcast %105 : vector<1x128xf32> to vector<128x128xf32>
    %107 = arith.mulf %104, %106 : vector<128x128xf32>
    %108 = arith.addf %100, %107 : vector<128x128xf32>
    %109 = vector.extract_strided_slice %103 {offsets = [8, 0], sizes = [128, 128], strides = [1, 1]} : vector<160x128xf32> to vector<128x128xf32>
    %110 = vector.extract_strided_slice %61 {offsets = [9, 0], sizes = [1, 128], strides = [1, 1]} : vector<31x128xf32> to vector<1x128xf32>
    %111 = vector.broadcast %110 : vector<1x128xf32> to vector<128x128xf32>
    %112 = arith.mulf %109, %111 : vector<128x128xf32>
    %113 = arith.addf %108, %112 : vector<128x128xf32>
    %114 = vector.extract_strided_slice %103 {offsets = [16, 0], sizes = [128, 128], strides = [1, 1]} : vector<160x128xf32> to vector<128x128xf32>
    %115 = vector.extract_strided_slice %61 {offsets = [17, 0], sizes = [1, 128], strides = [1, 1]} : vector<31x128xf32> to vector<1x128xf32>
    %116 = vector.broadcast %115 : vector<1x128xf32> to vector<128x128xf32>
    %117 = arith.mulf %114, %116 : vector<128x128xf32>
    %118 = arith.addf %113, %117 : vector<128x128xf32>
    %119 = vector.extract_strided_slice %103 {offsets = [24, 0], sizes = [128, 128], strides = [1, 1]} : vector<160x128xf32> to vector<128x128xf32>
    %120 = vector.extract_strided_slice %61 {offsets = [25, 0], sizes = [1, 128], strides = [1, 1]} : vector<31x128xf32> to vector<1x128xf32>
    %121 = vector.broadcast %120 : vector<1x128xf32> to vector<128x128xf32>
    %122 = arith.mulf %119, %121 : vector<128x128xf32>
    %123 = arith.addf %118, %122 : vector<128x128xf32>
    %124 = vector.extract_strided_slice %60 {offsets = [3, 0], sizes = [157, 128], strides = [1, 1]} : vector<160x128xf32> to vector<157x128xf32>
    %125 = vector.extract_strided_slice %60 {offsets = [0, 0], sizes = [3, 128], strides = [1, 1]} : vector<160x128xf32> to vector<3x128xf32>
    %126 = tpu.concatenate %124, %125 in 0 : vector<157x128xf32>, vector<3x128xf32> -> vector<160x128xf32>
    %127 = vector.extract_strided_slice %126 {offsets = [0, 0], sizes = [128, 128], strides = [1, 1]} : vector<160x128xf32> to vector<128x128xf32>
    %128 = vector.extract_strided_slice %61 {offsets = [2, 0], sizes = [1, 128], strides = [1, 1]} : vector<31x128xf32> to vector<1x128xf32>
    %129 = vector.broadcast %128 : vector<1x128xf32> to vector<128x128xf32>
    %130 = arith.mulf %127, %129 : vector<128x128xf32>
    %131 = arith.addf %123, %130 : vector<128x128xf32>
    %132 = vector.extract_strided_slice %126 {offsets = [8, 0], sizes = [128, 128], strides = [1, 1]} : vector<160x128xf32> to vector<128x128xf32>
    %133 = vector.extract_strided_slice %61 {offsets = [10, 0], sizes = [1, 128], strides = [1, 1]} : vector<31x128xf32> to vector<1x128xf32>
    %134 = vector.broadcast %133 : vector<1x128xf32> to vector<128x128xf32>
    %135 = arith.mulf %132, %134 : vector<128x128xf32>
    %136 = arith.addf %131, %135 : vector<128x128xf32>
    %137 = vector.extract_strided_slice %126 {offsets = [16, 0], sizes = [128, 128], strides = [1, 1]} : vector<160x128xf32> to vector<128x128xf32>
    %138 = vector.extract_strided_slice %61 {offsets = [18, 0], sizes = [1, 128], strides = [1, 1]} : vector<31x128xf32> to vector<1x128xf32>
    %139 = vector.broadcast %138 : vector<1x128xf32> to vector<128x128xf32>
    %140 = arith.mulf %137, %139 : vector<128x128xf32>
    %141 = arith.addf %136, %140 : vector<128x128xf32>
    %142 = vector.extract_strided_slice %126 {offsets = [24, 0], sizes = [128, 128], strides = [1, 1]} : vector<160x128xf32> to vector<128x128xf32>
    %143 = vector.extract_strided_slice %61 {offsets = [26, 0], sizes = [1, 128], strides = [1, 1]} : vector<31x128xf32> to vector<1x128xf32>
    %144 = vector.broadcast %143 : vector<1x128xf32> to vector<128x128xf32>
    %145 = arith.mulf %142, %144 : vector<128x128xf32>
    %146 = arith.addf %141, %145 : vector<128x128xf32>
    %147 = vector.extract_strided_slice %60 {offsets = [4, 0], sizes = [156, 128], strides = [1, 1]} : vector<160x128xf32> to vector<156x128xf32>
    %148 = vector.extract_strided_slice %60 {offsets = [0, 0], sizes = [4, 128], strides = [1, 1]} : vector<160x128xf32> to vector<4x128xf32>
    %149 = tpu.concatenate %147, %148 in 0 : vector<156x128xf32>, vector<4x128xf32> -> vector<160x128xf32>
    %150 = vector.extract_strided_slice %149 {offsets = [0, 0], sizes = [128, 128], strides = [1, 1]} : vector<160x128xf32> to vector<128x128xf32>
    %151 = vector.extract_strided_slice %61 {offsets = [3, 0], sizes = [1, 128], strides = [1, 1]} : vector<31x128xf32> to vector<1x128xf32>
    %152 = vector.broadcast %151 : vector<1x128xf32> to vector<128x128xf32>
    %153 = arith.mulf %150, %152 : vector<128x128xf32>
    %154 = arith.addf %146, %153 : vector<128x128xf32>
    %155 = vector.extract_strided_slice %149 {offsets = [8, 0], sizes = [128, 128], strides = [1, 1]} : vector<160x128xf32> to vector<128x128xf32>
    %156 = vector.extract_strided_slice %61 {offsets = [11, 0], sizes = [1, 128], strides = [1, 1]} : vector<31x128xf32> to vector<1x128xf32>
    %157 = vector.broadcast %156 : vector<1x128xf32> to vector<128x128xf32>
    %158 = arith.mulf %155, %157 : vector<128x128xf32>
    %159 = arith.addf %154, %158 : vector<128x128xf32>
    %160 = vector.extract_strided_slice %149 {offsets = [16, 0], sizes = [128, 128], strides = [1, 1]} : vector<160x128xf32> to vector<128x128xf32>
    %161 = vector.extract_strided_slice %61 {offsets = [19, 0], sizes = [1, 128], strides = [1, 1]} : vector<31x128xf32> to vector<1x128xf32>
    %162 = vector.broadcast %161 : vector<1x128xf32> to vector<128x128xf32>
    %163 = arith.mulf %160, %162 : vector<128x128xf32>
    %164 = arith.addf %159, %163 : vector<128x128xf32>
    %165 = vector.extract_strided_slice %149 {offsets = [24, 0], sizes = [128, 128], strides = [1, 1]} : vector<160x128xf32> to vector<128x128xf32>
    %166 = vector.extract_strided_slice %61 {offsets = [27, 0], sizes = [1, 128], strides = [1, 1]} : vector<31x128xf32> to vector<1x128xf32>
    %167 = vector.broadcast %166 : vector<1x128xf32> to vector<128x128xf32>
    %168 = arith.mulf %165, %167 : vector<128x128xf32>
    %169 = arith.addf %164, %168 : vector<128x128xf32>
    %170 = vector.extract_strided_slice %60 {offsets = [5, 0], sizes = [155, 128], strides = [1, 1]} : vector<160x128xf32> to vector<155x128xf32>
    %171 = vector.extract_strided_slice %60 {offsets = [0, 0], sizes = [5, 128], strides = [1, 1]} : vector<160x128xf32> to vector<5x128xf32>
    %172 = tpu.concatenate %170, %171 in 0 : vector<155x128xf32>, vector<5x128xf32> -> vector<160x128xf32>
    %173 = vector.extract_strided_slice %172 {offsets = [0, 0], sizes = [128, 128], strides = [1, 1]} : vector<160x128xf32> to vector<128x128xf32>
    %174 = vector.extract_strided_slice %61 {offsets = [4, 0], sizes = [1, 128], strides = [1, 1]} : vector<31x128xf32> to vector<1x128xf32>
    %175 = vector.broadcast %174 : vector<1x128xf32> to vector<128x128xf32>
    %176 = arith.mulf %173, %175 : vector<128x128xf32>
    %177 = arith.addf %169, %176 : vector<128x128xf32>
    %178 = vector.extract_strided_slice %172 {offsets = [8, 0], sizes = [128, 128], strides = [1, 1]} : vector<160x128xf32> to vector<128x128xf32>
    %179 = vector.extract_strided_slice %61 {offsets = [12, 0], sizes = [1, 128], strides = [1, 1]} : vector<31x128xf32> to vector<1x128xf32>
    %180 = vector.broadcast %179 : vector<1x128xf32> to vector<128x128xf32>
    %181 = arith.mulf %178, %180 : vector<128x128xf32>
    %182 = arith.addf %177, %181 : vector<128x128xf32>
    %183 = vector.extract_strided_slice %172 {offsets = [16, 0], sizes = [128, 128], strides = [1, 1]} : vector<160x128xf32> to vector<128x128xf32>
    %184 = vector.extract_strided_slice %61 {offsets = [20, 0], sizes = [1, 128], strides = [1, 1]} : vector<31x128xf32> to vector<1x128xf32>
    %185 = vector.broadcast %184 : vector<1x128xf32> to vector<128x128xf32>
    %186 = arith.mulf %183, %185 : vector<128x128xf32>
    %187 = arith.addf %182, %186 : vector<128x128xf32>
    %188 = vector.extract_strided_slice %172 {offsets = [24, 0], sizes = [128, 128], strides = [1, 1]} : vector<160x128xf32> to vector<128x128xf32>
    %189 = vector.extract_strided_slice %61 {offsets = [28, 0], sizes = [1, 128], strides = [1, 1]} : vector<31x128xf32> to vector<1x128xf32>
    %190 = vector.broadcast %189 : vector<1x128xf32> to vector<128x128xf32>
    %191 = arith.mulf %188, %190 : vector<128x128xf32>
    %192 = arith.addf %187, %191 : vector<128x128xf32>
    %193 = vector.extract_strided_slice %60 {offsets = [6, 0], sizes = [154, 128], strides = [1, 1]} : vector<160x128xf32> to vector<154x128xf32>
    %194 = vector.extract_strided_slice %60 {offsets = [0, 0], sizes = [6, 128], strides = [1, 1]} : vector<160x128xf32> to vector<6x128xf32>
    %195 = tpu.concatenate %193, %194 in 0 : vector<154x128xf32>, vector<6x128xf32> -> vector<160x128xf32>
    %196 = vector.extract_strided_slice %195 {offsets = [0, 0], sizes = [128, 128], strides = [1, 1]} : vector<160x128xf32> to vector<128x128xf32>
    %197 = vector.extract_strided_slice %61 {offsets = [5, 0], sizes = [1, 128], strides = [1, 1]} : vector<31x128xf32> to vector<1x128xf32>
    %198 = vector.broadcast %197 : vector<1x128xf32> to vector<128x128xf32>
    %199 = arith.mulf %196, %198 : vector<128x128xf32>
    %200 = arith.addf %192, %199 : vector<128x128xf32>
    %201 = vector.extract_strided_slice %195 {offsets = [8, 0], sizes = [128, 128], strides = [1, 1]} : vector<160x128xf32> to vector<128x128xf32>
    %202 = vector.extract_strided_slice %61 {offsets = [13, 0], sizes = [1, 128], strides = [1, 1]} : vector<31x128xf32> to vector<1x128xf32>
    %203 = vector.broadcast %202 : vector<1x128xf32> to vector<128x128xf32>
    %204 = arith.mulf %201, %203 : vector<128x128xf32>
    %205 = arith.addf %200, %204 : vector<128x128xf32>
    %206 = vector.extract_strided_slice %195 {offsets = [16, 0], sizes = [128, 128], strides = [1, 1]} : vector<160x128xf32> to vector<128x128xf32>
    %207 = vector.extract_strided_slice %61 {offsets = [21, 0], sizes = [1, 128], strides = [1, 1]} : vector<31x128xf32> to vector<1x128xf32>
    %208 = vector.broadcast %207 : vector<1x128xf32> to vector<128x128xf32>
    %209 = arith.mulf %206, %208 : vector<128x128xf32>
    %210 = arith.addf %205, %209 : vector<128x128xf32>
    %211 = vector.extract_strided_slice %195 {offsets = [24, 0], sizes = [128, 128], strides = [1, 1]} : vector<160x128xf32> to vector<128x128xf32>
    %212 = vector.extract_strided_slice %61 {offsets = [29, 0], sizes = [1, 128], strides = [1, 1]} : vector<31x128xf32> to vector<1x128xf32>
    %213 = vector.broadcast %212 : vector<1x128xf32> to vector<128x128xf32>
    %214 = arith.mulf %211, %213 : vector<128x128xf32>
    %215 = arith.addf %210, %214 : vector<128x128xf32>
    %216 = vector.extract_strided_slice %60 {offsets = [7, 0], sizes = [153, 128], strides = [1, 1]} : vector<160x128xf32> to vector<153x128xf32>
    %217 = vector.extract_strided_slice %60 {offsets = [0, 0], sizes = [7, 128], strides = [1, 1]} : vector<160x128xf32> to vector<7x128xf32>
    %218 = tpu.concatenate %216, %217 in 0 : vector<153x128xf32>, vector<7x128xf32> -> vector<160x128xf32>
    %219 = vector.extract_strided_slice %218 {offsets = [0, 0], sizes = [128, 128], strides = [1, 1]} : vector<160x128xf32> to vector<128x128xf32>
    %220 = vector.extract_strided_slice %61 {offsets = [6, 0], sizes = [1, 128], strides = [1, 1]} : vector<31x128xf32> to vector<1x128xf32>
    %221 = vector.broadcast %220 : vector<1x128xf32> to vector<128x128xf32>
    %222 = arith.mulf %219, %221 : vector<128x128xf32>
    %223 = arith.addf %215, %222 : vector<128x128xf32>
    %224 = vector.extract_strided_slice %218 {offsets = [8, 0], sizes = [128, 128], strides = [1, 1]} : vector<160x128xf32> to vector<128x128xf32>
    %225 = vector.extract_strided_slice %61 {offsets = [14, 0], sizes = [1, 128], strides = [1, 1]} : vector<31x128xf32> to vector<1x128xf32>
    %226 = vector.broadcast %225 : vector<1x128xf32> to vector<128x128xf32>
    %227 = arith.mulf %224, %226 : vector<128x128xf32>
    %228 = arith.addf %223, %227 : vector<128x128xf32>
    %229 = vector.extract_strided_slice %218 {offsets = [16, 0], sizes = [128, 128], strides = [1, 1]} : vector<160x128xf32> to vector<128x128xf32>
    %230 = vector.extract_strided_slice %61 {offsets = [22, 0], sizes = [1, 128], strides = [1, 1]} : vector<31x128xf32> to vector<1x128xf32>
    %231 = vector.broadcast %230 : vector<1x128xf32> to vector<128x128xf32>
    %232 = arith.mulf %229, %231 : vector<128x128xf32>
    %233 = arith.addf %228, %232 : vector<128x128xf32>
    %234 = vector.extract_strided_slice %218 {offsets = [24, 0], sizes = [128, 128], strides = [1, 1]} : vector<160x128xf32> to vector<128x128xf32>
    %235 = vector.extract_strided_slice %61 {offsets = [30, 0], sizes = [1, 128], strides = [1, 1]} : vector<31x128xf32> to vector<1x128xf32>
    %236 = vector.broadcast %235 : vector<1x128xf32> to vector<128x128xf32>
    %237 = arith.mulf %234, %236 : vector<128x128xf32>
    %238 = arith.addf %233, %237 : vector<128x128xf32>
    %c0_26 = arith.constant 0 : index
    %c0_27 = arith.constant 0 : index
    %239 = vector.load %arg10[%c0_26, %c0_27] : memref<1x128xf32, #tpu.memory_space<vmem>>, vector<1x128xf32>
    %240 = vector.broadcast %239 : vector<1x128xf32> to vector<128x128xf32>
    %241 = arith.addf %238, %240 : vector<128x128xf32>
    %242 = arith.negf %241 : vector<128x128xf32>
    %243 = math.exp %242 : vector<128x128xf32>
    %cst_28 = arith.constant 1.000000e+00 : f32
    %244 = vector.broadcast %cst_28 : f32 to vector<128x128xf32>
    %245 = arith.addf %244, %243 : vector<128x128xf32>
    %246 = arith.divf %244, %245 : vector<128x128xf32>
    %247 = arith.mulf %241, %246 : vector<128x128xf32>
    %248 = arith.truncf %247 : vector<128x128xf32> to vector<128x128xbf16>
    %c0_29 = arith.constant 0 : index
    %c0_30 = arith.constant 0 : index
    %249 = vector.load %arg11[%c0_29, %c0_30] : memref<128x128xbf16, #tpu.memory_space<vmem>>, vector<128x128xbf16>
    %cst_31 = arith.constant dense<0.000000e+00> : vector<128x128xf32>
    %250 = tpu.matmul %248, %249, %cst_31 {dimension_numbers = #tpu.dot_dimension_numbers<[1], [0], [0], [1], [0, 0, 1, 1], [], []>} : vector<128x128xbf16>, vector<128x128xbf16>, vector<128x128xf32> -> vector<128x128xf32>
    %c0_32 = arith.constant 0 : index
    %c0_33 = arith.constant 0 : index
    %251 = vector.load %arg12[%c0_32, %c0_33] : memref<1x128xf32, #tpu.memory_space<vmem>>, vector<1x128xf32>
    %252 = vector.broadcast %251 : vector<1x128xf32> to vector<128x128xf32>
    %253 = arith.addf %250, %252 : vector<128x128xf32>
    %c0_34 = arith.constant 0 : index
    %c0_35 = arith.constant 0 : index
    %c0_36 = arith.constant 0 : index
    %254 = vector.load %arg13[%c0_34, %c0_35, %c0_36] : memref<1x128x128xf32, #tpu.memory_space<vmem>>, vector<1x128x128xf32>
    %255 = vector.shape_cast %254 : vector<1x128x128xf32> to vector<128x128xf32>
    %256 = vector.shape_cast %253 : vector<128x128xf32> to vector<1x128x128xf32>
    tpu.vector_store %arg13[%c0_34, %c0_35, %c0_36], %256 {strides = array<i32>} : memref<1x128x128xf32, #tpu.memory_space<vmem>>, vector<1x128x128xf32>,
    return
  }
  func.func @transform_0(%arg0: i32, %arg1: i32) -> (i32, i32, i32) {
    %c8_i32 = arith.constant 8 : i32
    %0 = arith.muli %arg1, %c8_i32 : i32
    %c1_i32 = arith.constant 1 : i32
    %1 = arith.subi %0, %c1_i32 : i32
    %c0_i32 = arith.constant 0 : i32
    %2 = arith.maxsi %1, %c0_i32 : i32
    %c0_i32_0 = arith.constant 0 : i32
    %c0_i32_1 = arith.constant 0 : i32
    return %arg0, %2, %c0_i32_0 : i32, i32, i32
  }
  func.func @transform_1(%arg0: i32, %arg1: i32) -> (i32, i32, i32) {
    %c0_i32 = arith.constant 0 : i32
    %c0_i32_0 = arith.constant 0 : i32
    return %arg0, %arg1, %c0_i32 : i32, i32, i32
  }
  func.func @transform_2(%arg0: i32, %arg1: i32) -> (i32, i32, i32) {
    %c1_i32 = arith.constant 1 : i32
    %0 = arith.addi %arg1, %c1_i32 : i32
    %c8_i32 = arith.constant 8 : i32
    %1 = arith.muli %0, %c8_i32 : i32
    %c15_i32 = arith.constant 15 : i32
    %2 = arith.minsi %1, %c15_i32 : i32
    %c0_i32 = arith.constant 0 : i32
    %c0_i32_0 = arith.constant 0 : i32
    return %arg0, %2, %c0_i32 : i32, i32, i32
  }
  func.func @transform_3(%arg0: i32, %arg1: i32) -> (i32, i32) {
    %c0_i32 = arith.constant 0 : i32
    %c0_i32_0 = arith.constant 0 : i32
    %c0_i32_1 = arith.constant 0 : i32
    return %c0_i32, %c0_i32_0 : i32, i32
  }
  func.func @transform_4(%arg0: i32, %arg1: i32) -> (i32, i32) {
    %c0_i32 = arith.constant 0 : i32
    %c0_i32_0 = arith.constant 0 : i32
    %c0_i32_1 = arith.constant 0 : i32
    return %c0_i32, %c0_i32_0 : i32, i32
  }
  func.func @transform_5(%arg0: i32, %arg1: i32) -> (i32, i32) {
    %c0_i32 = arith.constant 0 : i32
    %c0_i32_0 = arith.constant 0 : i32
    %c0_i32_1 = arith.constant 0 : i32
    return %c0_i32, %c0_i32_0 : i32, i32
  }
  func.func @transform_6(%arg0: i32, %arg1: i32) -> (i32, i32) {
    %c0_i32 = arith.constant 0 : i32
    %c0_i32_0 = arith.constant 0 : i32
    %c0_i32_1 = arith.constant 0 : i32
    return %c0_i32, %c0_i32_0 : i32, i32
  }
  func.func @transform_7(%arg0: i32, %arg1: i32) -> (i32, i32) {
    %c0_i32 = arith.constant 0 : i32
    %c0_i32_0 = arith.constant 0 : i32
    %c0_i32_1 = arith.constant 0 : i32
    return %c0_i32, %c0_i32_0 : i32, i32
  }
  func.func @transform_8(%arg0: i32, %arg1: i32) -> (i32, i32) {
    %c0_i32 = arith.constant 0 : i32
    %c0_i32_0 = arith.constant 0 : i32
    %c0_i32_1 = arith.constant 0 : i32
    return %c0_i32, %c0_i32_0 : i32, i32
  }
  func.func @transform_9(%arg0: i32, %arg1: i32) -> (i32, i32) {
    %c0_i32 = arith.constant 0 : i32
    %c0_i32_0 = arith.constant 0 : i32
    %c0_i32_1 = arith.constant 0 : i32
    return %c0_i32, %c0_i32_0 : i32, i32
  }
  func.func @transform_10(%arg0: i32, %arg1: i32) -> (i32, i32) {
    %c0_i32 = arith.constant 0 : i32
    %c0_i32_0 = arith.constant 0 : i32
    %c0_i32_1 = arith.constant 0 : i32
    return %c0_i32, %c0_i32_0 : i32, i32
  }
  func.func @transform_11(%arg0: i32, %arg1: i32) -> (i32, i32, i32) {
    %c0_i32 = arith.constant 0 : i32
    %c0_i32_0 = arith.constant 0 : i32
    return %arg0, %arg1, %c0_i32 : i32, i32, i32
  }
}

</mosaic_0001>

<bundles_post_ra>
// kernel: tpu_custom_call.1
= control target key start
LH: loop header
LB: loop body
LE: loop exit
PB: predicated region body
PF: predicated region fallthrough
CT: control target
= control target key end

     0   :  { %s7736_s0 = inlined_call_operand.hbm [shape: f32[2,256,128], index: 0, kind: input, shape index: {}]   ;;  %s7737_s1 = inlined_call_operand.hbm [shape: f32[2,256,128], index: 1, kind: input, shape index: {}]   ;;  %s7738_s2 = inlined_call_operand.hbm [shape: f32[2,256,128], index: 2, kind: input, shape index: {}]   ;;  %s7739_s3 = inlined_call_operand.vmem [shape: f32[1,128], index: 3, kind: input, shape index: {}]   ;;  %s7740_s4 = inlined_call_operand.vmem [shape: f32[1,128], index: 4, kind: input, shape index: {}]   ;;  %s7741_s5 = inlined_call_operand.hbm [shape: bf16[128,256], index: 5, kind: input, shape index: {}]   ;;  %s7742_s6 = inlined_call_operand.vmem [shape: f32[1,256], index: 6, kind: input, shape index: {}]   ;;  %s7743_s7 = inlined_call_operand.hbm [shape: f32[31,128], index: 7, kind: input, shape index: {}]   ;;  %s7744_s8 = inlined_call_operand.vmem [shape: f32[1,128], index: 8, kind: input, shape index: {}]   ;;  %s7745_s9 = inlined_call_operand.hbm [shape: bf16[128,128], index: 9, kind: input, shape index: {}]   ;;  %s7746_s10 = inlined_call_operand.vmem [shape: f32[1,128], index: 10, kind: input, shape index: {}]   ;;  %s7747_s11 = inlined_call_operand.hbm [shape: f32[2,256,128], index: 11, kind: output, shape index: {}]  }
   0x1   :  { %8032 = sst [smem:[#allocation129_spill]] %s7737_s1 }
   0x2   :  { %8033 = sst [smem:[#allocation130_spill]] %s7738_s2 }
   0x3   :  { %8034 = sst [smem:[#allocation131_spill]] %s7739_s3 }
   0x4   :  { %8035 = sst [smem:[#allocation132_spill]] %s7740_s4 }
   0x5   :  { %8036 = sst [smem:[#allocation133_spill]] %s7741_s5 }
   0x6   :  { %8037 = sst [smem:[#allocation134_spill]] %s7742_s6 }
   0x7   :  { %8038 = sst [smem:[#allocation135_spill]] %s7743_s7 }
   0x8   :  { %8039 = sst [smem:[#allocation136_spill]] %s7744_s8 }
   0x9   :  { %8040 = sst [smem:[#allocation137_spill]] %s7745_s9 }
   0xa   :  { %8041 = sst [smem:[#allocation138_spill]] %s7746_s10 }
   0xb   :  { %8042 = sst [smem:[#allocation139_spill]] %s7747_s11 }
   0xc   :  { %16 = vsyncpa [#allocation3], 0 }
   0xd   :  { %18 = vsyncpa [#allocation3 + $0x1], 0 }
   0xe   :  { %19 = vsyncpa [#allocation6], 0 }
   0xf   :  { %21 = vsyncpa [#allocation6 + $0x1], 0 }
  0x10   :  { %22 = vsyncpa [#allocation9], 0 }
  0x11   :  { %23 = vsyncpa [#allocation12], 0 }
  0x12   :  { %24 = vsyncpa [#allocation4], 0 }
  0x13   :  { %26 = vsyncpa [#allocation4 + $0x1], 0  ;;  %s4532_s17 = smov 0   ;;  %s4534_s18 = smov 0  }
  0x14   :  { %s4536_s19 = smov 0   ;;  %s4538_s20 = smov 0  }
  0x15   :  { %s4540_s21 = smov 0   ;;  %s4542_s22 = smov 0  }
  0x16   :  { %s4544_s23 = smov 0   ;;  %s4546_s24 = smov 0  }
  0x17   :  { %s4548_s25 = smov 0   ;;  %s4550_s26 = smov 0  }
  0x18   :  { %s4552_s27 = smov 0   ;;  %s4554_s28 = smov 0  }
  0x19   :  { %s4556_s29 = smov 0   ;;  %s4558_s30 = smov 0  }
  0x1a LB: > { %8043 = sst [smem:[#allocation20_spill]] %s4404_s17  ;;  %s4603_s12 = sadd.s32 4294967295, %s4456_s30   ;;  %s4456_s30 = sphi %s4558_s30, %s32_s30   ;;  %s4452_s29 = sphi %s4556_s29, %s8540_s29   ;;  %s4448_s28 = sphi %s4554_s28, %s8548_s28   ;;  %s4444_s27 = sphi %s4552_s27, %s8538_s27   ;;  %s4440_s26 = sphi %s4550_s26, %s8547_s26   ;;  %s4436_s25 = sphi %s4548_s25, %s8546_s25   ;;  %s4432_s24 = sphi %s4546_s24, %s8545_s24   ;;  %s4428_s23 = sphi %s4544_s23, %s8544_s23   ;;  %s4424_s22 = sphi %s4542_s22, %s8543_s22   ;;  %s4420_s21 = sphi %s4540_s21, %s8542_s21   ;;  %s4416_s20 = sphi %s4538_s20, %s8537_s20   ;;  %s4412_s19 = sphi %s4536_s19, %s8541_s19   ;;  %s4408_s18 = sphi %s4534_s18, %s8536_s18   ;;  %s4404_s17 = sphi %s4532_s17, %s8535_s17  }
  0x1b   : > { %8044 = sst [smem:[#allocation21_spill]] %s4408_s18  ;;  %p3576_p0 = scmp.ge.s32.totalorder %s4456_s30, 1 }
  0x1c   : > { %8045 = sst [smem:[#allocation22_spill]] %s4412_s19  ;;  %p7751_p1 = scmp.eq.s32.totalorder %s4603_s12, 0 }
  0x1d   : > { %8046 = sst [smem:[#allocation23_spill]] %s4416_s20  ;;  %p345_p3 = scmp.lt.s32.totalorder %s4456_s30, 5 }
  0x1e   : > { %8047 = sst [smem:[#allocation24_spill]] %s4420_s21  ;;  %s4458_s14 = smov [#allocation8]  }
  0x1f   : > { %8048 = sst [smem:[#allocation25_spill]] %s4440_s26  ;;  %p4609_p4 = pnand %p3576_p0, %p345_p3 }
  0x20   : > { %8049 = sst [smem:[#allocation26_spill]] %s4444_s27  ;;  %s363_s15 = sshll.u32 %s4458_s14, 4  ;;  %s364_s15 = int_to_ptr.vmem [resolvable:$true] %s363_s15 }
  0x21   : > { %8050 = sst [smem:[#allocation27_spill]] %s4452_s29  ;;  %p3748_p5 = pneg %p4609_p4 }
  0x22   : > { %s8051_s13 = scalar_select %p4609_p4, 1, 0 }
  0x23   : > { %p4617_p6 = pnand %p3748_p5, %p7751_p1  ;;  %s8054_s5 = sld [smem:[#allocation133_spill]] }
  0x24   : > { %8052 = sst [smem:[#allocation28_spill]] %s8051_s13 }
  0x25   : > { %s8053_s16 = scalar_select %p4617_p6, 1, 0 }
  0x26   : > { %p4629_p8 = pneg %p4617_p6 }
  0x29   : > { %s4120_s10 = scalar_lea.hbm %s8054_s5, 2048 }
  0x2a   : > { %p4121_p7 = scmp.ne.s32.totalorder %s8054_s5, %s4120_s10  ;;  %p4127_p11 = scmp.lt.u32.totalorder %s4120_s10, %s8054_s5 }
  0x2c   : > { %p4123_p9 = pnand %p4629_p8, %p4121_p7 }
  0x2e   : > { %p4124_p10 = pneg %p4123_p9 }
  0x30   : > { %p4129_p12 = pnand %p4127_p11, %p4124_p10 }
  0x32   : > { %4132 = shalt.err (!%p4129_p12)
}
  0x33   : > { %s4133_s11 = scalar_lea.vmem %s364_s15, 2048  ;;  %p4141_p5 = scmp.lt.s32.totalorder %s364_s15, %s364_s15 }
  0x34   : > { %p4134_p13 = scmp.ne.s32.totalorder %s364_s15, %s4133_s11  ;;  %p4142_p1 = scmp.lt.s32.totalorder %s4133_s11, %s4133_s11 }
  0x36   : > { %p4136_p0 = pnand %p4134_p13, %p4629_p8  ;;  %p4143_p2 = por %p4142_p1, %p4141_p5 }
  0x38   : > { %p4137_p3 = pneg %p4136_p0 }
  0x3a   : > { %p4144_p4 = pnand %p4143_p2, %p4137_p3 }
  0x3c   : > { %4147 = shalt.err (!%p4144_p4)
}
  0x3d   : > { %s7754_s6 = smov 128   ;;  %s7756_s4 = smov 8  }
  0x3e   : > { %3751 = dma.hbm_to_vmem [thread:$0]  (!%p4617_p6), %s8054_s5, 2048, %s364_s15, [#allocation9], %s7754_s6, %s7754_s6, %s7756_s4  }
  0x3f   : > { %s3569_s26 = sadd.s32 4294967294, %s4456_s30   ;;  %s41_s27 = sadd.s32 1, %s4448_s28 }
  0x40   : > { %p42_p1 = scmp.ge.s32.totalorder %s41_s27, 2  ;;  %s44_s11 = sadd.s32 1, %s4452_s29 }
  0x41   : > { %p7769_p2 = scmp.eq.s32.totalorder %s4456_s30, 0  ;;  %p96_p4 = scmp.ne.s32.totalorder %s4424_s22, %s4420_s21 }
  0x42   : > { %s8550_s27 = smov (%p42_p1, %s41_s27), 0  ;;  %s8552_s11 = smov (!%p42_p1, %s44_s11), %s4452_s29 }
  0x43   : > { %8056 = sst [smem:[#allocation29_spill]] %s8550_s27  ;;  %p102_p7 = scmp.ne.s32.totalorder %s4420_s21, %s4416_s20 }
  0x44   : > { %p338_p9 = scmp.eq.s32.totalorder %s3569_s26, 3  ;;  %p4666_p10 = por %p96_p4, %p7769_p2 }
  0x45   : > { %p8058_p11 = scmp.eq.s32.totalorder %s4603_s12, 3  ;;  %p8061_p13 = scmp.eq.s32.totalorder %s4603_s12, 0 }
  0x46   : > { %p4682_p3 = por %p338_p9, %p102_p7  ;;  %p7768_p5 = scmp.lt.s32.totalorder %s4456_s30, 4 }
  0x47   : > { %p4672_p12 = por %p8058_p11, %p96_p4  ;;  %p4678_p0 = por %p102_p7, %p8061_p13 }
  0x48   : > { %s8064_s3 = scalar_select %p4682_p3, 1, 0 }
  0x49   : > { %s8059_s8 = scalar_select %p4672_p12, 1, 0 }
  0x4a   : > { %s8062_s10 = scalar_select %p4678_p0, 1, 0 }
  0x4b   : > { %8060 = sst [smem:[#allocation30_spill]] %s8059_s8  ;;  %s4688_s26 = sshll.u32 %s4452_s29, 5 }
  0x4c   : > { %8063 = sst [smem:[#allocation31_spill]] %s8062_s10  ;;  %s439_s13 = sand.u32 1, %s4456_s30  }
  0x4d   : > { %8065 = sst [smem:[#allocation32_spill]] %s8064_s3  ;;  %s441_s6 = sand.u32 1, %s4424_s22  }
  0x4e   : > { %s3587_s4 = sshll.u32 %s441_s6, 7  ;;  %s3588_s5 = sshll.u32 %s4448_s28, 4 }
  0x4f   : > { %s449_s20 = sadd.s32 %s3588_s5, %s4688_s26  ;;  %s443_s21 = scalar_lea.vmem [#allocation5], %s3587_s4 }
  0x50   : > { %s452_s8 = sshll.u32 %s443_s21, 4  ;;  %s3590_s2 = sshll.u32 %s449_s20, 7  ;;  %s4694_s8 = int_to_ptr.vmem [resolvable:$true] %s452_s8 }
  0x51   : > { %s8066_s1 = sld [smem:[#allocation129_spill]]  ;;  %p4705_p1 = pnand %p7768_p5, %p4666_p10 }
  0x52   : > { %s4461_s5 = smov [#allocation10]   ;;  %s4711_s21 = scalar_lea.sflag [#allocation6], %s439_s13 }
  0x53   : > { %s4709_s20 = sshll.u32 %s4461_s5, 4  ;;  %p4150_p7 = pneg %p4705_p1  ;;  %s380_s20 = int_to_ptr.vmem [resolvable:$true] %s4709_s20 }
  0x57   : > { %s4699_s18 = scalar_lea.hbm %s8066_s1, %s3590_s2  ;;  %s4153_s15 = scalar_lea.hbm %s8066_s1, 8192 }
  0x58   : > { %s4148_s17 = scalar_lea.hbm %s4699_s18, 2048  ;;  %p4154_p10 = scmp.lt.u32.totalorder %s4699_s18, %s8066_s1 }
  0x59   : > { %p4149_p4 = scmp.ne.s32.totalorder %s4699_s18, %s4148_s17  ;;  %p4155_p13 = scmp.lt.u32.totalorder %s4153_s15, %s4148_s17 }
  0x5a   : > { %p4157_p2 = scmp.lt.u32.totalorder %s4148_s17, %s4699_s18 }
  0x5b   : > { %p4151_p9 = pnand %p4150_p7, %p4149_p4  ;;  %p4156_p5 = por %p4155_p13, %p4154_p10 }
  0x5d   : > { %p4152_p11 = pneg %p4151_p9  ;;  %p4158_p3 = por %p4157_p2, %p4156_p5 }
  0x5f   : > { %p4159_p12 = pnand %p4158_p3, %p4152_p11 }
  0x61   : > { %4162 = shalt.err (!%p4159_p12)
}
  0x62   : > { %s4163_s13 = scalar_lea.vmem %s4694_s8, 2048  ;;  %s4462_s5 = smov [#allocation5]  }
  0x63   : > { %p4164_p4 = scmp.ne.s32.totalorder %s4694_s8, %s4163_s13  ;;  %s4168_s2 = sshll.u32 %s4462_s5, 4  ;;  %s4169_s2 = int_to_ptr.vmem [resolvable:$false] %s4168_s2 }
  0x64   : > { %s4170_s3 = scalar_lea.vmem %s4169_s2, 4096  ;;  %p4171_p6 = scmp.lt.s32.totalorder %s4694_s8, %s4169_s2 }
  0x65   : > { %p4166_p9 = pnand %p4164_p4, %p4150_p7  ;;  %p4172_p10 = scmp.lt.s32.totalorder %s4170_s3, %s4163_s13 }
  0x67   : > { %p4167_p0 = pneg %p4166_p9  ;;  %p4173_p13 = por %p4172_p10, %p4171_p6 }
  0x69   : > { %p4174_p2 = pnand %p4173_p13, %p4167_p0 }
  0x6b   : > { %4177 = shalt.err (!%p4174_p2)
}
  0x6c   : > { %s8068_s17 = smov 8   ;;  %s8069_s4 = smov 128  }
  0x6d   : > { %3764 = dma.hbm_to_vmem [thread:$0]  (!%p4705_p1), %s4699_s18, 2048, %s4694_s8, %s4711_s21, %s8069_s4, %s8069_s4, %s8068_s17  }
  0x6e   : > { %s4463_s15 = smov [#allocation11]   ;;  %s8070_s7 = sld [smem:[#allocation135_spill]] }
  0x6f   : > { %s395_s10 = sshll.u32 %s4463_s15, 4  ;;  %s396_s10 = int_to_ptr.vmem [resolvable:$true] %s395_s10 }
  0x74   : > { %s4178_s13 = scalar_lea.hbm %s8070_s7, 512 }
  0x75   : > { %p4179_p6 = scmp.ne.s32.totalorder %s8070_s7, %s4178_s13  ;;  %p4185_p3 = scmp.lt.u32.totalorder %s4178_s13, %s8070_s7 }
  0x77   : > { %p4181_p12 = pnand %p4179_p6, %p4629_p8 }
  0x79   : > { %p4182_p0 = pneg %p4181_p12 }
  0x7b   : > { %p4187_p5 = pnand %p4185_p3, %p4182_p0 }
  0x7d   : > { %4190 = shalt.err (!%p4187_p5)
}
  0x7e   : > { %s4191_s18 = scalar_lea.vmem %s380_s20, 512  ;;  %p4199_p4 = scmp.lt.s32.totalorder %s380_s20, %s380_s20 }
  0x7f   : > { %p4192_p1 = scmp.ne.s32.totalorder %s380_s20, %s4191_s18  ;;  %p4200_p9 = scmp.lt.s32.totalorder %s4191_s18, %s4191_s18 }
  0x81   : > { %p4194_p7 = pnand %p4192_p1, %p4629_p8  ;;  %p4201_p10 = por %p4200_p9, %p4199_p4 }
  0x83   : > { %p4195_p11 = pneg %p4194_p7 }
  0x85   : > { %p4202_p13 = pnand %p4201_p10, %p4195_p11 }
  0x87   : > { %4205 = shalt.err (!%p4202_p13)
}
  0x88   : > { %p8071_p2 = scmp.ne.s32.totalorder %s8053_s16, 0  ;;  %s8072_s9 = sld [smem:[#allocation137_spill]] }
  0x8a   : > { %3754 = dma.hbm_to_vmem [thread:$0]  (!%p8071_p2), %s8070_s7, 512, %s380_s20, [#allocation9], %s8069_s4, %s8069_s4, %s8068_s17  }
  0x8e   : > { %s4206_s5 = scalar_lea.hbm %s8072_s9, 1024 }
  0x8f   : > { %p4207_p6 = scmp.ne.s32.totalorder %s8072_s9, %s4206_s5  ;;  %p4213_p3 = scmp.lt.u32.totalorder %s4206_s5, %s8072_s9 }
  0x91   : > { %p4209_p12 = pnand %p4207_p6, %p4629_p8 }
  0x93   : > { %p4210_p0 = pneg %p4209_p12 }
  0x95   : > { %p4215_p5 = pnand %p4213_p3, %p4210_p0 }
  0x97   : > { %4218 = shalt.err (!%p4215_p5)
}
  0x98   : > { %s4219_s18 = scalar_lea.vmem %s396_s10, 1024  ;;  %p4227_p4 = scmp.lt.s32.totalorder %s396_s10, %s396_s10 }
  0x99   : > { %p4220_p1 = scmp.ne.s32.totalorder %s396_s10, %s4219_s18  ;;  %p4228_p9 = scmp.lt.s32.totalorder %s4219_s18, %s4219_s18 }
  0x9b   : > { %p4222_p7 = pnand %p4220_p1, %p4629_p8  ;;  %p4229_p10 = por %p4228_p9, %p4227_p4 }
  0x9d   : > { %p4223_p11 = pneg %p4222_p7 }
  0x9f   : > { %p4230_p13 = pnand %p4229_p10, %p4223_p11 }
  0xa1   : > { %4233 = shalt.err (!%p4230_p13)
}
  0xa2   : > { %s4464_s20 = smov 64   ;;  %s4465_s14 = smov 4  }
  0xa3   : > { %3757 = dma.hbm_to_vmem [thread:$0]  (!%p8071_p2), %s8072_s9, 1024, %s396_s10, [#allocation12], %s4464_s20, %s4464_s20, %s4465_s14  }
  0xa4   : > { %p46_p8 = scmp.ge.s32.totalorder %s8552_s11, 2  ;;  %s3570_s8 = sshll.u32 %s4448_s28, 3 }
  0xa5   : > { %s3572_s15 = sshll.u32 %s8550_s27, 3  ;;  %s3571_s5 = sadd.s32 4294967295, %s3570_s8 }
  0xa6   : > { %s8554_s11 = smov (%p46_p8, %s8552_s11), 0  ;;  %s3573_s2 = sadd.s32 4294967295, %s3572_s15 }
  0xa7   : > { %8073 = sst [smem:[#allocation33_spill]] %s8554_s11  ;;  %p50_p6 = scmp.gt.s32.totalorder %s3571_s5, 0 }
  0xa8   : > { %p54_p12 = scmp.gt.s32.totalorder %s3573_s2, 0  ;;  %s4790_s16 = ssub.s32 %s4452_s29, %s8554_s11 }
  0xa9   : > { %s61_s10 = sadd.s32 1, %s4436_s25  ;;  %s8556_s5 = smov (!%p50_p6, %s3571_s5), 0 }
  0xaa   : > { %s8558_s2 = smov (!%p54_p12, %s3573_s2), 0  ;;  %p68_p2 = scmp.ne.s32.totalorder %s4436_s25, %s4432_s24 }
  0xab   : > { %p74_p0 = scmp.ne.s32.totalorder %s4432_s24, %s4428_s23  ;;  %s57_s13 = ssub.s32 %s8556_s5, %s8558_s2 }
  0xac   : > { %s8074_s3 = ssub.s32 %s4448_s28, %s8550_s27  ;;  %s58_s18 = sor.u32 %s57_s13, %s4790_s16 }
  0xad   : > { %s86_s6 = sor.u32 %s8074_s3, %s4790_s16  ;;  %p8075_p3 = scmp.eq.s32.totalorder %s4456_s30, 0 }
  0xae   : > { %p59_p1 = scmp.eq.s32.totalorder %s58_s18, 0  ;;  %p8077_p7 = scmp.eq.s32.totalorder %s4603_s12, 0 }
  0xaf   : > { %p4804_p5 = por %p8075_p3, %p68_p2  ;;  %p87_p4 = scmp.eq.s32.totalorder %s86_s6, 0 }
  0xb0   : > { %p4810_p11 = por %p8077_p7, %p74_p0  ;;  %s4814_s23 = sadd.s32 8, %s3570_s8 }
  0xb1   : > { %s4817_s1 = scalar_select %p59_p1, %s4436_s25, %s61_s10  }
  0xb2   : > { %s8079_s19 = sadd.s32 1, %s4424_s22  ;;  %s4825_s13 = sadd.s32 8, %s3572_s15 }
  0xb3   : > { %s4822_s2 = scalar_select %p87_p4, %s4424_s22, %s8079_s19  }
  0xb4   : > { %s412_s3 = sand.u32 1, %s4436_s25   ;;  %s3584_s7 = sshll.u32 %s8556_s5, 1 }
  0xb5   : > { %s3581_s18 = sshll.u32 %s412_s3, 4  ;;  %s426_s9 = sadd.s32 %s4688_s26, %s3584_s7 }
  0xb6   : > { %s416_s6 = scalar_lea.vmem [#allocation2], %s3581_s18  ;;  %s3586_s27 = sshll.u32 %s426_s9, 7 }
  0xb7   : > { %s429_s11 = sshll.u32 %s416_s6, 4  ;;  %s4835_s29 = scalar_lea.hbm %s7736_s0, %s3586_s27  ;;  %s4830_s11 = int_to_ptr.vmem [resolvable:$true] %s429_s11 }
  0xb8   : > { %p8080_p13 = scmp.lt.s32.totalorder %s4456_s30, 4  ;;  %s4845_s7 = scalar_lea.sflag [#allocation3], %s412_s3 }
  0xb9   : > { %s4234_s9 = scalar_lea.hbm %s4835_s29, 256  ;;  %s4239_s20 = scalar_lea.hbm %s7736_s0, 8192 }
  0xba   : > { %p4841_p8 = pnand %p8080_p13, %p4804_p5  ;;  %p4235_p6 = scmp.ne.s32.totalorder %s4835_s29, %s4234_s9 }
  0xbb   : > { %p4240_p3 = scmp.lt.u32.totalorder %s4835_s29, %s7736_s0  ;;  %p4241_p5 = scmp.lt.u32.totalorder %s4239_s20, %s4234_s9 }
  0xbc   : > { %p4236_p12 = pneg %p4841_p8  ;;  %p4243_p7 = scmp.lt.u32.totalorder %s4234_s9, %s4835_s29 }
  0xbd   : > { %p4242_p1 = por %p4241_p5, %p4240_p3 }
  0xbe   : > { %p4237_p2 = pnand %p4236_p12, %p4235_p6 }
  0xbf   : > { %p4244_p4 = por %p4243_p7, %p4242_p1 }
  0xc0   : > { %p4238_p0 = pneg %p4237_p2 }
  0xc2   : > { %p4245_p13 = pnand %p4244_p4, %p4238_p0 }
  0xc4   : > { %4248 = shalt.err (!%p4245_p13)
}
  0xc5   : > { %s4249_s3 = scalar_lea.vmem %s4830_s11, 256  ;;  %s4466_s6 = smov [#allocation2]  }
  0xc6   : > { %p4250_p6 = scmp.ne.s32.totalorder %s4830_s11, %s4249_s3  ;;  %s4254_s8 = sshll.u32 %s4466_s6, 4  ;;  %s4255_s8 = int_to_ptr.vmem [resolvable:$false] %s4254_s8 }
  0xc7   : > { %s4256_s10 = scalar_lea.vmem %s4255_s8, 512  ;;  %p4257_p9 = scmp.lt.s32.totalorder %s4830_s11, %s4255_s8 }
  0xc8   : > { %p4252_p2 = pnand %p4250_p6, %p4236_p12  ;;  %p4258_p3 = scmp.lt.s32.totalorder %s4256_s10, %s4249_s3 }
  0xca   : > { %p4253_p10 = pneg %p4252_p2  ;;  %p4259_p5 = por %p4258_p3, %p4257_p9 }
  0xcc   : > { %p4260_p1 = pnand %p4259_p5, %p4253_p10 }
  0xce   : > { %4263 = shalt.err (!%p4260_p1)
}
  0xcf   : > { %s8082_s9 = sld [smem:[#allocation22_spill]]  ;;  %s8083_s27 = sld [smem:[#allocation21_spill]] }
  0xd0   : > { %s8084_s5 = sld [smem:[#allocation20_spill]]  ;;  %p8085_p9 = scmp.lt.s32.totalorder %s4814_s23, 15 }
  0xd1   : > { %3761 = dma.hbm_to_vmem [thread:$0]  (!%p4841_p8), %s4835_s29, 256, %s4830_s11, %s4845_s7, %s8069_s4, %s8069_s4, %s8068_s17  }
  0xd2   : > { %s8560_s23 = smov (!%p8085_p9, %s4814_s23), 15  ;;  %p8086_p10 = scmp.lt.s32.totalorder %s4825_s13, 15 }
  0xd3   : > { %p8087_p7 = scmp.eq.s32.totalorder %s4456_s30, 0  ;;  %p8088_p6 = scmp.eq.s32.totalorder %s4603_s12, 0 }
  0xd4   : > { %s8562_s13 = smov (!%p8086_p10, %s4825_s13), 15  ;;  %s3593_s11 = sshll.u32 %s8560_s23, 1 }
  0xd5   : > { %s125_s15 = sadd.s32 1, %s8082_s9  ;;  %p132_p12 = scmp.ne.s32.totalorder %s8082_s9, %s8083_s27 }
  0xd6   : > { %p138_p0 = scmp.ne.s32.totalorder %s8083_s27, %s8084_s5  ;;  %s121_s20 = ssub.s32 %s8560_s23, %s8562_s13 }
  0xd7   : > { %s464_s19 = sand.u32 1, %s8082_s9   ;;  %s122_s18 = sor.u32 %s121_s20, %s4790_s16 }
  0xd8   : > { %p134_p4 = por %p132_p12, %p8087_p7  ;;  %p123_p13 = scmp.eq.s32.totalorder %s122_s18, 0 }
  0xd9   : > { %p4893_p2 = por %p138_p0, %p8088_p6  ;;  %s3591_s29 = sshll.u32 %s464_s19, 4 }
  0xda   : > { %s8564_s9 = smov (!%p123_p13, %s8082_s9), %s125_s15  ;;  %s476_s7 = sadd.s32 %s3593_s11, %s4688_s26 }
  0xdb   : > { %s8089_s3 = scalar_select %p4893_p2, 1, 0 }
  0xdc   : > { %s3595_s6 = sshll.u32 %s476_s7, 7  ;;  %s466_s8 = scalar_lea.vmem [#allocation7], %s3591_s29 }
  0xdd   : > { %s479_s10 = sshll.u32 %s466_s8, 4  ;;  %s8090_s5 = sld [smem:[#allocation130_spill]]  ;;  %s4906_s10 = int_to_ptr.vmem [resolvable:$true] %s479_s10 }
  0xde   : > { %p8091_p8 = scmp.lt.s32.totalorder %s4456_s30, 4 }
  0xe0   : > { %p4910_p3 = pnand %p8091_p8, %p134_p4 }
  0xe2   : > { %p4266_p1 = pneg %p4910_p3 }
  0xe3   : > { %s4904_s16 = scalar_lea.hbm %s8090_s5, %s3595_s6  ;;  %s4269_s19 = scalar_lea.hbm %s8090_s5, 8192 }
  0xe4   : > { %s4264_s26 = scalar_lea.hbm %s4904_s16, 256  ;;  %p4270_p12 = scmp.lt.u32.totalorder %s4904_s16, %s8090_s5 }
  0xe5   : > { %p4265_p5 = scmp.ne.s32.totalorder %s4904_s16, %s4264_s26  ;;  %p4271_p0 = scmp.lt.u32.totalorder %s4269_s19, %s4264_s26 }
  0xe6   : > { %p4273_p4 = scmp.lt.u32.totalorder %s4264_s26, %s4904_s16 }
  0xe7   : > { %p4267_p9 = pnand %p4266_p1, %p4265_p5  ;;  %p4272_p7 = por %p4271_p0, %p4270_p12 }
  0xe9   : > { %p4268_p10 = pneg %p4267_p9  ;;  %p4274_p13 = por %p4273_p4, %p4272_p7 }
  0xeb   : > { %p4275_p6 = pnand %p4274_p13, %p4268_p10 }
  0xed   : > { %4278 = shalt.err (!%p4275_p6)
}
  0xee   : > { %s4279_s11 = scalar_lea.vmem %s4906_s10, 256  ;;  %s4467_s7 = smov [#allocation7]  }
  0xef   : > { %p4280_p8 = scmp.ne.s32.totalorder %s4906_s10, %s4279_s11  ;;  %s4284_s6 = sshll.u32 %s4467_s7, 4  ;;  %s4285_s6 = int_to_ptr.vmem [resolvable:$false] %s4284_s6 }
  0xf0   : > { %s4286_s8 = scalar_lea.vmem %s4285_s6, 512  ;;  %p4287_p2 = scmp.lt.s32.totalorder %s4906_s10, %s4285_s6 }
  0xf1   : > { %p4282_p5 = pnand %p4280_p8, %p4266_p1  ;;  %p4288_p12 = scmp.lt.s32.totalorder %s4286_s8, %s4279_s11 }
  0xf3   : > { %p4283_p9 = pneg %p4282_p5  ;;  %p4289_p0 = por %p4288_p12, %p4287_p2 }
  0xf5   : > { %p4290_p7 = pnand %p4289_p0, %p4283_p9 }
  0xf7   : > { %4293 = shalt.err (!%p4290_p7)
}
  0xf8   : > { %3767 = dma.hbm_to_vmem [thread:$0]  (!%p4910_p3), %s4904_s16, 256, %s4906_s10, %s4711_s21, %s8069_s4, %s8069_s4, %s8068_s17  }
  0xf9   : > { %s8093_s27 = sld [smem:[#allocation28_spill]] }
  0xff   : > { %p8094_p1 = scmp.ne.s32.totalorder %s8093_s27, 0 }
 0x101   : > { %491 = sbr.rel (%p8094_p1) target bundleno = 1359 (0x54f), region = 64 }
 0x108   : > { %s493_s13 = sand.u32 1, %s4432_s24  }
 0x109   : > { %s3597_s26 = sshll.u32 %s493_s13, 4  ;;  %s494_s15 = scalar_lea.sflag [#allocation3], %s493_s13 }
 0x10a   : > { %s497_s20 = scalar_lea.vmem [#allocation2], %s3597_s26 }
 0x10b   : > { %4379 = dma.done.wait (%p4810_p11), %s494_s15, 256  }
 0x10c   : > { %4381 = vsyncadd (%p4810_p11), %s494_s15, 4294967040  ;;  %s8095_s23 = sld [smem:[#allocation24_spill]]  ;;  %s8096_s19 = sld [smem:[#allocation31_spill]] }
 0x10d   : > { %s502_s18 = sand.u32 1, %s4603_s12  }
 0x10e   : > { %s503_s4 = scalar_lea.sflag [#allocation6], %s502_s18 }
 0x112   : > { %s504_s21 = sand.u32 1, %s8095_s23   ;;  %p8097_p2 = scmp.ne.s32.totalorder %s8096_s19, 0 }
 0x113   : > { %s4954_s17 = sshll.u32 %s504_s21, 7 }
 0x114   : > { %s4957_s10 = scalar_lea.vmem [#allocation5], %s4954_s17 }
 0x115   : > { %4383 = dma.done.wait (%p8097_p2), %s503_s4, 2048  }
 0x116   : > { %4385 = vsyncadd (%p8097_p2), %s503_s4, 4294965248  ;;  %s8098_s14 = sld [smem:[#allocation21_spill]]  ;;  %p8099_p11 = scmp.ne.s32.totalorder %s8089_s3, 0 }
 0x11c   : > { %s513_s16 = sand.u32 1, %s8098_s14  }
 0x11d   : > { %s4964_s29 = sshll.u32 %s513_s16, 4 }
 0x11e   : > { %s515_s11 = scalar_lea.vmem [#allocation7], %s4964_s29 }
 0x11f   : > { %4387 = dma.done.wait (%p8099_p11), %s503_s4, 256  }
 0x120   : > { %4389 = vsyncadd (%p8099_p11), %s503_s4, 4294967040  ;;  %p8100_p3 = scmp.eq.s32.totalorder %s4603_s12, 0 }
 0x122   : > { %4391 = dma.done.wait (%p8100_p3), [#allocation9], 2560   ;;  %p8101_p10 = pmov %p8100_p3 }
 0x123   : > { %p8102_p4 = pmov %p8100_p3 }
 0x124   : > { %4393 = vsyncadd (%p8101_p10), [#allocation9], 4294964736 }
 0x125   : > { %4395 = dma.done.wait (%p8102_p4), [#allocation12], 1024   ;;  %p8103_p13 = pmov %p8100_p3 }
 0x126   : > { %v4979_v0 = vld [vmem:[%s497_s20] sm:$0xff]  ;;  %v4981_v1 = vld [vmem:[%s497_s20 + $0x8] sm:$0xff]  ;;  %v4468_v41 = vmov 0   ;;  %s8104_s7 = sld [smem:[#allocation131_spill]]  ;;  %s8105_s27 = sld [smem:[#allocation132_spill]]  ;;  %vm1636_vm1 = vcmask 1046528  }
 0x127   : > { %4397 = vsyncadd (%p8103_p13), [#allocation12], 4294966272  ;;  %609 = vadd.xlane.f32.xlu0 %v4979_v0  ;;  %v670_v2 = vmul.f32 %v4979_v0, %v4979_v0  ;;  %v671_v3 = vmul.f32 %v4981_v1, %v4981_v1  ;;  %v4990_v4 = vld [vmem:[%s4957_s10] sm:$0xff]  ;;  %v4993_v5 = vld [vmem:[%s4957_s10 + $0x8] sm:$0xff]  ;;  %1074 = vmatprep.mubr.bf16.mxu0 %v4468_v41  ;;  %s8106_s13 = sld [smem:[#allocation25_spill]]  ;;  %s8107_s20 = sld [smem:[#allocation134_spill]] }
 0x128   : > { %v3902_v6 = vld [vmem:[#allocation8 + $0x4] ss:$8 sps:$4 sm:$0xff]   ;;  %v672_v7 = vmul.f32 %v4990_v4, %v4990_v4  ;;  %v673_v8 = vmul.f32 %v4993_v5, %v4993_v5  ;;  %v5002_v9 = vld [vmem:[%s4957_s10 + $0x10] sm:$0xff]  ;;  %v3904_v10 = vld [vmem:[#allocation8] ss:$8 sps:$4 sm:$0xff]   ;;  %vm1839_vm2 = vcmask 1045504  }
 0x129   : > { %690 = vadd.xlane.f32.xlu1 %v670_v2  ;;  %1042 = vmatprep.subr.bf16.mxu0 %v3902_v6  ;;  %v5005_v11 = vld [vmem:[%s4957_s10 + $0x18] sm:$0xff]  ;;  %v674_v13 = vmul.f32 %v5002_v9, %v5002_v9  ;;  %v3908_v16 = vld [vmem:[#allocation8 + $0x24] ss:$8 sps:$4 sm:$0xff]   ;;  %v3910_v17 = vld [vmem:[#allocation8 + $0x20] ss:$8 sps:$4 sm:$0xff]   ;;  %vm2042_vm3 = vcmask 1044480  }
 0x12a   : > { %1043 = vmatpush1.bf16.msra.mxu0 %v3904_v10  ;;  %v3905_v12 = vld [vmem:[#allocation8 + $0x14] ss:$8 sps:$4 sm:$0xff]   ;;  %v3907_v14 = vld [vmem:[#allocation8 + $0x10] ss:$8 sps:$4 sm:$0xff]   ;;  %v675_v15 = vmul.f32 %v5005_v11, %v5005_v11  ;;  %v5014_v18 = vld [vmem:[%s4957_s10 + $0x20] sm:$0xff]  ;;  %vm2245_vm4 = vcmask 1043456  }
 0x12b   : > { %611 = vadd.xlane.f32.xlu0 %v4981_v1  ;;  %1044 = vmatprep.subr.bf16.mxu0 %v3905_v12  ;;  %v5017_v19 = vld [vmem:[%s4957_s10 + $0x28] sm:$0xff]  ;;  %v3911_v20 = vld [vmem:[#allocation8 + $0x34] ss:$8 sps:$4 sm:$0xff]   ;;  %v676_v21 = vmul.f32 %v5014_v18, %v5014_v18  ;;  %v3913_v22 = vld [vmem:[#allocation8 + $0x30] ss:$8 sps:$4 sm:$0xff]   ;;  %vm2448_vm6 = vcmask 1042432  }
 0x12c   : > { %v677_v23 = vmul.f32 %v5017_v19, %v5017_v19  ;;  %v3914_v24 = vld [vmem:[#allocation8 + $0x44] ss:$8 sps:$4 sm:$0xff]   ;;  %v3916_v25 = vld [vmem:[#allocation8 + $0x40] ss:$8 sps:$4 sm:$0xff]   ;;  %v5026_v26 = vld [vmem:[%s4957_s10 + $0x30] sm:$0xff]  ;;  %vm2651_vm7 = vcmask 1041408  }
 0x12d   : > { %692 = vadd.xlane.f32.xlu1 %v671_v3  ;;  %v5029_v27 = vld [vmem:[%s4957_s10 + $0x38] sm:$0xff]  ;;  %v678_v28 = vmul.f32 %v5026_v26, %v5026_v26  ;;  %v3920_v32 = vld [vmem:[#allocation8 + $0x64] ss:$8 sps:$4 sm:$0xff]   ;;  %v3922_v34 = vld [vmem:[#allocation8 + $0x60] ss:$8 sps:$4 sm:$0xff]   ;;  %p1356_p6 = scmp.gt.s32.totalorder %s8106_s13, 0 }
 0x12e   : > { %1045 = vmatpush1.bf16.msra.mxu0 %v3907_v14  ;;  %v3917_v29 = vld [vmem:[#allocation8 + $0x54] ss:$8 sps:$4 sm:$0xff]   ;;  %v3919_v30 = vld [vmem:[#allocation8 + $0x50] ss:$8 sps:$4 sm:$0xff]   ;;  %v679_v31 = vmul.f32 %v5029_v27, %v5029_v27  ;;  %v5038_v33 = vld [vmem:[%s4957_s10 + $0x40] sm:$0xff]  ;;  %p1400_p8 = scmp.lt.s32.totalorder %s8106_s13, 1 }
 0x12f   : > { %613 = vadd.xlane.f32.xlu0 %v4990_v4  ;;  %1046 = vmatprep.subr.bf16.mxu0 %v3908_v16  ;;  %v5041_v35 = vld [vmem:[%s4957_s10 + $0x48] sm:$0xff]  ;;  %v680_v36 = vmul.f32 %v5038_v33, %v5038_v33  ;;  %v3923_v37 = vld [vmem:[#allocation8 + $0x74] ss:$8 sps:$4 sm:$0xff]   ;;  %v3925_v38 = vld [vmem:[#allocation8 + $0x70] ss:$8 sps:$4 sm:$0xff]   ;;  %vm2854_vm8 = vcmask 1040384  }
 0x130   : > { %v681_v39 = vmul.f32 %v5041_v35, %v5041_v35  ;;  %v5050_v40 = vld [vmem:[%s4957_s10 + $0x50] sm:$0xff]  ;;  %v5054_v42 = vld [vmem:[%s4957_s10 + $0x58] sm:$0xff]  ;;  %v5063_v45 = vld [vmem:[%s4957_s10 + $0x60] sm:$0xff]  ;;  %s5274_s19 = scalar_select %p1356_p6, 1, 0 }
 0x131   : > { %615 = vadd.xlane.f32.xlu1 %v4993_v5  ;;  %v682_v43 = vmul.f32 %v5050_v40, %v5050_v40  ;;  %v683_v44 = vmul.f32 %v5054_v42, %v5054_v42  ;;  %v5066_v46 = vld [vmem:[%s4957_s10 + $0x68] sm:$0xff]  ;;  %v684_v47 = vmul.f32 %v5063_v45, %v5063_v45  ;;  %v5075_v49 = vld [vmem:[%s4957_s10 + $0x70] sm:$0xff]  ;;  %v5078_v50 = vld [vmem:[%s4957_s10 + $0x78] sm:$0xff]  ;;  %s5318_s18 = scalar_select %p1400_p8, 1, 0 }
 0x132   : > { %1047 = vmatpush1.bf16.msra.mxu0 %v3910_v17  ;;  %v685_v48 = vmul.f32 %v5066_v46, %v5066_v46  ;;  %v686_v51 = vmul.f32 %v5075_v49, %v5075_v49  ;;  %v687_v52 = vmul.f32 %v5078_v50, %v5078_v50  ;;  %v5088_v53 = vld [vmem:[%s515_s11] sm:$0xff]  ;;  %v5092_v54 = vld [vmem:[%s515_s11 + $0x8] sm:$0xff]  ;;  %s8262_s14 = sld [smem:[#allocation136_spill]]  ;;  %s8525_s3 = sld [smem:[#allocation138_spill]] }
 0x133   : > { %694 = vadd.xlane.f32.xlu0 %v672_v7  ;;  %1048 = vmatprep.subr.bf16.mxu0 %v3911_v20  ;;  %v688_v55 = vmul.f32 %v5088_v53, %v5088_v53  ;;  %v689_v56 = vmul.f32 %v5092_v54, %v5092_v54  ;;  %s3669_s6 = sshll.u32 %s8106_s13, 4  ;;  %s8527_s15 = sld [smem:[#allocation30_spill]] }
 0x134   : > { %s7660_s16 = scalar_lea.sflag [#allocation4], %s504_s21  ;;  %s4469_s11 = smov [#allocation13]  }
 0x135   : > { %696 = vadd.xlane.f32.xlu1 %v673_v8  ;;  %s4298_s12 = sshll.u32 %s4469_s11, 4  ;;  %s4299_s12 = int_to_ptr.vmem [resolvable:$false] %s4298_s12 }
 0x136   : > { %1049 = vmatpush1.bf16.msra.mxu0 %v3913_v22 }
 0x137   : > { %617 = vadd.xlane.f32.xlu0 %v5002_v9  ;;  %1050 = vmatprep.subr.bf16.mxu0 %v3914_v24 }
 0x139   : > { %619 = vadd.xlane.f32.xlu1 %v5005_v11  ;;  %p8530_p9 = scmp.ne.s32.totalorder %s8527_s15, 0 }
 0x13a   : > { %1051 = vmatpush1.bf16.msra.mxu0 %v3916_v25 }
 0x13b   : > { %698 = vadd.xlane.f32.xlu0 %v674_v13  ;;  %1052 = vmatprep.subr.bf16.mxu0 %v3917_v29 }
 0x13d   : > { %700 = vadd.xlane.f32.xlu1 %v675_v15 }
 0x13e   : > { %1053 = vmatpush1.bf16.msra.mxu0 %v3919_v30 }
 0x13f   : > { %621 = vadd.xlane.f32.xlu0 %v5014_v18  ;;  %1054 = vmatprep.subr.bf16.mxu0 %v3920_v32 }
 0x141   : > { %623 = vadd.xlane.f32.xlu1 %v5017_v19 }
 0x142   : > { %1055 = vmatpush1.bf16.msra.mxu0 %v3922_v34 }
 0x143   : > { %702 = vadd.xlane.f32.xlu0 %v676_v21  ;;  %1056 = vmatprep.subr.bf16.mxu0 %v3923_v37 }
 0x145   : > { %704 = vadd.xlane.f32.xlu1 %v677_v23 }
 0x146   : > { %1057 = vmatpush1.bf16.msra.mxu0 %v3925_v38 }
 0x147   : > { %625 = vadd.xlane.f32.xlu0 %v5026_v26 }
 0x149   : > { %627 = vadd.xlane.f32.xlu1 %v5029_v27 }
 0x14b   : > { %706 = vadd.xlane.f32.xlu0 %v678_v28 }
 0x14d   : > { %708 = vadd.xlane.f32.xlu1 %v679_v31 }
 0x14f   : > { %629 = vadd.xlane.f32.xlu0 %v5038_v33 }
 0x151   : > { %631 = vadd.xlane.f32.xlu1 %v5041_v35 }
 0x153   : > { %710 = vadd.xlane.f32.xlu0 %v680_v36 }
 0x155   : > { %712 = vadd.xlane.f32.xlu1 %v681_v39 }
 0x157   : > { %633 = vadd.xlane.f32.xlu0 %v5050_v40 }
 0x159   : > { %635 = vadd.xlane.f32.xlu1 %v5054_v42 }
 0x15b   : > { %714 = vadd.xlane.f32.xlu0 %v682_v43 }
 0x15d   : > { %716 = vadd.xlane.f32.xlu1 %v683_v44 }
 0x15f   : > { %637 = vadd.xlane.f32.xlu0 %v5063_v45 }
 0x161   : > { %639 = vadd.xlane.f32.xlu1 %v5066_v46 }
 0x163   : > { %718 = vadd.xlane.f32.xlu0 %v684_v47 }
 0x165   : > { %720 = vadd.xlane.f32.xlu1 %v685_v48  ;;  %v5110_v48 = vld [vmem:[%s8104_s7] ss:$0 sm:$0xff]  ;;  %s7630_s7 = scalar_lea.vmem [#allocation13], %s4954_s17  ;;  %s8526_s17 = sld [smem:[#allocation26_spill]] }
 0x166   : > { %s3400_s26 = sshll.u32 %s7630_s7, 4  ;;  %s7648_s26 = int_to_ptr.vmem [resolvable:$true] %s3400_s26 }
 0x167   : > { %641 = vadd.xlane.f32.xlu0 %v5075_v49  ;;  %s4294_s29 = scalar_lea.vmem %s7648_s26, 2048  ;;  %p4301_p7 = scmp.lt.s32.totalorder %s7648_s26, %s4299_s12 }
 0x168   : > { %p4295_p5 = scmp.ne.s32.totalorder %s7648_s26, %s4294_s29 }
 0x169   : > { %643 = vadd.xlane.f32.xlu1 %v5078_v50 }
 0x16a   : > { %p4296_p12 = pnand %p4295_p5, %p8530_p9 }
 0x16b   : > { %722 = vadd.xlane.f32.xlu0 %v686_v51  ;;  %s3670_s8 = sshll.u32 %s8526_s17, 5 }
 0x16c   : > { %p4297_p0 = pneg %p4296_p12 }
 0x16d   : > { %724 = vadd.xlane.f32.xlu1 %v687_v52 }
 0x16f   : > { %645 = vadd.xlane.f32.xlu0 %v5088_v53 }
 0x171   : > { %647 = vadd.xlane.f32.xlu1 %v5092_v54 }
 0x173   : > { %726 = vadd.xlane.f32.xlu0 %v688_v55 }
 0x175   : > { %728 = vadd.xlane.f32.xlu1 %v689_v56 }
 0x1b4   : > { %v610_v57 = vpop.xlane.xlu0 %609 }
 0x1b5   : > { %v650_v58 = vmul.f32 0.0078125, %v610_v57 }
 0x1b6   : > { %v691_v59 = vpop.xlane.xlu1 %690 }
 0x1b7   : > { %v750_v60 = vmul.f32 %v650_v58, %v650_v58  ;;  %v730_v61 = vmul.f32 0.0078125, %v691_v59  ;;  %v790_v32 = vsub.f32 %v4979_v0, %v650_v58 }
 0x1b8   : > { %v612_v62 = vpop.xlane.xlu0 %611 }
 0x1b9   : > { %v770_v63 = vsub.f32 %v730_v61, %v750_v60  ;;  %v651_v2 = vmul.f32 0.0078125, %v612_v62 }
 0x1ba   : > { %v693_v3 = vpop.xlane.xlu1 %692 }
 0x1bb   : > { %v810_v6 = vadd.f32 1e-05, %v770_v63  ;;  %v751_v7 = vmul.f32 %v651_v2, %v651_v2  ;;  %v731_v8 = vmul.f32 0.0078125, %v693_v3  ;;  %v791_v0 = vsub.f32 %v4981_v1, %v651_v2  ;;  %v5121_v3 = vld [vmem:[%s8105_s27] ss:$0 sm:$0xff]  ;;  %s3397_s27 = sadd.s32 %s3670_s8, %s3669_s6 }
 0x1bc   : > { %v614_v10 = vpop.xlane.xlu0 %613 }
 0x1bd   : > { %3934 = vrsqrt.f32 %v810_v6  ;;  %v771_v12 = vsub.f32 %v731_v8, %v751_v7  ;;  %v652_v13 = vmul.f32 0.0078125, %v614_v10 }
 0x1be   : > { %v616_v14 = vpop.xlane.xlu1 %615 }
 0x1bf   : > { %v811_v15 = vadd.f32 1e-05, %v771_v12  ;;  %v752_v16 = vmul.f32 %v652_v13, %v652_v13  ;;  %v653_v17 = vmul.f32 0.0078125, %v616_v14  ;;  %v792_v8 = vsub.f32 %v4990_v4, %v652_v13 }
 0x1c0   : > { %v695_v20 = vpop.xlane.xlu0 %694 }
 0x1c1   : > { %3936 = vrsqrt.f32 %v811_v15  ;;  %v732_v21 = vmul.f32 0.0078125, %v695_v20  ;;  %v753_v23 = vmul.f32 %v653_v17, %v653_v17 }
 0x1c2   : > { %v697_v22 = vpop.xlane.xlu1 %696 }
 0x1c3   : > { %v772_v24 = vsub.f32 %v732_v21, %v752_v16  ;;  %v733_v25 = vmul.f32 0.0078125, %v697_v22  ;;  %v793_v21 = vsub.f32 %v4993_v5, %v653_v17 }
 0x1c4   : > { %v618_v28 = vpop.xlane.xlu0 %617 }
 0x1c5   : > { %v812_v29 = vadd.f32 1e-05, %v772_v24  ;;  %v773_v30 = vsub.f32 %v733_v25, %v753_v23  ;;  %v5100_v31 = vmul.f32 0.0078125, %v618_v28 }
 0x1c6   : > { %v620_v34 = vpop.xlane.xlu1 %619 }
 0x1c7   : > { %v3935_v36 = vpop.eup %3934  ;;  %3938 = vrsqrt.f32 %v812_v29  ;;  %v813_v37 = vadd.f32 1e-05, %v773_v30  ;;  %v754_v38 = vmul.f32 %v5100_v31, %v5100_v31  ;;  %v5105_v39 = vmul.f32 0.0078125, %v620_v34 }
 0x1c8   : > { %v699_v43 = vpop.xlane.xlu0 %698  ;;  %v850_v44 = vmul.f32 %v3935_v36, %v790_v32 }
 0x1c9   : > { %3940 = vrsqrt.f32 %v813_v37  ;;  %v734_v47 = vmul.f32 0.0078125, %v699_v43  ;;  %v755_v55 = vmul.f32 %v5105_v39, %v5105_v39 }
 0x1ca   : > { %v701_v51 = vpop.xlane.xlu1 %700  ;;  %v877_v60 = vmul.f32 %v5110_v48, %v850_v44  ;;  %v794_v44 = vsub.f32 %v5002_v9, %v5100_v31 }
 0x1cb   : > { %v3937_v52 = vpop.eup %3936  ;;  %v774_v56 = vsub.f32 %v734_v47, %v754_v38  ;;  %v735_v57 = vmul.f32 0.0078125, %v701_v51 }
 0x1cc   : > { %v622_v58 = vpop.xlane.xlu0 %621  ;;  %v851_v59 = vmul.f32 %v3937_v52, %v791_v0  ;;  %v904_v14 = vadd.f32 %v5121_v3, %v877_v60 }
 0x1cd   : > { %v814_v61 = vadd.f32 1e-05, %v774_v56  ;;  %v775_v62 = vsub.f32 %v735_v57, %v755_v55  ;;  %v5116_v63 = vmul.f32 0.0078125, %v622_v58  ;;  %v795_v57 = vsub.f32 %v5005_v11, %v5105_v39 }
 0x1ce   : > { %v624_v1 = vpop.xlane.xlu1 %623  ;;  %v878_v2 = vmul.f32 %v5110_v48, %v851_v59 }
 0x1cf   : > { %3942 = vrsqrt.f32 %v814_v61  ;;  %v815_v6 = vadd.f32 1e-05, %v775_v62  ;;  %v756_v7 = vmul.f32 %v5116_v63, %v5116_v63  ;;  %v5127_v10 = vmul.f32 0.0078125, %v624_v1 }
 0x1d0   : > { %v703_v12 = vpop.xlane.xlu0 %702  ;;  %v905_v15 = vadd.f32 %v5121_v3, %v878_v2 }
 0x1d1   : > { %v3939_v16 = vpop.eup %3938  ;;  %3944 = vrsqrt.f32 %v815_v6  ;;  %v736_v20 = vmul.f32 0.0078125, %v703_v12  ;;  %v757_v28 = vmul.f32 %v5127_v10, %v5127_v10 }
 0x1d2   : > { %v705_v22 = vpop.xlane.xlu1 %704  ;;  %v924_v23 = vpack.c.bf16 %v905_v15, %v904_v14  ;;  %v852_v24 = vmul.f32 %v3939_v16, %v792_v8  ;;  %v796_v16 = vsub.f32 %v5014_v18, %v5116_v63 }
 0x1d3   : > { %v3941_v25 = vpop.eup %3940  ;;  %v776_v4 = vsub.f32 %v736_v20, %v756_v7  ;;  %v737_v13 = vmul.f32 0.0078125, %v705_v22 }
 0x1d4   : > { %v626_v29 = vpop.xlane.xlu0 %625  ;;  %1075 = vmatmul.mubr.bf16.vlgmr.msra.gmra.mrb[0].mxu0 %v924_v23  ;;  %v853_v30 = vmul.f32 %v3941_v25, %v793_v21  ;;  %v879_v32 = vmul.f32 %v5110_v48, %v852_v24 }
 0x1d5   : > { %v816_v34 = vadd.f32 1e-05, %v776_v4  ;;  %v777_v36 = vsub.f32 %v737_v13, %v757_v28  ;;  %v5135_v37 = vmul.f32 0.0078125, %v626_v29  ;;  %1084 = vmatprep.mubr.bf16.mxu0 %v4468_v41  ;;  %v797_v28 = vsub.f32 %v5017_v19, %v5127_v10 }
 0x1d6   : > { %v628_v5 = vpop.xlane.xlu1 %627  ;;  %v880_v17 = vmul.f32 %v5110_v48, %v853_v30  ;;  %v906_v51 = vadd.f32 %v5121_v3, %v879_v32 }
 0x1d7   : > { %3946 = vrsqrt.f32 %v816_v34  ;;  %v817_v38 = vadd.f32 1e-05, %v777_v36  ;;  %v758_v43 = vmul.f32 %v5135_v37, %v5135_v37  ;;  %v5143_v47 = vmul.f32 0.0078125, %v628_v5 }
 0x1d8   : > { %v707_v0 = vpop.xlane.xlu0 %706  ;;  %v907_v52 = vadd.f32 %v5121_v3, %v880_v17 }
 0x1d9   : > { %v3943_v55 = vpop.eup %3942  ;;  %3948 = vrsqrt.f32 %v817_v38  ;;  %v738_v56 = vmul.f32 0.0078125, %v707_v0  ;;  %v759_v9 = vmul.f32 %v5143_v47, %v5143_v47 }
 0x1da   : > { %v709_v58 = vpop.xlane.xlu1 %708  ;;  %v925_v59 = vpack.c.bf16 %v907_v52, %v906_v51  ;;  %v854_v60 = vmul.f32 %v3943_v55, %v794_v44  ;;  %v798_v51 = vsub.f32 %v5026_v26, %v5135_v37 }
 0x1db   : > { %v3945_v61 = vpop.eup %3944  ;;  %v778_v31 = vsub.f32 %v738_v56, %v758_v43  ;;  %v739_v62 = vmul.f32 0.0078125, %v709_v58 }
 0x1dc   : > { %v630_v1 = vpop.xlane.xlu0 %629  ;;  %1085 = vmatmul.mubr.bf16.gmra.mrb[4].mxu0 %v925_v59  ;;  %v855_v2 = vmul.f32 %v3945_v61, %v795_v57  ;;  %v881_v6 = vmul.f32 %v5110_v48, %v854_v60  ;;  %v799_v60 = vsub.f32 %v5029_v27, %v5143_v47 }
 0x1dd   : > { %v818_v7 = vadd.f32 1e-05, %v778_v31  ;;  %v779_v8 = vsub.f32 %v739_v62, %v759_v9  ;;  %v5152_v12 = vmul.f32 0.0078125, %v630_v1  ;;  %1094 = vmatprep.mubr.bf16.mxu0 %v4468_v41 }
 0x1de   : > { %v632_v11 = vpop.xlane.xlu1 %631  ;;  %v882_v39 = vmul.f32 %v5110_v48, %v855_v2  ;;  %v908_v22 = vadd.f32 %v5121_v3, %v881_v6 }
 0x1df   : > { %3950 = vrsqrt.f32 %v818_v7  ;;  %v819_v14 = vadd.f32 1e-05, %v779_v8  ;;  %v760_v15 = vmul.f32 %v5152_v12, %v5152_v12  ;;  %v5160_v20 = vmul.f32 0.0078125, %v632_v11 }
 0x1e0   : > { %v711_v21 = vpop.xlane.xlu0 %710  ;;  %v909_v23 = vadd.f32 %v5121_v3, %v882_v39 }
 0x1e1   : > { %v3947_v24 = vpop.eup %3946  ;;  %3952 = vrsqrt.f32 %v819_v14  ;;  %v740_v25 = vmul.f32 0.0078125, %v711_v21  ;;  %v761_v18 = vmul.f32 %v5160_v20, %v5160_v20 }
 0x1e2   : > { %v713_v4 = vpop.xlane.xlu1 %712  ;;  %v926_v13 = vpack.c.bf16 %v909_v23, %v908_v22  ;;  %v856_v29 = vmul.f32 %v3947_v24, %v796_v16  ;;  %v800_v16 = vsub.f32 %v5038_v33, %v5152_v12 }
 0x1e3   : > { %v3949_v30 = vpop.eup %3948  ;;  %v780_v63 = vsub.f32 %v740_v25, %v760_v15  ;;  %v741_v32 = vmul.f32 0.0078125, %v713_v4  ;;  %v801_v4 = vsub.f32 %v5041_v35, %v5160_v20 }
 0x1e4   : > { %v634_v34 = vpop.xlane.xlu0 %633  ;;  %1095 = vmatmul.mubr.bf16.gmra.mrb[8].mxu0 %v926_v13  ;;  %v857_v36 = vmul.f32 %v3949_v30, %v797_v28  ;;  %v883_v5 = vmul.f32 %v5110_v48, %v856_v29 }
 0x1e5   : > { %v820_v17 = vadd.f32 1e-05, %v780_v63  ;;  %v781_v38 = vsub.f32 %v741_v32, %v761_v18  ;;  %v5169_v43 = vmul.f32 0.0078125, %v634_v34  ;;  %1104 = vmatprep.mubr.bf16.mxu0 %v4468_v41 }
 0x1e6   : > { %v636_v19 = vpop.xlane.xlu1 %635  ;;  %v884_v10 = vmul.f32 %v5110_v48, %v857_v36  ;;  %v910_v56 = vadd.f32 %v5121_v3, %v883_v5 }
 0x1e7   : > { %3954 = vrsqrt.f32 %v820_v17  ;;  %v821_v44 = vadd.f32 1e-05, %v781_v38  ;;  %v762_v0 = vmul.f32 %v5169_v43, %v5169_v43  ;;  %v5177_v52 = vmul.f32 0.0078125, %v636_v19 }
 0x1e8   : > { %v715_v55 = vpop.xlane.xlu0 %714  ;;  %v911_v57 = vadd.f32 %v5121_v3, %v884_v10 }
 0x1e9   : > { %v3951_v58 = vpop.eup %3950  ;;  %3956 = vrsqrt.f32 %v821_v44  ;;  %v742_v59 = vmul.f32 0.0078125, %v715_v55  ;;  %v763_v26 = vmul.f32 %v5177_v52, %v5177_v52  ;;  %v802_v44 = vsub.f32 %v5050_v40, %v5169_v43 }
 0x1ea   : > { %v717_v61 = vpop.xlane.xlu1 %716  ;;  %v927_v9 = vpack.c.bf16 %v911_v57, %v910_v56  ;;  %v858_v31 = vmul.f32 %v3951_v58, %v798_v51 }
 0x1eb   : > { %v3953_v62 = vpop.eup %3952  ;;  %v782_v37 = vsub.f32 %v742_v59, %v762_v0  ;;  %v743_v1 = vmul.f32 0.0078125, %v717_v61  ;;  %v803_v59 = vsub.f32 %v5054_v42, %v5177_v52 }
 0x1ec   : > { %v638_v2 = vpop.xlane.xlu0 %637  ;;  %1105 = vmatmul.mubr.bf16.gmra.mrb[12].mxu0 %v927_v9  ;;  %v859_v6 = vmul.f32 %v3953_v62, %v799_v60  ;;  %v885_v7 = vmul.f32 %v5110_v48, %v858_v31 }
 0x1ed   : > { %v822_v8 = vadd.f32 1e-05, %v782_v37  ;;  %v783_v11 = vsub.f32 %v743_v1, %v763_v26  ;;  %v5186_v39 = vmul.f32 0.0078125, %v638_v2  ;;  %1114 = vmatprep.mubr.bf16.mxu0 %v4468_v41 }
 0x1ee   : > { %v640_v27 = vpop.xlane.xlu1 %639  ;;  %v886_v47 = vmul.f32 %v5110_v48, %v859_v6  ;;  %v912_v23 = vadd.f32 %v5121_v3, %v885_v7 }
 0x1ef   : > { %3958 = vrsqrt.f32 %v822_v8  ;;  %v823_v14 = vadd.f32 1e-05, %v783_v11  ;;  %v764_v15 = vmul.f32 %v5186_v39, %v5186_v39  ;;  %v5194_v21 = vmul.f32 0.0078125, %v640_v27 }
 0x1f0   : > { %v719_v22 = vpop.xlane.xlu0 %718  ;;  %v913_v24 = vadd.f32 %v5121_v3, %v886_v47  ;;  %v804_v27 = vsub.f32 %v5063_v45, %v5186_v39 }
 0x1f1   : > { %v3955_v25 = vpop.eup %3954  ;;  %3960 = vrsqrt.f32 %v823_v14  ;;  %v744_v28 = vmul.f32 0.0078125, %v719_v22  ;;  %v765_v33 = vmul.f32 %v5194_v21, %v5194_v21 }
 0x1f2   : > { %v721_v13 = vpop.xlane.xlu1 %720  ;;  %v928_v29 = vpack.c.bf16 %v913_v24, %v912_v23  ;;  %v860_v30 = vmul.f32 %v3955_v25, %v800_v16  ;;  %v805_v24 = vsub.f32 %v5066_v46, %v5194_v21 }
 0x1f3   : > { %v3957_v18 = vpop.eup %3956  ;;  %v784_v12 = vsub.f32 %v744_v28, %v764_v15  ;;  %v745_v63 = vmul.f32 0.0078125, %v721_v13 }
 0x1f4   : > { %v642_v32 = vpop.xlane.xlu0 %641  ;;  %1115 = vmatmul.mubr.bf16.gmra.mrb[16].mxu0 %v928_v29  ;;  %v861_v34 = vmul.f32 %v3957_v18, %v801_v4  ;;  %v887_v36 = vmul.f32 %v5110_v48, %v860_v30 }
 0x1f5   : > { %v824_v5 = vadd.f32 1e-05, %v784_v12  ;;  %v785_v17 = vsub.f32 %v745_v63, %v765_v33  ;;  %v5203_v38 = vmul.f32 0.0078125, %v642_v32  ;;  %1124 = vmatprep.mubr.bf16.mxu0 %v4468_v41 }
 0x1f6   : > { %v644_v35 = vpop.xlane.xlu1 %643  ;;  %v888_v20 = vmul.f32 %v5110_v48, %v861_v34  ;;  %v914_v55 = vadd.f32 %v5121_v3, %v887_v36 }
 0x1f7   : > { %3962 = vrsqrt.f32 %v824_v5  ;;  %v825_v19 = vadd.f32 1e-05, %v785_v17  ;;  %v766_v10 = vmul.f32 %v5203_v38, %v5203_v38  ;;  %v5211_v0 = vmul.f32 0.0078125, %v644_v35 }
 0x1f8   : > { %v723_v51 = vpop.xlane.xlu0 %722  ;;  %v915_v56 = vadd.f32 %v5121_v3, %v888_v20  ;;  %v806_v46 = vsub.f32 %v5075_v49, %v5203_v38 }
 0x1f9   : > { %v3959_v57 = vpop.eup %3958  ;;  %3964 = vrsqrt.f32 %v825_v19  ;;  %v746_v58 = vmul.f32 0.0078125, %v723_v51  ;;  %v767_v40 = vmul.f32 %v5211_v0, %v5211_v0  ;;  %v807_v5 = vsub.f32 %v5078_v50, %v5211_v0 }
 0x1fa   : > { %v725_v60 = vpop.xlane.xlu1 %724  ;;  %v929_v61 = vpack.c.bf16 %v915_v56, %v914_v55  ;;  %v862_v9 = vmul.f32 %v3959_v57, %v802_v44 }
 0x1fb   : > { %v3961_v31 = vpop.eup %3960  ;;  %v786_v43 = vsub.f32 %v746_v58, %v766_v10  ;;  %v747_v62 = vmul.f32 0.0078125, %v725_v60 }
 0x1fc   : > { %v646_v26 = vpop.xlane.xlu0 %645  ;;  %1125 = vmatmul.mubr.bf16.gmra.mrb[20].mxu0 %v929_v61  ;;  %v863_v37 = vmul.f32 %v3961_v31, %v803_v59  ;;  %v889_v1 = vmul.f32 %v5110_v48, %v862_v9  ;;  %v952_v31 = vlaneseq }
 0x1fd   : > { %v826_v2 = vadd.f32 1e-05, %v786_v43  ;;  %v787_v6 = vsub.f32 %v747_v62, %v767_v40  ;;  %v668_v7 = vmul.f32 0.0078125, %v646_v26  ;;  %1134 = vmatprep.mubr.bf16.mxu0 %v4468_v41  ;;  %v950_v43 = vld [vmem:[%s8107_s20] sm:$0x3]  ;;  %s3671_s20 = sshll.u32 %s3397_s27, 7 }
 0x1fe   : > { %v648_v42 = vpop.xlane.xlu1 %647  ;;  %v890_v52 = vmul.f32 %v5110_v48, %v863_v37  ;;  %v916_v15 = vadd.f32 %v5121_v3, %v889_v1 }
 0x1ff   : > { %3966 = vrsqrt.f32 %v826_v2  ;;  %v827_v8 = vadd.f32 1e-05, %v787_v6  ;;  %v768_v11 = vmul.f32 %v668_v7, %v668_v7  ;;  %v669_v47 = vmul.f32 0.0078125, %v648_v42 }
 0x200   : > { %v727_v14 = vpop.xlane.xlu0 %726  ;;  %v917_v16 = vadd.f32 %v5121_v3, %v890_v52  ;;  %v808_v38 = vsub.f32 %v5088_v53, %v668_v7 }
 0x201   : > { %v3963_v22 = vpop.eup %3962  ;;  %3968 = vrsqrt.f32 %v827_v8  ;;  %v748_v23 = vmul.f32 0.0078125, %v727_v14  ;;  %v769_v29 = vmul.f32 %v669_v47, %v669_v47  ;;  %v809_v50 = vsub.f32 %v5092_v54, %v669_v47 }
 0x202   : > { %v729_v25 = vpop.xlane.xlu1 %728  ;;  %v930_v28 = vpack.c.bf16 %v917_v16, %v916_v15  ;;  %v864_v4 = vmul.f32 %v3963_v22, %v804_v27  ;;  %v5249_v54 = vshrl.u32 %v952_v31, 7  ;;  %v5277_v16 = vld [vmem:[#allocation10] sm:$0xff] }
 0x203   : > { %v3965_v13 = vpop.eup %3964  ;;  %v788_v30 = vsub.f32 %v748_v23, %v768_v11  ;;  %v749_v18 = vmul.f32 0.0078125, %v729_v25 }
 0x204   : > { %1135 = vmatmul.mubr.bf16.gmra.mrb[24].mxu0 %v930_v28  ;;  %v865_v45 = vmul.f32 %v3965_v13, %v805_v24  ;;  %v891_v39 = vmul.f32 %v5110_v48, %v864_v4  ;;  %v5252_v40 = vsub.s32 1, %v5249_v54  ;;  %v954_v27 = vsub.s32 0, %v5249_v54  ;;  %v5280_v24 = vld [vmem:[#allocation10 + $0x8] sm:$0xff]  ;;  %v5286_v13 = vld [vmem:[#allocation10 + $0x10] sm:$0xff] }
 0x205   : > { %v828_v33 = vadd.f32 1e-05, %v788_v30  ;;  %v789_v12 = vsub.f32 %v749_v18, %v769_v29  ;;  %1144 = vmatprep.mubr.bf16.mxu0 %v4468_v41  ;;  %v1510_v15 = vsub.s32 7, %v5249_v54  ;;  %v2103_v22 = vsub.s32 2, %v5249_v54  ;;  %v3926_v29 = vld [vmem:[#allocation11] sm:$0xff]  }
 0x206   : > { %v892_v63 = vmul.f32 %v5110_v48, %v865_v45  ;;  %v918_v21 = vadd.f32 %v5121_v3, %v891_v39  ;;  %v5282_v28 = vrot.slane %v950_v43, %v954_v27  ;;  %v1358_v18 = vstv %s5274_s19  ;;  %3696 = vmatprep.subr.bf16.mxu1 %v3926_v29 }
 0x207   : > { %3970 = vrsqrt.f32 %v828_v33  ;;  %v829_v32 = vadd.f32 1e-05, %v789_v12  ;;  %v5291_v45 = vrot.slane %v5277_v16, %v1510_v15  ;;  %v5294_v39 = vrot.slane %v5277_v16, %v954_v27  ;;  %3697 = vmatpush3.bf16.msra.mxu1 %v3926_v29 }
 0x208   : > { %v919_v34 = vadd.f32 %v5121_v3, %v892_v63  ;;  %v5298_v63 = vrot.slane %v5277_v16, %v5252_v40  ;;  %vm5326_vm0 = vcmp.eq.s32.totalorder %v1358_v18, 1 }
 0x209   : > { %v3967_v36 = vpop.eup %3966  ;;  %3972 = vrsqrt.f32 %v829_v32  ;;  %8108 = vst [vmem:[#allocation34_spill] sm:$0xff] %v5294_v39  ;;  %v5301_v32 = vrot.slane %v5277_v16, %v2103_v22 }
 0x20a   : > { %v931_v17 = vpack.c.bf16 %v919_v34, %v918_v21  ;;  %v866_v35 = vmul.f32 %v3967_v36, %v806_v46  ;;  %8109 = vst [vmem:[#allocation35_spill] sm:$0xff] %v5298_v63  ;;  %v5304_v46 = vrot.slane %v5280_v24, %v1510_v15  ;;  %v5309_v36 = vld [vmem:[#allocation10 + $0x18] sm:$0x7f] }
 0x20b   : > { %v3969_v20 = vpop.eup %3968  ;;  %8110 = vst [vmem:[#allocation36_spill] sm:$0xff] %v5301_v32 }
 0x20c   : > { %1145 = vmatmul.mubr.bf16.gmra.mrb[28].mxu0 %v931_v17  ;;  %v867_v19 = vmul.f32 %v3969_v20, %v807_v5  ;;  %v893_v10 = vmul.f32 %v5110_v48, %v866_v35  ;;  %v5312_v35 = vrot.slane %v5286_v13, %v1510_v15  ;;  %v2306_v20 = vsub.s32 3, %v5249_v54 }
 0x20d   : > { %1154 = vmatprep.mubr.bf16.mxu0 %v4468_v41 }
 0x20e   : > { %v894_v49 = vmul.f32 %v5110_v48, %v867_v19  ;;  %v920_v44 = vadd.f32 %v5121_v3, %v893_v10 }
 0x210   : > { %v921_v51 = vadd.f32 %v5121_v3, %v894_v49  ;;  %v5321_v49 = vrot.slane %v5280_v24, %v954_v27 }
 0x211   : > { %v3971_v55 = vpop.eup %3970 }
 0x212   : > { %v932_v0 = vpack.c.bf16 %v921_v51, %v920_v44  ;;  %v868_v56 = vmul.f32 %v3971_v55, %v808_v38  ;;  %8111 = vst [vmem:[#allocation37_spill] sm:$0xff] %v5321_v49  ;;  %v5324_v38 = vrot.slane %v5286_v13, %v954_v27  ;;  %v3927_v44 = vld [vmem:[#allocation11 + $0x8] sm:$0xff]   ;;  %v5331_v55 = vrot.slane %v5309_v36, %v954_v27 }
 0x213   : > { %v3973_v57 = vpop.eup %3972  ;;  %3698 = vmatprep.subr.bf16.mxu1 %v3927_v44 }
 0x214   : > { %1155 = vmatmul.mubr.bf16.gmra.mrb[32].mxu0 %v932_v0  ;;  %v869_v58 = vmul.f32 %v3973_v57, %v809_v50  ;;  %v895_v59 = vmul.f32 %v5110_v48, %v868_v56  ;;  %8112 = vst [vmem:[#allocation38_spill] sm:$0xff] %v5324_v38  ;;  %8115 = vst [vmem:[#allocation39_spill] sm:$0xff] %v5331_v55  ;;  %v5335_v50 = vrot.slane %v5280_v24, %v5252_v40 }
 0x215   : > { %1164 = vmatprep.mubr.bf16.mxu0 %v4468_v41  ;;  %v5258_v41 = vrot.slane %v950_v43, %v5252_v40  ;;  %v5339_v0 = vrot.slane %v5286_v13, %v5252_v40  ;;  %v5343_v57 = vrot.slane %v5309_v36, %v5252_v40  ;;  %3699 = vmatpush3.bf16.msra.mxu1 %v3927_v44 }
 0x216   : > { %v896_v60 = vmul.f32 %v5110_v48, %v869_v58  ;;  %v922_v53 = vadd.f32 %v5121_v3, %v895_v59  ;;  %8116 = vst [vmem:[#allocation40_spill] sm:$0xff] %v5335_v50  ;;  %v2509_v58 = vsub.s32 4, %v5249_v54  ;;  %v5347_v59 = vrot.slane %v5280_v24, %v2103_v22 }
 0x217   : > { %v5360_v43 = vrot.slane %v5309_v36, %v2306_v20 }
 0x218   : > { %v923_v61 = vadd.f32 %v5121_v3, %v896_v60  ;;  %v5350_v60 = vrot.slane %v5286_v13, %v2103_v22  ;;  %v5390_v18 = vrot.slane %v5286_v13, %v2509_v58 }
 0x219   : > { %8120 = vst [vmem:[#allocation44_spill] sm:$0xff] %v5360_v43 }
 0x21a   : > { %v933_v9 = vpack.c.bf16 %v923_v61, %v922_v53  ;;  %8117 = vst [vmem:[#allocation41_spill] sm:$0xff] %v5350_v60  ;;  %v5353_v53 = vrot.slane %v5309_v36, %v2103_v22  ;;  %v5356_v61 = vrot.slane %v5277_v16, %v2306_v20  ;;  %8125 = vst [vmem:[#allocation49_spill] sm:$0xff] %v5390_v18 }
 0x21c   : > { %1165 = vmatmul.mubr.bf16.gmra.mrb[36].mxu0 %v933_v9  ;;  %8118 = vst [vmem:[#allocation42_spill] sm:$0xff] %v5353_v53  ;;  %8119 = vst [vmem:[#allocation43_spill] sm:$0xff] %v5356_v61 }
 0x2a7   : > { %v5260_v48 = vpop.f32.mrb[0].mxu0 }
 0x2a8   : > { %v1078_v62 = vpop.f32.mrb[1].mxu0 }
 0x2a9   : > { %v1079_v3 = vadd.f32 %v1078_v62, %v5258_v41  ;;  %v5263_v26 = vpop.f32.mrb[2].mxu0  ;;  %v3928_v62 = vld [vmem:[#allocation11 + $0x10] sm:$0xff]  }
 0x2aa   : > { %v1082_v37 = vpop.f32.mrb[3].mxu0  ;;  %3700 = vmatprep.subr.bf16.mxu1 %v3928_v62 }
 0x2ab   : > { %v3622_v1 = vmul.f32 -1.442695, %v1079_v3  ;;  %v1083_v2 = vadd.f32 %v1082_v37, %v5258_v41  ;;  %v2712_v3 = vsub.s32 5, %v5249_v54  ;;  %v1077_v37 = vadd.f32 %v5260_v48, %v5282_v28  ;;  %3701 = vmatpush3.bf16.msra.mxu1 %v3928_v62 }
 0x2ad   : > { %3974 = vpow2.f32 %v3622_v1  ;;  %v3623_v6 = vmul.f32 -1.442695, %v1083_v2 }
 0x2af   : > { %3976 = vpow2.f32 %v3623_v6  ;;  %v5266_v7 = vpop.f32.mrb[4].mxu0  ;;  %v5366_v6 = vrot.slane %v5280_v24, %v2306_v20 }
 0x2b0   : > { %v1088_v42 = vpop.f32.mrb[5].mxu0  ;;  %v5375_v27 = vadd.f32 %v5266_v7, %v5282_v28  ;;  %v5386_v7 = vrot.slane %v5280_v24, %v2509_v58 }
 0x2b1   : > { %v1089_v52 = vadd.f32 %v1088_v42, %v5258_v41  ;;  %v5270_v8 = vpop.f32.mrb[6].mxu0  ;;  %8121 = vst [vmem:[#allocation45_spill] sm:$0xff] %v5366_v6  ;;  %v5369_v42 = vrot.slane %v5286_v13, %v2306_v20 }
 0x2b2   : > { %v1092_v11 = vpop.f32.mrb[7].mxu0  ;;  %v5383_v15 = vadd.f32 %v5270_v8, %v5282_v28  ;;  %8124 = vst [vmem:[#allocation48_spill] sm:$0xff] %v5386_v7 }
 0x2b3   : > { %v3624_v47 = vmul.f32 -1.442695, %v1089_v52  ;;  %v1093_v14 = vadd.f32 %v1092_v11, %v5258_v41  ;;  %8122 = vst [vmem:[#allocation46_spill] sm:$0xff] %v5369_v42  ;;  %v1081_v11 = vadd.f32 %v5263_v26, %v5282_v28 }
 0x2b5   : > { %3978 = vpow2.f32 %v3624_v47  ;;  %v3625_v23 = vmul.f32 -1.442695, %v1093_v14  ;;  %v5379_v14 = vrot.slane %v5277_v16, %v2509_v58 }
 0x2b7   : > { %v3975_v25 = vpop.eup %3974  ;;  %3980 = vpow2.f32 %v3625_v23  ;;  %v5284_v4 = vpop.f32.mrb[8].mxu0  ;;  %8123 = vst [vmem:[#allocation47_spill] sm:$0xff] %v5379_v14  ;;  %v3929_v23 = vld [vmem:[#allocation11 + $0x18] sm:$0xff]  }
 0x2b8   : > { %v1235_v30 = vadd.f32 1.0, %v3975_v25  ;;  %v1098_v33 = vpop.f32.mrb[9].mxu0  ;;  %v5397_v8 = vadd.f32 %v5284_v4, %v5282_v28  ;;  %3702 = vmatprep.subr.bf16.mxu1 %v3929_v23 }
 0x2b9   : > { %v3977_v12 = vpop.eup %3976  ;;  %v1099_v21 = vadd.f32 %v1098_v33, %v5258_v41  ;;  %v5307_v34 = vpop.f32.mrb[10].mxu0  ;;  %v5393_v33 = vrot.slane %v5277_v16, %v2712_v3  ;;  %3703 = vmatpush3.bf16.msra.mxu1 %v3929_v23 }
 0x2ba   : > { %3982 = vrcp.f32 %v1235_v30  ;;  %v1236_v5 = vadd.f32 1.0, %v3977_v12  ;;  %v1102_v17 = vpop.f32.mrb[11].mxu0  ;;  %v3930_v30 = vld [vmem:[#allocation11 + $0x20] sm:$0xff]  }
 0x2bb   : > { %v3626_v19 = vmul.f32 -1.442695, %v1099_v21  ;;  %v1103_v10 = vadd.f32 %v1102_v17, %v5258_v41  ;;  %8126 = vst [vmem:[#allocation50_spill] sm:$0xff] %v5393_v33  ;;  %v5401_v21 = vadd.f32 %v5307_v34, %v5282_v28  ;;  %v5416_v34 = vrot.slane %v5280_v24, %v2712_v3  ;;  %3704 = vmatprep.subr.bf16.mxu1 %v3930_v30 }
 0x2bc   : > { %3984 = vrcp.f32 %v1236_v5  ;;  %v5404_v5 = vsub.s32 6, %v5249_v54  ;;  %v5419_v54 = vrot.slane %v5286_v13, %v2712_v3 }
 0x2bd   : > { %3986 = vpow2.f32 %v3626_v19  ;;  %v3627_v56 = vmul.f32 -1.442695, %v1103_v10  ;;  %v5407_v19 = vrot.slane %v5309_v36, %v2509_v58  ;;  %8129 = vst [vmem:[#allocation53_spill] sm:$0xff] %v5416_v34  ;;  %3705 = vmatpush3.bf16.msra.mxu1 %v3930_v30 }
 0x2be   : > { %8127 = vst [vmem:[#allocation51_spill] sm:$0xff] %v5404_v5  ;;  %8130 = vst [vmem:[#allocation54_spill] sm:$0xff] %v5419_v54 }
 0x2bf   : > { %v3979_v9 = vpop.eup %3978  ;;  %3988 = vpow2.f32 %v3627_v56  ;;  %v1106_v31 = vpop.f32.mrb[12].mxu0  ;;  %8128 = vst [vmem:[#allocation52_spill] sm:$0xff] %v5407_v19 }
 0x2c0   : > { %v1237_v1 = vadd.f32 1.0, %v3979_v9  ;;  %v1108_v2 = vpop.f32.mrb[13].mxu0  ;;  %v5410_v44 = vadd.f32 %v1106_v31, %v5282_v28  ;;  %v3931_v31 = vld [vmem:[#allocation11 + $0x28] sm:$0xff]  }
 0x2c1   : > { %v3981_v52 = vpop.eup %3980  ;;  %v1109_v48 = vadd.f32 %v1108_v2, %v5258_v41  ;;  %v1110_v47 = vpop.f32.mrb[14].mxu0  ;;  %3706 = vmatprep.subr.bf16.mxu1 %v3931_v31 }
 0x2c2   : > { %3990 = vrcp.f32 %v1237_v1  ;;  %v1238_v26 = vadd.f32 1.0, %v3981_v52  ;;  %v1112_v22 = vpop.f32.mrb[15].mxu0  ;;  %v5413_v4 = vadd.f32 %v1110_v47, %v5282_v28  ;;  %v5431_v52 = vrot.slane %v5277_v16, %v5404_v5  ;;  %3707 = vmatpush3.bf16.msra.mxu1 %v3931_v31 }
 0x2c3   : > { %v3628_v25 = vmul.f32 -1.442695, %v1109_v48  ;;  %v1113_v29 = vadd.f32 %v1112_v22, %v5258_v41  ;;  %v5435_v48 = vrot.slane %v5280_v24, %v5404_v5 }
 0x2c4   : > { %v3983_v12 = vpop.eup %3982  ;;  %3992 = vrcp.f32 %v1238_v26  ;;  %8132 = vst [vmem:[#allocation56_spill] sm:$0xff] %v5431_v52 }
 0x2c5   : > { %v1295_v17 = vmul.f32 %v3983_v12, %v1077_v37  ;;  %3994 = vpow2.f32 %v3628_v25  ;;  %v3629_v20 = vmul.f32 -1.442695, %v1113_v29  ;;  %v5426_v37 = vrot.slane %v5309_v36, %v2712_v3  ;;  %8133 = vst [vmem:[#allocation57_spill] sm:$0xff] %v5435_v48 }
 0x2c6   : > { %v3985_v10 = vpop.eup %3984 }
 0x2c7   : > { %v3987_v56 = vpop.eup %3986  ;;  %v5423_v9 = vsel %vm5326_vm0, %v1295_v17, 0.0  ;;  %v1296_v58 = vmul.f32 %v3985_v10, %v1081_v11  ;;  %3996 = vpow2.f32 %v3629_v20  ;;  %v1116_v62 = vpop.f32.mrb[16].mxu0  ;;  %8131 = vst [vmem:[#allocation55_spill] sm:$0xff] %v5426_v37  ;;  %v5439_v11 = vrot.slane %v5286_v13, %v5404_v5  ;;  %v3932_v20 = vld [vmem:[#allocation11 + $0x30] sm:$0xff]  }
 0x2c8   : > { %v1637_v1 = vrot.slane %v5423_v9, 1  ;;  %v1118_v2 = vpop.f32.mrb[17].mxu0  ;;  %v1840_v26 = vrot.slane %v5423_v9, 2  ;;  %v2043_v36 = vrot.slane %v5423_v9, 3  ;;  %v1239_v22 = vadd.f32 1.0, %v3987_v56  ;;  %3708 = vmatprep.subr.bf16.mxu1 %v3932_v20 }
 0x2c9   : > { %8134 = vst [vmem:[#allocation58_spill] sm:$0xff] %v5439_v11  ;;  %v3989_v47 = vpop.eup %3988  ;;  %v5445_v3 = vsel %vm5326_vm0, %v1296_v58, 0.0  ;;  %v1120_v16 = vpop.f32.mrb[18].mxu0  ;;  %v2246_v23 = vrot.slane %v5423_v9, 4  ;;  %v1119_v51 = vadd.f32 %v1118_v2, %v5258_v41  ;;  %3709 = vmatpush3.bf16.msra.mxu1 %v3932_v20 }
 0x2ca   : > { %v1638_v24 = vrot.slane %v5445_v3, 1  ;;  %v7779_v25 = vrot.slane %v5445_v3, 2  ;;  %v7780_v13 = vrot.slane %v5445_v3, 3  ;;  %v1122_v29 = vpop.f32.mrb[19].mxu0  ;;  %v7782_v12 = vrot.slane %v5445_v3, 4 }
 0x2cb   : > { %3998 = vrcp.f32 %v1239_v22  ;;  %v1240_v17 = vadd.f32 1.0, %v3989_v47  ;;  %v1512_v47 = vmul.f32 %v5291_v45, %v5445_v3  ;;  %v5467_v22 = vadd.f32 %v1116_v62, %v5282_v28 }
 0x2cc   : > { %v3991_v10 = vpop.eup %3990  ;;  %v1639_v58 = vsel %vm1636_vm1, %v1637_v1, %v1638_v24  ;;  %v1842_v40 = vsel %vm1839_vm2, %v1840_v26, %v7779_v25  ;;  %v2045_v30 = vsel %vm2042_vm3, %v2043_v36, %v7780_v13  ;;  %v2248_v2 = vsel %vm2245_vm4, %v2246_v23, %v7782_v12 }
 0x2cd   : > { %v5470_v1 = vadd.f32 %v1120_v16, %v5282_v28  ;;  %v5473_v26 = vmul.f32 %v3991_v10, %v5375_v27  ;;  %4000 = vrcp.f32 %v1240_v17  ;;  %v3630_v25 = vmul.f32 -1.442695, %v1119_v51 }
 0x2ce   : > { %v3993_v56 = vpop.eup %3992  ;;  %v1123_v36 = vadd.f32 %v1122_v29, %v5258_v41  ;;  %v1699_v5 = vmul.f32 %v5294_v39, %v1639_v58  ;;  %v5478_v23 = vmul.f32 %v5298_v63, %v1842_v40  ;;  %v5481_v62 = vmul.f32 %v5301_v32, %v2045_v30 }
 0x2cf   : > { %v3995_v13 = vpop.eup %3994  ;;  %v5484_v16 = vmul.f32 %v3993_v56, %v5383_v15  ;;  %v1126_v12 = vpop.f32.mrb[20].mxu0  ;;  %v1513_v27 = vmul.f32 %v5291_v45, %v5473_v26  ;;  %v1548_v31 = vmul.f32 %v5304_v46, %v5473_v26  ;;  %v1640_v29 = vrot.slane %v5473_v26, 1 }
 0x2d0   : > { %v1128_v17 = vpop.f32.mrb[21].mxu0  ;;  %v5492_v40 = vmul.f32 %v5356_v61, %v2248_v2  ;;  %v1241_v56 = vadd.f32 1.0, %v3995_v13  ;;  %4002 = vpow2.f32 %v3630_v25  ;;  %v3631_v52 = vmul.f32 -1.442695, %v1123_v36 }
 0x2d1   : > { %v3997_v51 = vpop.eup %3996  ;;  %v1549_v15 = vmul.f32 %v5304_v46, %v5484_v16  ;;  %v1130_v58 = vpop.f32.mrb[22].mxu0  ;;  %v1564_v30 = vadd.f32 %v1548_v31, %v1512_v47  ;;  %v1641_v11 = vsel %vm1636_vm1, %v1638_v24, %v1640_v29  ;;  %v1129_v2 = vadd.f32 %v1128_v17, %v5258_v41 }
 0x2d2   : > { %v1242_v48 = vadd.f32 1.0, %v3997_v51  ;;  %v1132_v37 = vpop.f32.mrb[23].mxu0  ;;  %4004 = vrcp.f32 %v1241_v56  ;;  %v1514_v34 = vmul.f32 %v5291_v45, %v5484_v16  ;;  %v1584_v20 = vmul.f32 %v5312_v35, %v5484_v16 }
 0x2d3   : > { %v1133_v25 = vadd.f32 %v1132_v37, %v5258_v41  ;;  %v1565_v13 = vadd.f32 %v1549_v15, %v1513_v27  ;;  %v3632_v24 = vmul.f32 -1.442695, %v1129_v2  ;;  %v1642_v36 = vrot.slane %v5484_v16, 1 }
 0x2d4   : > { %4006 = vrcp.f32 %v1242_v48  ;;  %v1700_v31 = vmul.f32 %v5294_v39, %v1641_v11  ;;  %v8135_v56 = vrot.slane %v5473_v26, 2  ;;  %v8136_v48 = vrot.slane %v5445_v3, 2 }
 0x2d5   : > { %v3999_v47 = vpop.eup %3998  ;;  %4008 = vpow2.f32 %v3631_v52  ;;  %v3633_v51 = vmul.f32 -1.442695, %v1133_v25  ;;  %v5519_v52 = vadd.f32 %v1126_v12, %v5282_v28  ;;  %v1600_v15 = vadd.f32 %v1584_v20, %v1564_v30 }
 0x2d6   : > { %v5509_v17 = vmul.f32 %v3999_v47, %v5397_v8  ;;  %v5516_v37 = vsel %vm1839_vm2, %v8136_v48, %v8135_v56  ;;  %4010 = vpow2.f32 %v3632_v24  ;;  %v5522_v2 = vsel %vm1636_vm1, %v1640_v29, %v1642_v36 }
 0x2d7   : > { %v1136_v27 = vpop.f32.mrb[24].mxu0  ;;  %v4001_v10 = vpop.eup %4000  ;;  %v5527_v25 = vadd.f32 %v1130_v58, %v5282_v28  ;;  %4012 = vpow2.f32 %v3633_v51  ;;  %v1735_v56 = vmul.f32 %v5321_v49, %v1641_v11  ;;  %v1715_v54 = vadd.f32 %v1699_v5, %v1600_v15 }
 0x2d8   : > { %v1550_v8 = vmul.f32 %v5304_v46, %v5509_v17  ;;  %v1138_v47 = vpop.f32.mrb[25].mxu0  ;;  %v5531_v12 = vmul.f32 %v4001_v10, %v5401_v21  ;;  %v1585_v29 = vmul.f32 %v5312_v35, %v5509_v17  ;;  %v1644_v20 = vrot.slane %v5509_v17, 1 }
 0x2d9   : > { %v1139_v24 = vadd.f32 %v1138_v47, %v5258_v41  ;;  %v1140_v30 = vpop.f32.mrb[26].mxu0  ;;  %v1515_v48 = vmul.f32 %v5291_v45, %v5509_v17  ;;  %v5545_v10 = vadd.f32 %v1136_v27, %v5282_v28  ;;  %v5559_v27 = vmul.f32 %v5294_v39, %v5522_v2 }
 0x2da   : > { %v5539_v58 = vadd.f32 %v1550_v8, %v1514_v34  ;;  %v1142_v51 = vpop.f32.mrb[27].mxu0  ;;  %v4003_v33 = vpop.eup %4002  ;;  %v1551_v21 = vmul.f32 %v5304_v46, %v5531_v12  ;;  %v5548_v19 = vadd.f32 %v1140_v30, %v5282_v28  ;;  %v1601_v34 = vadd.f32 %v1585_v29, %v1565_v13 }
 0x2db   : > { %v3634_v47 = vmul.f32 -1.442695, %v1139_v24  ;;  %v1243_v18 = vadd.f32 1.0, %v4003_v33  ;;  %v1143_v7 = vadd.f32 %v1142_v51, %v5258_v41  ;;  %v5552_v8 = vsel %vm1636_vm1, %v1642_v36, %v1644_v20  ;;  %8139 = vst [vmem:[#allocation61_spill] sm:$0xff] %v5559_v27 }
 0x2dc   : > { %8137 = vst [vmem:[#allocation59_spill] sm:$0xff] %v5539_v58  ;;  %8138 = vst [vmem:[#allocation60_spill] sm:$0xff] %v5552_v8  ;;  %v4005_v5 = vpop.eup %4004  ;;  %v1516_v15 = vmul.f32 %v5291_v45, %v5531_v12  ;;  %v1716_v30 = vadd.f32 %v1700_v31, %v1601_v34  ;;  %v5564_v29 = vadd.f32 %v1551_v21, %v1515_v48  ;;  %v1847_v42 = vrot.slane %v5509_v17, 2 }
 0x2dd   : > { %4014 = vpow2.f32 %v3634_v47  ;;  %v5562_v33 = vmul.f32 %v4005_v5, %v5410_v44  ;;  %v3635_v13 = vmul.f32 -1.442695, %v1143_v7  ;;  %v5568_v51 = vmul.f32 %v5312_v35, %v5531_v12 }
 0x2de   : > { %v4007_v24 = vpop.eup %4006  ;;  %4016 = vrcp.f32 %v1243_v18  ;;  %8141 = vst [vmem:[#allocation63_spill] sm:$0xff] %v5564_v29  ;;  %v1751_v58 = vadd.f32 %v1735_v56, %v1715_v54  ;;  %v8144_v44 = vrot.slane %v5531_v12, 1  ;;  %v5584_v48 = vmul.f32 %v5294_v39, %v5552_v8 }
 0x2df   : > { %8140 = vst [vmem:[#allocation62_spill] sm:$0xff] %v5562_v33  ;;  %v4009_v36 = vpop.eup %4008  ;;  %8142 = vst [vmem:[#allocation64_spill] sm:$0xff] %v5568_v51  ;;  %v5571_v47 = vmul.f32 %v4007_v24, %v5413_v4  ;;  %v1146_v11 = vpop.f32.mrb[28].mxu0  ;;  %v1517_v27 = vmul.f32 %v5291_v45, %v5562_v33  ;;  %v1552_v18 = vmul.f32 %v5304_v46, %v5562_v33  ;;  %4018 = vpow2.f32 %v3635_v13 }
 0x2e0   : > { %v1148_v7 = vpop.f32.mrb[29].mxu0  ;;  %v5580_v31 = vsel %vm1636_vm1, %v1644_v20, %v8144_v44  ;;  %8146 = vst [vmem:[#allocation67_spill] sm:$0xff] %v5584_v48  ;;  %v4011_v4 = vpop.eup %4010  ;;  %v1736_v20 = vmul.f32 %v5321_v49, %v5522_v2  ;;  %v1244_v44 = vadd.f32 1.0, %v4009_v36  ;;  %v5600_v51 = vmul.f32 %v5312_v35, %v5562_v33 }
 0x2e1   : > { %8143 = vst [vmem:[#allocation65_spill] sm:$0xff] %v5571_v47  ;;  %8145 = vst [vmem:[#allocation66_spill] sm:$0xff] %v5580_v31  ;;  %v1518_v54 = vmul.f32 %v5291_v45, %v5571_v47  ;;  %v1553_v56 = vmul.f32 %v5304_v46, %v5571_v47  ;;  %v5592_v21 = vmul.f32 %v5312_v35, %v5571_v47  ;;  %v1150_v34 = vpop.f32.mrb[30].mxu0  ;;  %v4013_v5 = vpop.eup %4012  ;;  %v1245_v48 = vadd.f32 1.0, %v4011_v4 }
 0x2e2   : > { %v5596_v24 = vadd.f32 %v1552_v18, %v1516_v15  ;;  %v1152_v29 = vpop.f32.mrb[31].mxu0  ;;  %8149 = vst [vmem:[#allocation70_spill] sm:$0xff] %v5600_v51  ;;  %v1246_v43 = vadd.f32 1.0, %v4013_v5  ;;  %4020 = vrcp.f32 %v1244_v44  ;;  %v1752_v13 = vadd.f32 %v1736_v20, %v1716_v30 }
 0x2e3   : > { %8147 = vst [vmem:[#allocation68_spill] sm:$0xff] %v5592_v21  ;;  %v5602_v14 = vadd.f32 %v1553_v56, %v1517_v27  ;;  %v1149_v21 = vadd.f32 %v1148_v7, %v5258_v41  ;;  %v1153_v15 = vadd.f32 %v1152_v29, %v5258_v41  ;;  %4022 = vrcp.f32 %v1245_v48 }
 0x2e4   : > { %8148 = vst [vmem:[#allocation69_spill] sm:$0xff] %v5596_v24  ;;  %v1771_v18 = vmul.f32 %v5324_v38, %v5522_v2  ;;  %4024 = vrcp.f32 %v1246_v43  ;;  %v1772_v27 = vmul.f32 %v5324_v38, %v5552_v8  ;;  %v1807_v7 = vmul.f32 %v5331_v55, %v5552_v8 }
 0x2e5   : > { %8150 = vst [vmem:[#allocation71_spill] sm:$0xff] %v5602_v14  ;;  %v3636_v36 = vmul.f32 -1.442695, %v1149_v21  ;;  %v3637_v4 = vmul.f32 -1.442695, %v1153_v15  ;;  %v5615_v5 = vadd.f32 %v1146_v11, %v5282_v28  ;;  %v8151_v30 = vrot.slane %v5484_v16, 2 }
 0x2e6   : > { %v1787_v48 = vadd.f32 %v1771_v18, %v1751_v58  ;;  %v8152_v21 = vrot.slane %v5473_v26, 2  ;;  %v1788_v15 = vadd.f32 %v1772_v27, %v1752_v13  ;;  %v1808_v6 = vmul.f32 %v5331_v55, %v5580_v31 }
 0x2e7   : > { %v4015_v56 = vpop.eup %4014  ;;  %4026 = vpow2.f32 %v3636_v36  ;;  %v1156_v29 = vpop.f32.mrb[32].mxu0  ;;  %v5636_v13 = vmul.f32 %v5294_v39, %v5580_v31 }
 0x2e8   : > { %v5622_v43 = vsel %vm1839_vm2, %v8152_v21, %v8151_v30  ;;  %v4017_v2 = vpop.eup %4016  ;;  %v1247_v20 = vadd.f32 1.0, %v4015_v56  ;;  %4028 = vpow2.f32 %v3637_v4  ;;  %v1158_v44 = vpop.f32.mrb[33].mxu0  ;;  %v1823_v18 = vadd.f32 %v1807_v7, %v1787_v48 }
 0x2e9   : > { %v5627_v11 = vmul.f32 %v4017_v2, %v5467_v22  ;;  %v1159_v58 = vadd.f32 %v1158_v44, %v5258_v41  ;;  %v1160_v36 = vpop.f32.mrb[34].mxu0  ;;  %v5632_v30 = vadd.f32 %v1150_v34, %v5282_v28  ;;  %8154 = vst [vmem:[#allocation73_spill] sm:$0xff] %v5636_v13  ;;  %v1824_v48 = vadd.f32 %v1808_v6, %v1788_v15  ;;  %v4019_v34 = vpop.eup %4018 }
 0x2ea   : > { %4030 = vrcp.f32 %v1247_v20  ;;  %v1162_v56 = vpop.f32.mrb[35].mxu0  ;;  %v5648_v21 = vadd.f32 %v1156_v29, %v5282_v28  ;;  %v8156_v44 = vrot.slane %v5484_v16, 2  ;;  %v1248_v14 = vadd.f32 1.0, %v4019_v34 }
 0x2eb   : > { %8153 = vst [vmem:[#allocation72_spill] sm:$0xff] %v5627_v11  ;;  %v1519_v22 = vmul.f32 %v5291_v45, %v5627_v11  ;;  %v1554_v27 = vmul.f32 %v5304_v46, %v5627_v11  ;;  %v5645_v7 = vmul.f32 %v5312_v35, %v5627_v11  ;;  %v3638_v2 = vmul.f32 -1.442695, %v1159_v58 }
 0x2ec   : > { %v1163_v20 = vadd.f32 %v1162_v56, %v5258_v41  ;;  %v5654_v4 = vsel %vm1839_vm2, %v8156_v44, %v1847_v42  ;;  %v5659_v24 = vadd.f32 %v1160_v36, %v5282_v28  ;;  %v1903_v6 = vmul.f32 %v5298_v63, %v5516_v37  ;;  %v4021_v15 = vpop.eup %4020  ;;  %v3933_v44 = vld [vmem:[#allocation11 + $0x38] sm:$0xff]  }
 0x2ed   : > { %8155 = vst [vmem:[#allocation74_spill] sm:$0xff] %v5645_v7  ;;  %8157 = vst [vmem:[#allocation75_spill] sm:$0xff] %v5654_v4  ;;  %v5656_v13 = vadd.f32 %v1554_v27, %v1518_v54  ;;  %4032 = vpow2.f32 %v3638_v2  ;;  %v8159_v56 = vrot.slane %v5531_v12, 2  ;;  %v4023_v54 = vpop.eup %4022  ;;  %v5670_v27 = vmul.f32 %v4021_v15, %v5470_v1  ;;  %3710 = vmatprep.subr.bf16.mxu1 %v3933_v44 }
 0x2ee   : > { %v3639_v58 = vmul.f32 -1.442695, %v1163_v20  ;;  %4034 = vrcp.f32 %v1248_v14  ;;  %v1918_v34 = vadd.f32 %v5478_v23, %v1823_v18  ;;  %v4025_v31 = vpop.eup %4024  ;;  %v5674_v29 = vmul.f32 %v4023_v54, %v5519_v52  ;;  %3711 = vmatpush3.bf16.msra.mxu1 %v3933_v44 }
 0x2ef   : > { %8158 = vst [vmem:[#allocation76_spill] sm:$0xff] %v5656_v13  ;;  %v5667_v7 = vsel %vm1839_vm2, %v1847_v42, %v8159_v56  ;;  %8161 = vst [vmem:[#allocation78_spill] sm:$0xff] %v5670_v27  ;;  %v1166_v36 = vpop.f32.mrb[36].mxu0  ;;  %v1919_v13 = vadd.f32 %v1903_v6, %v1824_v48  ;;  %v5678_v42 = vmul.f32 %v5298_v63, %v5622_v43 }
 0x2f0   : > { %8160 = vst [vmem:[#allocation77_spill] sm:$0xff] %v5667_v7  ;;  %8162 = vst [vmem:[#allocation79_spill] sm:$0xff] %v5674_v29  ;;  %4036 = vpow2.f32 %v3639_v58  ;;  %v1168_v2 = vpop.f32.mrb[37].mxu0  ;;  %v5682_v20 = vmul.f32 %v5298_v63, %v5654_v4  ;;  %v1555_v1 = vmul.f32 %v5304_v46, %v5670_v27  ;;  %v5687_v23 = vadd.f32 %v1166_v36, %v5282_v28 }
 0x2f1   : > { %8163 = vst [vmem:[#allocation80_spill] sm:$0xff] %v5678_v42  ;;  %v4027_v14 = vpop.eup %4026  ;;  %v1170_v52 = vpop.f32.mrb[38].mxu0  ;;  %v5691_v18 = vmul.f32 %v5298_v63, %v5667_v7  ;;  %v1938_v48 = vmul.f32 %v5335_v50, %v5516_v37  ;;  %v1520_v15 = vmul.f32 %v5291_v45, %v5670_v27  ;;  %v1521_v58 = vmul.f32 %v5291_v45, %v5674_v29 }
 0x2f2   : > { %8164 = vst [vmem:[#allocation81_spill] sm:$0xff] %v5682_v20  ;;  %v4029_v6 = vpop.eup %4028  ;;  %v1556_v56 = vmul.f32 %v5304_v46, %v5674_v29  ;;  %v5703_v54 = vmul.f32 %v5312_v35, %v5674_v29  ;;  %v1172_v36 = vpop.f32.mrb[39].mxu0  ;;  %v5708_v37 = vmul.f32 %v4025_v31, %v5527_v25  ;;  %v1249_v44 = vadd.f32 1.0, %v4027_v14 }
 0x2f3   : > { %8165 = vst [vmem:[#allocation82_spill] sm:$0xff] %v5691_v18  ;;  %v5705_v18 = vadd.f32 %v1555_v1, %v1519_v22  ;;  %v1250_v11 = vadd.f32 1.0, %v4029_v6  ;;  %v5712_v42 = vmul.f32 %v5312_v35, %v5670_v27  ;;  %v1169_v47 = vadd.f32 %v1168_v2, %v5258_v41 }
 0x2f4   : > { %8166 = vst [vmem:[#allocation83_spill] sm:$0xff] %v5703_v54  ;;  %8168 = vst [vmem:[#allocation85_spill] sm:$0xff] %v5708_v37  ;;  %v4031_v20 = vpop.eup %4030  ;;  %v5714_v8 = vadd.f32 %v1556_v56, %v1520_v15  ;;  %v1173_v33 = vadd.f32 %v1172_v36, %v5258_v41  ;;  %v1557_v25 = vmul.f32 %v5304_v46, %v5708_v37  ;;  %4038 = vrcp.f32 %v1249_v44 }
 0x2f5   : > { %8167 = vst [vmem:[#allocation84_spill] sm:$0xff] %v5705_v18  ;;  %8169 = vst [vmem:[#allocation86_spill] sm:$0xff] %v5712_v42  ;;  %v5723_v31 = vadd.f32 %v1170_v52, %v5282_v28  ;;  %v1522_v14 = vmul.f32 %v5291_v45, %v5708_v37  ;;  %v5728_v1 = vmul.f32 %v4031_v20, %v5545_v10  ;;  %v3640_v2 = vmul.f32 -1.442695, %v1169_v47 }
 0x2f6   : > { %8170 = vst [vmem:[#allocation87_spill] sm:$0xff] %v5714_v8  ;;  %v5730_v6 = vadd.f32 %v1557_v25, %v1521_v58  ;;  %4040 = vrcp.f32 %v1250_v11  ;;  %v1939_v41 = vmul.f32 %v5335_v50, %v5622_v43  ;;  %v1954_v15 = vadd.f32 %v1938_v48, %v1918_v34 }
 0x2f7   : > { %8171 = vst [vmem:[#allocation88_spill] sm:$0xff] %v5728_v1  ;;  %v4033_v56 = vpop.eup %4032  ;;  %v1523_v28 = vmul.f32 %v5291_v45, %v5728_v1  ;;  %v1558_v52 = vmul.f32 %v5304_v46, %v5728_v1  ;;  %v5740_v10 = vmul.f32 %v5312_v35, %v5728_v1  ;;  %v3641_v20 = vmul.f32 -1.442695, %v1173_v33 }
 0x2f8   : > { %8172 = vst [vmem:[#allocation89_spill] sm:$0xff] %v5730_v6  ;;  %v4035_v47 = vpop.eup %4034  ;;  %v7806_v58 = vrot.slane %v5728_v1, 1  ;;  %v1251_v11 = vadd.f32 1.0, %v4033_v56  ;;  %4042 = vpow2.f32 %v3640_v2  ;;  %v1955_v36 = vadd.f32 %v1939_v41, %v1919_v13 }
 0x2f9   : > { %8173 = vst [vmem:[#allocation90_spill] sm:$0xff] %v5740_v10  ;;  %v5743_v34 = vadd.f32 %v1558_v52, %v1522_v14  ;;  %v5746_v48 = vmul.f32 %v4035_v47, %v5548_v19  ;;  %v1974_v22 = vmul.f32 %v5339_v0, %v5622_v43  ;;  %v1975_v33 = vmul.f32 %v5339_v0, %v5654_v4 }
 0x2fa   : > { %v4037_v44 = vpop.eup %4036  ;;  %4044 = vrcp.f32 %v1251_v11  ;;  %v2010_v2 = vmul.f32 %v5343_v57, %v5654_v4  ;;  %v5767_v47 = vmul.f32 %v5312_v35, %v5708_v37  ;;  %v2046_v25 = vrot.slane %v5473_v26, 3 }
 0x2fb   : > { %8174 = vst [vmem:[#allocation91_spill] sm:$0xff] %v5743_v34  ;;  %8175 = vst [vmem:[#allocation92_spill] sm:$0xff] %v5746_v48  ;;  %v1252_v54 = vadd.f32 1.0, %v4037_v44  ;;  %v1559_v13 = vmul.f32 %v5304_v46, %v5746_v48  ;;  %v5759_v19 = vmul.f32 %v5312_v35, %v5746_v48  ;;  %v1524_v14 = vmul.f32 %v5291_v45, %v5746_v48 }
 0x2fc   : > { %v1662_v43 = vrot.slane %v5746_v48, 1  ;;  %v1865_v41 = vrot.slane %v5746_v48, 2  ;;  %v1990_v56 = vadd.f32 %v1974_v22, %v1954_v15  ;;  %v1991_v52 = vadd.f32 %v1975_v33, %v1955_v36  ;;  %8177 = vst [vmem:[#allocation94_spill] sm:$0xff] %v5767_v47 }
 0x2fd   : > { %8176 = vst [vmem:[#allocation93_spill] sm:$0xff] %v5759_v19  ;;  %4046 = vrcp.f32 %v1252_v54  ;;  %v5769_v11 = vadd.f32 %v1559_v13, %v1523_v28  ;;  %v8180_v54 = vrot.slane %v5728_v1, 2  ;;  %v2048_v36 = vrot.slane %v5484_v16, 3 }
 0x2fe   : > { %v5774_v44 = vsel %vm1636_vm1, %v7806_v58, %v1662_v43  ;;  %v2026_v15 = vadd.f32 %v2010_v2, %v1990_v56  ;;  %v4039_v33 = vpop.eup %4038  ;;  %4048 = vpow2.f32 %v3641_v20  ;;  %v2011_v28 = vmul.f32 %v5343_v57, %v5667_v7 }
 0x2ff   : > { %8178 = vst [vmem:[#allocation95_spill] sm:$0xff] %v5769_v11  ;;  %8179 = vst [vmem:[#allocation96_spill] sm:$0xff] %v5774_v44  ;;  %v5781_v22 = vsel %vm1839_vm2, %v8180_v54, %v1865_v41  ;;  %v8182_v13 = vrot.slane %v5445_v3, 3  ;;  %v7811_v19 = vrot.slane %v5509_v17, 3  ;;  %v5793_v34 = vmul.f32 %v4039_v33, %v5615_v5 }
 0x300   : > { %8181 = vst [vmem:[#allocation97_spill] sm:$0xff] %v5781_v22  ;;  %v4041_v11 = vpop.eup %4040  ;;  %v1711_v2 = vmul.f32 %v5294_v39, %v5774_v44  ;;  %v5799_v20 = vmul.f32 %v5298_v63, %v5781_v22  ;;  %v5802_v56 = vsel %vm2042_vm3, %v2046_v25, %v2048_v36  ;;  %v5815_v33 = vadd.f32 %v5481_v62, %v2026_v15 }
 0x301   : > { %v5789_v58 = vsel %vm2042_vm3, %v8182_v13, %v2046_v25  ;;  %8183 = vst [vmem:[#allocation98_spill] sm:$0xff] %v5793_v34  ;;  %v5805_v54 = vmul.f32 %v4041_v11, %v5632_v30  ;;  %v5807_v13 = vadd.f32 %v2011_v28, %v1991_v52  ;;  %v5812_v5 = vsel %vm2042_vm3, %v2048_v36, %v7811_v19 }
 0x302   : > { %v4043_v48 = vpop.eup %4042  ;;  %v5819_v22 = vmul.f32 %v5312_v35, %v5793_v34  ;;  %v1525_v25 = vmul.f32 %v5291_v45, %v5793_v34  ;;  %v1560_v30 = vmul.f32 %v5304_v46, %v5793_v34  ;;  %v1664_v52 = vrot.slane %v5793_v34, 1 }
 0x303   : > { %8184 = vst [vmem:[#allocation99_spill] sm:$0xff] %v5805_v54  ;;  %v1253_v11 = vadd.f32 1.0, %v4043_v48  ;;  %v1526_v36 = vmul.f32 %v5291_v45, %v5805_v54  ;;  %v1561_v62 = vmul.f32 %v5304_v46, %v5805_v54  ;;  %v1596_v15 = vmul.f32 %v5312_v35, %v5805_v54 }
 0x304   : > { %8185 = vst [vmem:[#allocation100_spill] sm:$0xff] %v5819_v22  ;;  %v4045_v28 = vpop.eup %4044  ;;  %v1576_v19 = vadd.f32 %v1560_v30, %v1524_v14  ;;  %v5833_v22 = vsel %vm1636_vm1, %v1662_v43, %v1664_v52  ;;  %v1666_v44 = vrot.slane %v5805_v54, 1  ;;  %v1867_v1 = vrot.slane %v5793_v34, 2 }
 0x305   : > { %8186 = vst [vmem:[#allocation101_spill] sm:$0xff] %v5833_v22  ;;  %v5838_v48 = vmul.f32 %v4045_v28, %v5648_v21  ;;  %4050 = vrcp.f32 %v1253_v11  ;;  %v1577_v10 = vadd.f32 %v1561_v62, %v1525_v25  ;;  %v1712_v14 = vmul.f32 %v5294_v39, %v5833_v22 }
 0x306   : > { %v1612_v8 = vadd.f32 %v1596_v15, %v1576_v19  ;;  %v1667_v37 = vsel %vm1636_vm1, %v1664_v52, %v1666_v44  ;;  %v5845_v43 = vsel %vm1839_vm2, %v1865_v41, %v1867_v1  ;;  %v8190_v29 = vstv %s5318_s18  ;;  %s8528_s18 = sld [smem:[#allocation139_spill]] }
 0x307   : > { %8187 = vst [vmem:[#allocation102_spill] sm:$0xff] %v5838_v48  ;;  %v4047_v47 = vpop.eup %4046  ;;  %8188 = vst [vmem:[#allocation103_spill] sm:$0xff] %v5845_v43  ;;  %vm5852_vm5 = vcmp.eq.s32.totalorder %v8190_v29, 1  ;;  %v1527_v25 = vmul.f32 %v5291_v45, %v5838_v48  ;;  %v1562_v19 = vmul.f32 %v5304_v46, %v5838_v48  ;;  %v1597_v52 = vmul.f32 %v5312_v35, %v5838_v48 }
 0x308   : > { %v5848_v30 = vmul.f32 %v4047_v47, %v5659_v24  ;;  %v1668_v41 = vrot.slane %v5838_v48, 1  ;;  %v1713_v11 = vmul.f32 %v5294_v39, %v1667_v37  ;;  %v1727_v24 = vadd.f32 %v1711_v2, %v1612_v8  ;;  %v5866_v47 = vpop.eup %4048 }
 0x309   : > { %v1747_v29 = vmul.f32 %v5321_v49, %v5833_v22  ;;  %v1578_v45 = vadd.f32 %v1562_v19, %v1526_v36  ;;  %v1613_v28 = vadd.f32 %v1597_v52, %v1577_v10  ;;  %v1783_v8 = vmul.f32 %v5324_v38, %v1667_v37 }
 0x30a   : > { %8189 = vst [vmem:[#allocation104_spill] sm:$0xff] %v5848_v30  ;;  %v1563_v62 = vmul.f32 %v5304_v46, %v5848_v30  ;;  %v1598_v15 = vmul.f32 %v5312_v35, %v5848_v30  ;;  %v1669_v6 = vsel %vm1636_vm1, %v1666_v44, %v1668_v41  ;;  %v1670_v18 = vrot.slane %v5848_v30, 1 }
 0x30b   : > { %v1763_v42 = vadd.f32 %v1747_v29, %v1727_v24  ;;  %v1728_v22 = vadd.f32 %v1712_v14, %v1613_v28  ;;  %v1748_v7 = vmul.f32 %v5321_v49, %v1667_v37  ;;  %v5879_v36 = vmul.f32 %v5301_v32, %v5789_v58 }
 0x30c   : > { %v1579_v2 = vadd.f32 %v1563_v62, %v1527_v25  ;;  %v1614_v27 = vadd.f32 %v1598_v15, %v1578_v45  ;;  %v1671_v4 = vsel %vm1636_vm1, %v1668_v41, %v1670_v18  ;;  %v5883_v10 = vmul.f32 %v5301_v32, %v5802_v56  ;;  %s8529_s4 = smov %s8528_s18  ;;  %s7654_s10 = scalar_lea.hbm %s8528_s18, %s3671_s20 }
 0x30d   : > { %v1799_v46 = vadd.f32 %v1783_v8, %v1763_v42  ;;  %v1749_v19 = vmul.f32 %v5321_v49, %v1669_v6  ;;  %v1764_v52 = vadd.f32 %v1748_v7, %v1728_v22  ;;  %v1784_v25 = vmul.f32 %v5324_v38, %v1669_v6 }
 0x30e   : > { %8193 = vst [vmem:[#allocation105_spill] sm:$0xff] %v5883_v10  ;;  %v1729_v44 = vadd.f32 %v1713_v11, %v1614_v27  ;;  %v1785_v14 = vmul.f32 %v5324_v38, %v1671_v4  ;;  %v1819_v24 = vmul.f32 %v5331_v55, %v1669_v6  ;;  %v1820_v42 = vmul.f32 %v5331_v55, %v1671_v4 }
 0x30f   : > { %v1869_v41 = vrot.slane %v5805_v54, 2  ;;  %v4051_v29 = vpop.eup %4050  ;;  %v1800_v45 = vadd.f32 %v1784_v25, %v1764_v52  ;;  %v1871_v15 = vrot.slane %v5838_v48, 2  ;;  %v1873_v27 = vrot.slane %v5848_v30, 2 }
 0x310   : > { %v1765_v62 = vadd.f32 %v1749_v19, %v1729_v44  ;;  %v1313_v11 = vmul.f32 %v4051_v29, %v5687_v23  ;;  %v1835_v7 = vadd.f32 %v1819_v24, %v1799_v46  ;;  %v1915_v28 = vmul.f32 %v5298_v63, %v5845_v43 }
 0x311   : > { %v5895_v22 = vsel %vm1839_vm2, %v1867_v1, %v1869_v41  ;;  %v1836_v10 = vadd.f32 %v1820_v42, %v1800_v45  ;;  %v5900_v51 = vsel %vm1839_vm2, %v1869_v41, %v1871_v15  ;;  %v1874_v44 = vsel %vm1839_vm2, %v1871_v15, %v1873_v27 }
 0x312   : > { %8194 = vst [vmem:[#allocation106_spill] sm:$0xff] %v5895_v22  ;;  %v1801_v8 = vadd.f32 %v1785_v14, %v1765_v62  ;;  %8195 = vst [vmem:[#allocation107_spill] sm:$0xff] %v5900_v51  ;;  %v5905_v19 = vsel %vm5852_vm5, %v1313_v11, 0.0  ;;  %v1714_v23 = vmul.f32 %v5294_v39, %v1669_v6  ;;  %v1930_v46 = vadd.f32 %v5799_v20, %v1835_v7 }
 0x313   : > { %8196 = vst [vmem:[#allocation108_spill] sm:$0xff] %v5905_v19  ;;  %v1950_v1 = vmul.f32 %v5335_v50, %v5845_v43  ;;  %v1599_v52 = vmul.f32 %v5312_v35, %v5905_v19  ;;  %v7829_v25 = vrot.slane %v5905_v19, 1  ;;  %v7828_v14 = vrot.slane %v5905_v19, 2 }
 0x314   : > { %v1931_v24 = vadd.f32 %v1915_v28, %v1836_v10  ;;  %v1750_v42 = vmul.f32 %v5321_v49, %v1671_v4  ;;  %v5917_v41 = vmul.f32 %v5331_v55, %v1667_v37  ;;  %v1951_v6 = vmul.f32 %v5335_v50, %v5895_v22 }
 0x315   : > { %v5921_v20 = vadd.f32 %v1950_v1, %v1930_v46  ;;  %v1615_v29 = vadd.f32 %v1599_v52, %v1579_v2  ;;  %v1673_v35 = vsel %vm1636_vm1, %v1670_v18, %v7829_v25  ;;  %v1876_v62 = vsel %vm1839_vm2, %v1873_v27, %v7828_v14 }
 0x316   : > { %8197 = vst [vmem:[#allocation109_spill] sm:$0xff] %v5917_v41  ;;  %v1916_v4 = vmul.f32 %v5298_v63, %v5895_v22  ;;  %v1821_v37 = vmul.f32 %v5331_v55, %v1673_v35  ;;  %v1952_v10 = vmul.f32 %v5335_v50, %v5900_v51  ;;  %v5934_v45 = vadd.f32 %v1951_v6, %v1931_v24 }
 0x317   : > { %8198 = vst [vmem:[#allocation110_spill] sm:$0xff] %v5921_v20  ;;  %v5938_v2 = vmul.f32 %v5339_v0, %v5895_v22  ;;  %v1730_v15 = vadd.f32 %v1714_v23, %v1615_v29  ;;  %v1786_v18 = vmul.f32 %v5324_v38, %v1673_v35  ;;  %v1988_v11 = vmul.f32 %v5339_v0, %v1874_v44 }
 0x318   : > { %8199 = vst [vmem:[#allocation111_spill] sm:$0xff] %v5934_v45  ;;  %v7827_v27 = vrot.slane %v5793_v34, 3  ;;  %v1837_v7 = vadd.f32 %v1821_v37, %v1801_v8  ;;  %v2072_v28 = vrot.slane %v5805_v54, 3  ;;  %v2074_v46 = vrot.slane %v5838_v48, 3 }
 0x319   : > { %8200 = vst [vmem:[#allocation112_spill] sm:$0xff] %v5938_v2  ;;  %v2076_v1 = vrot.slane %v5848_v30, 3  ;;  %v1766_v52 = vadd.f32 %v1750_v42, %v1730_v15  ;;  %v5947_v24 = vmul.f32 %v5339_v0, %v1876_v62  ;;  %v7830_v6 = vrot.slane %v5905_v19, 3 }
 0x31a   : > { %v1254_v23 = vadd.f32 1.0, %v5866_v47  ;;  %v1932_v29 = vadd.f32 %v1916_v4, %v1837_v7  ;;  %v5954_v8 = vsel %vm2042_vm3, %v7827_v27, %v2072_v28  ;;  %v5957_v35 = vsel %vm2042_vm3, %v2072_v28, %v2074_v46 }
 0x31b   : > { %8201 = vst [vmem:[#allocation113_spill] sm:$0xff] %v5954_v8  ;;  %8202 = vst [vmem:[#allocation114_spill] sm:$0xff] %v5957_v35  ;;  %v5960_v37 = vsel %vm2042_vm3, %v2074_v46, %v2076_v1  ;;  %v5963_v42 = vmul.f32 %v5343_v57, %v1874_v44  ;;  %v2024_v15 = vmul.f32 %v5343_v57, %v1876_v62  ;;  %v7833_v4 = vrot.slane %v5838_v48, 4 }
 0x31c   : > { %8203 = vst [vmem:[#allocation115_spill] sm:$0xff] %v5960_v37  ;;  %v2079_v47 = vsel %vm2042_vm3, %v2076_v1, %v7830_v6  ;;  %v1968_v7 = vadd.f32 %v1952_v10, %v1932_v29  ;;  %v2119_v27 = vmul.f32 %v5301_v32, %v5954_v8  ;;  %v2155_v28 = vmul.f32 %v5347_v59, %v5957_v35 }
 0x31d   : > { %8204 = vst [vmem:[#allocation116_spill] sm:$0xff] %v5963_v42  ;;  %4052 = vrcp.f32 %v1254_v23  ;;  %v2191_v46 = vmul.f32 %v5350_v60, %v5960_v37  ;;  %v5977_v14 = vmul.f32 %v5350_v60, %v2079_v47  ;;  %v2227_v62 = vmul.f32 %v5353_v53, %v2079_v47 }
 0x31e   : > { %v5980_v25 = vadd.f32 %v1786_v18, %v1766_v52  ;;  %v2004_v1 = vadd.f32 %v1988_v11, %v1968_v7  ;;  %v5984_v10 = vmul.f32 %v5298_v63, %v5900_v51  ;;  %v7834_v29 = vrot.slane %v5805_v54, 4 }
 0x31f   : > { %v5989_v23 = vmul.f32 %v5335_v50, %v1874_v44  ;;  %v8205_v6 = vrot.slane %v5531_v12, 3  ;;  %v8206_v30 = vrot.slane %v5509_v17, 3  ;;  %v2122_v18 = vadd.f32 %v5879_v36, %v5807_v13 }
 0x320   : > { %v2141_v11 = vmul.f32 %v5347_v59, %v5789_v58  ;;  %v2040_v52 = vadd.f32 %v2024_v15, %v2004_v1  ;;  %v6004_v7 = vmul.f32 %v5301_v32, %v5957_v35  ;;  %v6011_v44 = vsel %vm2245_vm4, %v7834_v29, %v7833_v4 }
 0x321   : > { %v5996_v47 = vsel %vm2042_vm3, %v8206_v30, %v8205_v6  ;;  %8207 = vst [vmem:[#allocation117_spill] sm:$0xff] %v6011_v44  ;;  %v2142_v30 = vmul.f32 %v5347_v59, %v5802_v56  ;;  %v6017_v13 = vmul.f32 %v5347_v59, %v5960_v37  ;;  %v2177_v36 = vmul.f32 %v5350_v60, %v5802_v56 }
 0x322   : > { %v2157_v58 = vadd.f32 %v2141_v11, %v5815_v33  ;;  %v2178_v6 = vmul.f32 %v5350_v60, %v5812_v5  ;;  %v2135_v15 = vadd.f32 %v2119_v27, %v2040_v52  ;;  %v2213_v4 = vmul.f32 %v5353_v53, %v5812_v5 }
 0x323   : > { %v2158_v1 = vadd.f32 %v2142_v30, %v2122_v18  ;;  %v2214_v29 = vmul.f32 %v5353_v53, %v5996_v47  ;;  %v2249_v37 = vrot.slane %v5473_v26, 4  ;;  %v2251_v35 = vrot.slane %v5484_v16, 4 }
 0x324   : > { %v2193_v48 = vadd.f32 %v2177_v36, %v2157_v58  ;;  %v2253_v33 = vrot.slane %v5509_v17, 4  ;;  %v2171_v11 = vadd.f32 %v2155_v28, %v2135_v15  ;;  %v8208_v27 = vrot.slane %v5445_v3, 5 }
 0x325   : > { %v2194_v56 = vadd.f32 %v2178_v6, %v2158_v1  ;;  %v8209_v18 = vrot.slane %v5423_v9, 5  ;;  %v8210_v45 = vrot.slane %v5445_v3, 4  ;;  %v2252_v36 = vsel %vm2245_vm4, %v2249_v37, %v2251_v35 }
 0x326   : > { %v2229_v30 = vadd.f32 %v2213_v4, %v2193_v48  ;;  %v6042_v2 = vsel %vm2245_vm4, %v2251_v35, %v2253_v33  ;;  %v2207_v6 = vadd.f32 %v2191_v46, %v2171_v11  ;;  %v6046_v15 = vmul.f32 %v5301_v32, %v5812_v5 }
 0x327   : > { %v2451_v52 = vsel %vm2448_vm6, %v8209_v18, %v8208_v27  ;;  %v2250_v58 = vsel %vm2245_vm4, %v8210_v45, %v2249_v37  ;;  %v4053_v28 = vpop.eup %4052  ;;  %v2230_v1 = vadd.f32 %v2214_v29, %v2194_v56  ;;  %v6052_v4 = vmul.f32 %v5356_v61, %v6011_v44  ;;  %v8215_v18 = vld [vmem:[#allocation45_spill] sm:$0xff] }
 0x328   : > { %v2309_v42 = vmul.f32 %v5356_v61, %v2250_v58  ;;  %v1314_v48 = vmul.f32 %v4053_v28, %v5723_v31  ;;  %v6056_v45 = vmul.f32 %v5301_v32, %v5996_v47  ;;  %v8212_v35 = vrot.slane %v5531_v12, 4  ;;  %v8253_v32 = vld [vmem:[#allocation65_spill] sm:$0xff] }
 0x329   : > { %v6063_v46 = vadd.f32 %v2227_v62, %v2207_v6  ;;  %v6066_v29 = vmul.f32 %v5356_v61, %v2252_v36  ;;  %v2324_v31 = vadd.f32 %v5492_v40, %v2229_v30  ;;  %v6075_v27 = vmul.f32 %v5356_v61, %v6042_v2  ;;  %v8216_v30 = vld [vmem:[#allocation46_spill] sm:$0xff] }
 0x32a   : > { %8211 = vst [vmem:[#allocation118_spill] sm:$0xff] %v6056_v45  ;;  %v6061_v37 = vsel %vm2245_vm4, %v2253_v33, %v8212_v35  ;;  %v2325_v11 = vadd.f32 %v2309_v42, %v2230_v1  ;;  %v6071_v56 = vsel %vm5852_vm5, %v1314_v48, 0.0  ;;  %v2344_v28 = vmul.f32 %v8215_v18, %v2250_v58 }
 0x32b   : > { %8213 = vst [vmem:[#allocation119_spill] sm:$0xff] %v6063_v46  ;;  %8214 = vst [vmem:[#allocation120_spill] sm:$0xff] %v6071_v56  ;;  %v2345_v33 = vmul.f32 %v8215_v18, %v2252_v36  ;;  %v1674_v62 = vrot.slane %v6071_v56, 1  ;;  %v1877_v6 = vrot.slane %v6071_v56, 2  ;;  %v2080_v35 = vrot.slane %v6071_v56, 3 }
 0x32c   : > { %v2283_v40 = vrot.slane %v6071_v56, 4  ;;  %v2360_v42 = vadd.f32 %v2344_v28, %v2324_v31  ;;  %v2380_v1 = vmul.f32 %v8216_v30, %v2252_v36  ;;  %v2381_v48 = vmul.f32 %v8216_v30, %v6042_v2 }
 0x32d   : > { %v2361_v21 = vadd.f32 %v2345_v33, %v2325_v11  ;;  %v8217_v46 = vrot.slane %v5905_v19, 1  ;;  %v8218_v44 = vrot.slane %v5905_v19, 2  ;;  %v8219_v51 = vrot.slane %v5905_v19, 3  ;;  %v8222_v33 = vld [vmem:[#allocation44_spill] sm:$0xff] }
 0x32e   : > { %v8220_v31 = vrot.slane %v5905_v19, 4  ;;  %v8230_v34 = vrot.slane %v5423_v9, 6  ;;  %v7861_v45 = vrot.slane %v5531_v12, 7 }
 0x32f   : > { %v1675_v58 = vsel %vm1636_vm1, %v8217_v46, %v1674_v62  ;;  %v1878_v20 = vsel %vm1839_vm2, %v8218_v44, %v1877_v6  ;;  %v2081_v8 = vsel %vm2042_vm3, %v8219_v51, %v2080_v35  ;;  %v6102_v46 = vmul.f32 %v5356_v61, %v6061_v37 }
 0x330   : > { %v2284_v11 = vsel %vm2245_vm4, %v8220_v31, %v2283_v40  ;;  %v1822_v36 = vmul.f32 %v5331_v55, %v1675_v58  ;;  %v2416_v44 = vmul.f32 %v8222_v33, %v6042_v2  ;;  %v2396_v62 = vadd.f32 %v2380_v1, %v2360_v42 }
 0x331   : > { %8221 = vst [vmem:[#allocation121_spill] sm:$0xff] %v6102_v46  ;;  %v2397_v6 = vadd.f32 %v2381_v48, %v2361_v21  ;;  %v2417_v51 = vmul.f32 %v8222_v33, %v6061_v37  ;;  %v2452_v35 = vrot.slane %v5473_v26, 5  ;;  %v2454_v58 = vrot.slane %v5484_v16, 5 }
 0x332   : > { %v1838_v40 = vadd.f32 %v1822_v36, %v5980_v25  ;;  %v2456_v31 = vrot.slane %v5509_v17, 5  ;;  %v2025_v56 = vmul.f32 %v5343_v57, %v1878_v20  ;;  %v2432_v19 = vadd.f32 %v2416_v44, %v2396_v62  ;;  %v8224_v36 = vld [vmem:[#allocation47_spill] sm:$0xff] }
 0x333   : > { %v2433_v54 = vadd.f32 %v2417_v51, %v2397_v6  ;;  %v8223_v42 = vrot.slane %v5445_v3, 5  ;;  %v2455_v48 = vsel %vm2448_vm6, %v2452_v35, %v2454_v58  ;;  %v2511_v22 = vmul.f32 %v8224_v36, %v2451_v52  ;;  %v8227_v51 = vld [vmem:[#allocation48_spill] sm:$0xff] }
 0x334   : > { %v1933_v1 = vadd.f32 %v5984_v10, %v1838_v40  ;;  %v6120_v25 = vsel %vm2448_vm6, %v2454_v58, %v2456_v31  ;;  %v2228_v41 = vmul.f32 %v5353_v53, %v2081_v8  ;;  %v6125_v28 = vmul.f32 %v8222_v33, %v2284_v11  ;;  %v8228_v58 = vld [vmem:[#allocation49_spill] sm:$0xff] }
 0x335   : > { %v2453_v21 = vsel %vm2448_vm6, %v8223_v42, %v2452_v35  ;;  %v8226_v20 = vrot.slane %v5531_v12, 5  ;;  %v2527_v6 = vadd.f32 %v2511_v22, %v2432_v19  ;;  %v2548_v40 = vmul.f32 %v8227_v51, %v2455_v48  ;;  %v8229_v42 = vld [vmem:[#allocation52_spill] sm:$0xff] }
 0x336   : > { %8225 = vst [vmem:[#allocation122_spill] sm:$0xff] %v6125_v28  ;;  %v2512_v62 = vmul.f32 %v8224_v36, %v2453_v21  ;;  %v1969_v10 = vadd.f32 %v5989_v23, %v1933_v1  ;;  %v2547_v35 = vmul.f32 %v8227_v51, %v2453_v21  ;;  %v2583_v8 = vmul.f32 %v8228_v58, %v2455_v48 }
 0x337   : > { %v6130_v44 = vsel %vm2448_vm6, %v2456_v31, %v8226_v20  ;;  %v2584_v11 = vmul.f32 %v8228_v58, %v6120_v25  ;;  %v2619_v28 = vmul.f32 %v8229_v42, %v6120_v25  ;;  %v2653_v22 = vrot.slane %v5445_v3, 6 }
 0x338   : > { %v2528_v52 = vadd.f32 %v2512_v62, %v2433_v54  ;;  %v2005_v31 = vadd.f32 %v5947_v24, %v1969_v10  ;;  %v2563_v20 = vadd.f32 %v2547_v35, %v2527_v6  ;;  %v2620_v23 = vmul.f32 %v8229_v42, %v6130_v44 }
 0x339   : > { %v2655_v54 = vrot.slane %v5473_v26, 6  ;;  %v2657_v21 = vrot.slane %v5484_v16, 6  ;;  %v2659_v1 = vrot.slane %v5509_v17, 6  ;;  %v2654_v24 = vsel %vm2651_vm7, %v8230_v34, %v2653_v22 }
 0x33a   : > { %v2564_v19 = vadd.f32 %v2548_v40, %v2528_v52  ;;  %v2041_v62 = vadd.f32 %v2025_v56, %v2005_v31  ;;  %v2599_v43 = vadd.f32 %v2583_v8, %v2563_v20  ;;  %v7859_v10 = vrot.slane %v5531_v12, 6  ;;  %v8231_v8 = vld [vmem:[#allocation50_spill] sm:$0xff] }
 0x33b   : > { %v2656_v35 = vsel %vm2651_vm7, %v2653_v22, %v2655_v54  ;;  %v2658_v46 = vsel %vm2651_vm7, %v2655_v54, %v2657_v21  ;;  %v6155_v40 = vsel %vm2651_vm7, %v2657_v21, %v2659_v1  ;;  %v6159_v61 = vmul.f32 %v8224_v36, %v2455_v48 }
 0x33c   : > { %v2600_v6 = vadd.f32 %v2584_v11, %v2564_v19  ;;  %v2136_v52 = vadd.f32 %v6004_v7, %v2041_v62  ;;  %v2635_v56 = vadd.f32 %v2619_v28, %v2599_v43  ;;  %v2714_v31 = vmul.f32 %v8231_v8, %v2654_v24  ;;  %v8234_v28 = vld [vmem:[#allocation53_spill] sm:$0xff] }
 0x33d   : > { %v6164_v34 = vmul.f32 %v8224_v36, %v6120_v25  ;;  %v6169_v20 = vsel %vm2651_vm7, %v2659_v1, %v7859_v10  ;;  %v2715_v22 = vmul.f32 %v8231_v8, %v2656_v35  ;;  %v6175_v48 = vmul.f32 %v8224_v36, %v6130_v44 }
 0x33e   : > { %v2636_v11 = vadd.f32 %v2620_v23, %v2600_v6  ;;  %v2172_v7 = vadd.f32 %v6017_v13, %v2136_v52  ;;  %v2730_v43 = vadd.f32 %v2714_v31, %v2635_v56  ;;  %v2750_v19 = vmul.f32 %v8234_v28, %v2656_v35  ;;  %v8235_v23 = vld [vmem:[#allocation54_spill] sm:$0xff]  ;;  %v8236_v13 = vld [vmem:[#allocation55_spill] sm:$0xff] }
 0x33f   : > { %8232 = vst [vmem:[#allocation123_spill] sm:$0xff] %v6164_v34  ;;  %8233 = vst [vmem:[#allocation124_spill] sm:$0xff] %v6175_v48  ;;  %v2751_v21 = vmul.f32 %v8234_v28, %v2658_v46  ;;  %v2786_v62 = vmul.f32 %v8235_v23, %v2658_v46  ;;  %v2787_v1 = vmul.f32 %v8235_v23, %v6155_v40  ;;  %v2855_v35 = vrot.slane %v5423_v9, 7 }
 0x340   : > { %v2731_v54 = vadd.f32 %v2715_v22, %v2636_v11  ;;  %v2208_v24 = vadd.f32 %v5977_v14, %v2172_v7  ;;  %v2766_v6 = vadd.f32 %v2750_v19, %v2730_v43  ;;  %v2822_v52 = vmul.f32 %v8236_v13, %v6155_v40 }
 0x341   : > { %v2823_v10 = vmul.f32 %v8236_v13, %v6169_v20  ;;  %v2856_v31 = vrot.slane %v5445_v3, 7  ;;  %v2858_v11 = vrot.slane %v5473_v26, 7  ;;  %v2860_v36 = vrot.slane %v5484_v16, 7 }
 0x342   : > { %v2767_v56 = vadd.f32 %v2751_v21, %v2731_v54  ;;  %v2244_v22 = vadd.f32 %v2228_v41, %v2208_v24  ;;  %v2802_v48 = vadd.f32 %v2786_v62, %v2766_v6  ;;  %v2862_v14 = vrot.slane %v5509_v17, 7  ;;  %v8239_v41 = vld [vmem:[#allocation56_spill] sm:$0xff] }
 0x343   : > { %v2857_v43 = vsel %vm2854_vm8, %v2855_v35, %v2856_v31  ;;  %v2859_v19 = vsel %vm2854_vm8, %v2856_v31, %v2858_v11  ;;  %v2861_v3 = vsel %vm2854_vm8, %v2858_v11, %v2860_v36  ;;  %v6203_v16 = vmul.f32 %v8231_v8, %v2658_v46  ;;  %v8242_v46 = vld [vmem:[#allocation57_spill] sm:$0xff]  ;;  %v8244_v11 = vld [vmem:[#allocation51_spill] sm:$0xff] }
 0x344   : > { %v2803_v7 = vadd.f32 %v2787_v1, %v2767_v56  ;;  %v6196_v54 = vadd.f32 %v6052_v4, %v2244_v22  ;;  %v2838_v9 = vadd.f32 %v2822_v52, %v2802_v48  ;;  %v6200_v26 = vsel %vm2854_vm8, %v2860_v36, %v2862_v14  ;;  %v8243_v52 = vld [vmem:[#allocation58_spill] sm:$0xff]  ;;  %v4118_v31 = vld [vmem:[#allocation10 + $0x18] sm:$0x7f] }
 0x345   : > { %8238 = vst [vmem:[#allocation126_spill] sm:$0xff] %v6203_v16  ;;  %v2917_v21 = vmul.f32 %v8239_v41, %v2857_v43  ;;  %v2918_v62 = vmul.f32 %v8239_v41, %v2859_v19  ;;  %v6209_v1 = vmul.f32 %v8231_v8, %v6155_v40  ;;  %v6213_v4 = vmul.f32 %v8231_v8, %v6169_v20  ;;  %v8247_v43 = vld [vmem:[#allocation64_spill] sm:$0xff]  ;;  %v8260_v16 = vld [vmem:[#allocation66_spill] sm:$0xff] }
 0x346   : > { %8237 = vst [vmem:[#allocation125_spill] sm:$0xff] %v6196_v54  ;;  %v2839_v17 = vadd.f32 %v2823_v10, %v2803_v7  ;;  %v6218_v36 = vsel %vm2854_vm8, %v2862_v14, %v7861_v45  ;;  %v2953_v48 = vmul.f32 %v8242_v46, %v2859_v19  ;;  %v2954_v6 = vmul.f32 %v8242_v46, %v2861_v3  ;;  %v8246_v7 = vld [vmem:[#allocation59_spill] sm:$0xff]  ;;  %v8249_v45 = vld [vmem:[#allocation70_spill] sm:$0xff] }
 0x347   : > { %8240 = vst [vmem:[#allocation127_spill] sm:$0xff] %v6209_v1  ;;  %8241 = vst [vmem:[#allocation128_spill] sm:$0xff] %v6213_v4  ;;  %v2933_v10 = vadd.f32 %v2917_v21, %v2838_v9  ;;  %v2989_v56 = vmul.f32 %v8243_v52, %v2861_v3  ;;  %v2990_v35 = vmul.f32 %v8243_v52, %v6200_v26  ;;  %v8248_v14 = vld [vmem:[#allocation63_spill] sm:$0xff]  ;;  %v8254_v1 = vrot.slane %v8253_v32, 1 }
 0x348   : > { %v2934_v24 = vadd.f32 %v2918_v62, %v2839_v17  ;;  %v6226_v22 = vrot.slane %v4118_v31, %v8244_v11  ;;  %v1602_v54 = vadd.f32 %v8247_v43, %v8246_v7  ;;  %v1603_v4 = vadd.f32 %v8249_v45, %v8248_v14  ;;  %v8250_v17 = vld [vmem:[#allocation62_spill] sm:$0xff] }
 0x349   : > { %v2969_v19 = vadd.f32 %v2953_v48, %v2933_v10  ;;  %v8251_v21 = vrot.slane %v8250_v17, 1  ;;  %v8252_v62 = vrot.slane %v5531_v12, 1  ;;  %v8257_v48 = vld [vmem:[#allocation61_spill] sm:$0xff]  ;;  %v1738_v63 = vmul.f32 %v5321_v49, %v8260_v16 }
 0x34a   : > { %8245 = vst [vmem:[#allocation51_spill] sm:$0xff] %v6226_v22  ;;  %v2970_v9 = vadd.f32 %v2954_v6, %v2934_v24  ;;  %v3025_v7 = vmul.f32 %v6226_v22, %v6200_v26  ;;  %v3026_v45 = vmul.f32 %v6226_v22, %v6218_v36  ;;  %v1717_v10 = vadd.f32 %v8257_v48, %v1602_v54  ;;  %v8258_v24 = vld [vmem:[#allocation67_spill] sm:$0xff] }
 0x34b   : > { %v6237_v8 = vsel %vm1636_vm1, %v8252_v62, %v8251_v21  ;;  %v8255_v31 = vmov %v8251_v21  ;;  %v1718_v6 = vadd.f32 %v8258_v24, %v1603_v4  ;;  %v3005_v43 = vadd.f32 %v2989_v56, %v2969_v19  ;;  %v8259_v21 = vld [vmem:[#allocation60_spill] sm:$0xff] }
 0x34c   : > { %v6244_v11 = vsel %vm1636_vm1, %v8255_v31, %v8254_v1  ;;  %v3006_v14 = vadd.f32 %v2990_v35, %v2970_v9  ;;  %v1737_v62 = vmul.f32 %v5321_v49, %v8259_v21  ;;  %v6257_v1 = vmul.f32 %v8239_v41, %v2861_v3  ;;  %v6262_v31 = vld [vmem:[%s8262_s14] ss:$0 sm:$0xff] }
 0x34d   : > { %8256 = vst [vmem:[#allocation59_spill] sm:$0xff] %v6244_v11  ;;  %8263 = vst [vmem:[#allocation63_spill] sm:$0xff] %v6262_v31  ;;  %v1773_v54 = vmul.f32 %v5324_v38, %v8260_v16  ;;  %v1774_v4 = vmul.f32 %v5324_v38, %v6237_v8  ;;  %v1809_v56 = vmul.f32 %v5331_v55, %v6237_v8  ;;  %v1851_v21 = vrot.slane %v8250_v17, 2 }
 0x34e   : > { %8261 = vst [vmem:[#allocation64_spill] sm:$0xff] %v6257_v1  ;;  %v3041_v35 = vadd.f32 %v3025_v7, %v3005_v43  ;;  %v3042_v19 = vadd.f32 %v3026_v45, %v3006_v14  ;;  %v1753_v9 = vadd.f32 %v1737_v62, %v1717_v10  ;;  %v1754_v48 = vadd.f32 %v1738_v63, %v1718_v6 }
 0x34f   : > { %v6272_v3 = vmul.f32 %v8239_v41, %v6200_v26  ;;  %v1810_v24 = vmul.f32 %v5331_v55, %v6244_v11  ;;  %v7867_v16 = vrot.slane %v8253_v32, 2  ;;  %v6286_v63 = vmul.f32 %v8239_v41, %v6218_v36 }
 0x350   : > { %v6279_v1 = vadd.f32 %v6262_v31, %v3041_v35  ;;  %v6282_v34 = vadd.f32 %v6262_v31, %v3042_v19  ;;  %v1789_v7 = vadd.f32 %v1773_v54, %v1753_v9  ;;  %v1790_v45 = vadd.f32 %v1774_v4, %v1754_v48  ;;  %v8267_v19 = vld [vmem:[#allocation75_spill] sm:$0xff]  ;;  %v8268_v48 = vld [vmem:[#allocation77_spill] sm:$0xff] }
 0x351   : > { %8264 = vst [vmem:[#allocation70_spill] sm:$0xff] %v6272_v3  ;;  %8265 = vst [vmem:[#allocation62_spill] sm:$0xff] %v6286_v63  ;;  %v8266_v10 = vrot.slane %v5531_v12, 2  ;;  %v6296_v43 = vsel %vm1839_vm2, %v1851_v21, %v7867_v16  ;;  %v2054_v14 = vrot.slane %v8250_v17, 3  ;;  %v1940_v9 = vmul.f32 %v5335_v50, %v8267_v19  ;;  %v8269_v16 = vld [vmem:[#allocation80_spill] sm:$0xff]  ;;  %v8270_v31 = vld [vmem:[#allocation81_spill] sm:$0xff] }
 0x352   : > { %v3643_v62 = vmul.f32 -1.442695, %v6279_v1  ;;  %v3644_v54 = vmul.f32 -1.442695, %v6282_v34  ;;  %v1825_v4 = vadd.f32 %v1809_v56, %v1789_v7  ;;  %v1826_v35 = vadd.f32 %v1810_v24, %v1790_v45 }
 0x353   : > { %v6291_v6 = vsel %vm1839_vm2, %v8266_v10, %v1851_v21  ;;  %v1941_v10 = vmul.f32 %v5335_v50, %v8268_v48  ;;  %v1976_v63 = vmul.f32 %v5339_v0, %v8268_v48  ;;  %v7871_v56 = vrot.slane %v8253_v32, 3 }
 0x354   : > { %v1977_v21 = vmul.f32 %v5339_v0, %v6291_v6  ;;  %4054 = vpow2.f32 %v3643_v62  ;;  %v1920_v41 = vadd.f32 %v8269_v16, %v1825_v4  ;;  %v1921_v3 = vadd.f32 %v8270_v31, %v1826_v35 }
 0x355   : > { %4056 = vpow2.f32 %v3644_v54  ;;  %v2012_v24 = vmul.f32 %v5343_v57, %v6291_v6  ;;  %v2013_v7 = vmul.f32 %v5343_v57, %v6296_v43  ;;  %v8271_v45 = vrot.slane %v5531_v12, 3 }
 0x356   : > { %v1956_v48 = vadd.f32 %v1940_v9, %v1920_v41  ;;  %v1957_v62 = vadd.f32 %v1941_v10, %v1921_v3  ;;  %v6324_v31 = vsel %vm2042_vm3, %v2054_v14, %v7871_v56  ;;  %v2143_v16 = vmul.f32 %v5347_v59, %v5812_v5 }
 0x357   : > { %v6319_v19 = vsel %vm2042_vm3, %v8271_v45, %v2054_v14  ;;  %8272 = vst [vmem:[#allocation65_spill] sm:$0xff] %v6324_v31  ;;  %v2144_v54 = vmul.f32 %v5347_v59, %v5996_v47  ;;  %v2179_v4 = vmul.f32 %v5350_v60, %v5996_v47  ;;  %v2257_v35 = vrot.slane %v8250_v17, 4 }
 0x358   : > { %v7876_v45 = vrot.slane %v8253_v32, 4  ;;  %v1992_v41 = vadd.f32 %v1976_v63, %v1956_v48  ;;  %v1993_v3 = vadd.f32 %v1977_v21, %v1957_v62  ;;  %v2180_v9 = vmul.f32 %v5350_v60, %v6319_v19 }
 0x359   : > { %v2215_v14 = vmul.f32 %v5353_v53, %v6319_v19  ;;  %v2216_v5 = vmul.f32 %v5353_v53, %v6324_v31  ;;  %v8273_v10 = vrot.slane %v5531_v12, 4  ;;  %v2460_v63 = vrot.slane %v8250_v17, 5  ;;  %v8275_v31 = vld [vmem:[#allocation105_spill] sm:$0xff] }
 0x35a   : > { %v6348_v47 = vsel %vm2245_vm4, %v2257_v35, %v7876_v45  ;;  %v2028_v21 = vadd.f32 %v2012_v24, %v1992_v41  ;;  %v2029_v48 = vadd.f32 %v2013_v7, %v1993_v3  ;;  %v2346_v62 = vmul.f32 %v8215_v18, %v6042_v2 }
 0x35b   : > { %v6343_v56 = vsel %vm2245_vm4, %v8273_v10, %v2257_v35  ;;  %8274 = vst [vmem:[#allocation61_spill] sm:$0xff] %v6348_v47  ;;  %v2347_v53 = vmul.f32 %v8215_v18, %v6061_v37  ;;  %v2382_v60 = vmul.f32 %v8216_v30, %v6061_v37  ;;  %v7881_v45 = vrot.slane %v8253_v32, 5 }
 0x35c   : > { %v2383_v10 = vmul.f32 %v8216_v30, %v6343_v56  ;;  %v2418_v35 = vmul.f32 %v8222_v33, %v6343_v56  ;;  %v2123_v24 = vadd.f32 %v8275_v31, %v2028_v21  ;;  %v2124_v7 = vadd.f32 %v6046_v15, %v2029_v48 }
 0x35d   : > { %v2419_v2 = vmul.f32 %v8222_v33, %v6348_v47  ;;  %v8276_v41 = vrot.slane %v5531_v12, 5  ;;  %v6374_v37 = vsel %vm2448_vm6, %v2460_v63, %v7881_v45  ;;  %v6378_v30 = vmul.f32 %v8227_v51, %v6120_v25 }
 0x35e   : > { %8277 = vst [vmem:[#allocation67_spill] sm:$0xff] %v6374_v37  ;;  %v6382_v15 = vmul.f32 %v8227_v51, %v6130_v44  ;;  %v2663_v31 = vrot.slane %v8250_v17, 6  ;;  %v4055_v21 = vpop.eup %4054  ;;  %v2159_v48 = vadd.f32 %v2143_v16, %v2123_v24  ;;  %v2160_v33 = vadd.f32 %v2144_v54, %v2124_v7 }
 0x35f   : > { %v6369_v3 = vsel %vm2448_vm6, %v8276_v41, %v2460_v63  ;;  %v6387_v41 = vmul.f32 %v8228_v58, %v6130_v44  ;;  %v7887_v63 = vrot.slane %v8253_v32, 6  ;;  %v4057_v45 = vpop.eup %4056  ;;  %v3128_v47 = vadd.f32 1.0, %v4055_v21 }
 0x360   : > { %v6392_v25 = vmul.f32 %v8228_v58, %v6369_v3  ;;  %v6396_v51 = vmul.f32 %v8229_v42, %v6369_v3  ;;  %v8278_v18 = vrot.slane %v5531_v12, 6  ;;  %v3129_v54 = vadd.f32 1.0, %v4057_v45 }
 0x361   : > { %v2195_v44 = vadd.f32 %v2179_v4, %v2159_v48  ;;  %v2196_v24 = vadd.f32 %v2180_v9, %v2160_v33  ;;  %v6406_v7 = vsel %vm2651_vm7, %v2663_v31, %v7887_v63  ;;  %4058 = vrcp.f32 %v3128_v47 }
 0x362   : > { %v6401_v16 = vsel %vm2651_vm7, %v8278_v18, %v2663_v31  ;;  %8279 = vst [vmem:[#allocation60_spill] sm:$0xff] %v6406_v7  ;;  %v6410_v21 = vmul.f32 %v8229_v42, %v6374_v37  ;;  %v6414_v58 = vmul.f32 %v8234_v28, %v6155_v40  ;;  %v6418_v18 = vmul.f32 %v8234_v28, %v6169_v20 }
 0x363   : > { %4060 = vrcp.f32 %v3129_v54  ;;  %v2231_v33 = vadd.f32 %v2215_v14, %v2195_v44  ;;  %v2232_v4 = vadd.f32 %v2216_v5, %v2196_v24  ;;  %v6422_v45 = vmul.f32 %v8235_v23, %v6169_v20  ;;  %v8280_v5 = vld [vmem:[#allocation69_spill] sm:$0xff]  ;;  %v8281_v54 = vld [vmem:[#allocation68_spill] sm:$0xff] }
 0x364   : > { %v6426_v9 = vmul.f32 %v8235_v23, %v6401_v16  ;;  %v6430_v47 = vmul.f32 %v8236_v13, %v6401_v16  ;;  %v2866_v40 = vrot.slane %v8250_v17, 7  ;;  %v7892_v31 = vrot.slane %v8253_v32, 7 }
 0x365   : > { %v2326_v48 = vadd.f32 %v6066_v29, %v2231_v33  ;;  %v2327_v14 = vadd.f32 %v6075_v27, %v2232_v4  ;;  %v6438_v20 = vmul.f32 %v8236_v13, %v6406_v7  ;;  %v1604_v44 = vadd.f32 %v8281_v54, %v8280_v5  ;;  %v8285_v29 = vld [vmem:[#allocation71_spill] sm:$0xff]  ;;  %v8286_v33 = vld [vmem:[#allocation74_spill] sm:$0xff]  ;;  %v8287_v4 = vld [vmem:[#allocation72_spill] sm:$0xff] }
 0x366   : > { %v8282_v24 = vrot.slane %v5531_v12, 7  ;;  %v6450_v17 = vsel %vm2854_vm8, %v2866_v40, %v7892_v31  ;;  %v1605_v27 = vadd.f32 %v8286_v33, %v8285_v29  ;;  %v8288_v23 = vrot.slane %v8287_v4, 1 }
 0x367   : > { %8284 = vst [vmem:[#allocation75_spill] sm:$0xff] %v6450_v17  ;;  %v8289_v13 = vrot.slane %v8253_v32, 1  ;;  %v2362_v5 = vadd.f32 %v2346_v62, %v2326_v48  ;;  %v2363_v12 = vadd.f32 %v2347_v53, %v2327_v14  ;;  %v6463_v54 = vmul.f32 %v8242_v46, %v6200_v26  ;;  %v8290_v53 = vld [vmem:[#allocation73_spill] sm:$0xff] }
 0x368   : > { %v6445_v63 = vsel %vm2854_vm8, %v8282_v24, %v2866_v40  ;;  %v6467_v40 = vmul.f32 %v8242_v46, %v6218_v36  ;;  %v6471_v24 = vmul.f32 %v8243_v52, %v6218_v36  ;;  %v1739_v14 = vmul.f32 %v5321_v49, %v6237_v8  ;;  %v8291_v36 = vld [vmem:[#allocation78_spill] sm:$0xff] }
 0x369   : > { %8283 = vst [vmem:[#allocation66_spill] sm:$0xff] %v6445_v63  ;;  %v6459_v7 = vsel %vm1636_vm1, %v8289_v13, %v8288_v23  ;;  %v6475_v29 = vmul.f32 %v8243_v52, %v6445_v63  ;;  %v1704_v23 = vmul.f32 %v5294_v39, %v6237_v8  ;;  %v1719_v13 = vadd.f32 %v8290_v53, %v1604_v44 }
 0x36a   : > { %v2398_v62 = vadd.f32 %v2382_v60, %v2362_v5  ;;  %v2399_v26 = vadd.f32 %v2383_v10, %v2363_v12  ;;  %v6482_v48 = vmul.f32 %v6226_v22, %v6445_v63  ;;  %v8292_v33 = vrot.slane %v8291_v36, 1 }
 0x36b   : > { %v8293_v31 = vrot.slane %v8287_v4, 1  ;;  %v1720_v46 = vadd.f32 %v1704_v23, %v1605_v27  ;;  %v1740_v44 = vmul.f32 %v5321_v49, %v6244_v11  ;;  %v1775_v60 = vmul.f32 %v5324_v38, %v6244_v11  ;;  %v4059_v53 = vpop.eup %4058  ;;  %v8294_v49 = vld [vmem:[#allocation123_spill] sm:$0xff] }
 0x36c   : > { %v2434_v10 = vadd.f32 %v2418_v35, %v2398_v62  ;;  %v2435_v5 = vadd.f32 %v2419_v2, %v2399_v26  ;;  %v1755_v12 = vadd.f32 %v1739_v14, %v1719_v13  ;;  %v1811_v8 = vmul.f32 %v5331_v55, %v6459_v7 }
 0x36d   : > { %v6491_v52 = vsel %vm1636_vm1, %v8293_v31, %v8292_v33  ;;  %v1756_v39 = vadd.f32 %v1740_v44, %v1720_v46  ;;  %v1776_v63 = vmul.f32 %v5324_v38, %v6459_v7  ;;  %v1855_v31 = vrot.slane %v8287_v4, 2  ;;  %v4061_v23 = vpop.eup %4060 }
 0x36e   : > { %v7904_v27 = vrot.slane %v8291_v36, 2  ;;  %v2529_v33 = vadd.f32 %v6159_v61, %v2434_v10  ;;  %v2530_v11 = vadd.f32 %v8294_v49, %v2435_v5  ;;  %v1791_v35 = vadd.f32 %v1775_v60, %v1755_v12 }
 0x36f   : > { %v1812_v2 = vmul.f32 %v5331_v55, %v6491_v52  ;;  %v3176_v13 = vmul.f32 %v4059_v53, %v6279_v1  ;;  %v3177_v46 = vmul.f32 %v4061_v23, %v6282_v34  ;;  %v1792_v62 = vadd.f32 %v1776_v63, %v1756_v39  ;;  %v8296_v34 = vld [vmem:[#allocation35_spill] sm:$0xff] }
 0x370   : > { %v8295_v26 = vrot.slane %v8253_v32, 2  ;;  %v2565_v44 = vadd.f32 %v6378_v30, %v2529_v33  ;;  %v2566_v61 = vadd.f32 %v6382_v15, %v2530_v11  ;;  %v6518_v49 = vmul.f32 %v6226_v22, %v6450_v17  ;;  %v8297_v11 = vld [vmem:[#allocation82_spill] sm:$0xff] }
 0x371   : > { %v1827_v60 = vadd.f32 %v1811_v8, %v1791_v35  ;;  %v3192_v10 = vpack.c.bf16 %v3177_v46, %v3176_v13  ;;  %v1828_v5 = vadd.f32 %v1812_v2, %v1792_v62  ;;  %v6523_v39 = vsel %vm1839_vm2, %v1855_v31, %v7904_v27 }
 0x372   : > { %v6512_v14 = vsel %vm1839_vm2, %v8295_v26, %v1855_v31  ;;  %v1907_v1 = vmul.f32 %v8296_v34, %v6291_v6  ;;  %v2601_v63 = vadd.f32 %v6387_v41, %v2565_v44  ;;  %v2602_v30 = vadd.f32 %v6392_v25, %v2566_v61  ;;  %v8299_v26 = vld [vmem:[#allocation126_spill] sm:$0xff] }
 0x373   : > { %v1922_v15 = vadd.f32 %v8297_v11, %v1827_v60  ;;  %v1942_v12 = vmul.f32 %v5335_v50, %v6291_v6  ;;  %3712 = vmatprep.mubr.bf16.mxu1 %v3192_v10  ;;  %v1943_v53 = vmul.f32 %v5335_v50, %v6296_v43  ;;  %v1978_v31 = vmul.f32 %v5339_v0, %v6296_v43 }
 0x374   : > { %v1923_v8 = vadd.f32 %v1907_v1, %v1828_v5  ;;  %v2058_v23 = vrot.slane %v8287_v4, 3  ;;  %v2637_v33 = vadd.f32 %v6396_v51, %v2601_v63  ;;  %v2638_v41 = vadd.f32 %v6410_v21, %v2602_v30  ;;  %v8300_v51 = vld [vmem:[#allocation127_spill] sm:$0xff]  ;;  %v8301_v1 = vld [vmem:[#allocation36_spill] sm:$0xff] }
 0x375   : > { %v1958_v25 = vadd.f32 %v1942_v12, %v1922_v15  ;;  %v7903_v35 = vrot.slane %v8291_v36, 3  ;;  %v1979_v6 = vmul.f32 %v5339_v0, %v6512_v14  ;;  %v2014_v13 = vmul.f32 %v5343_v57, %v6512_v14 }
 0x376   : > { %v1959_v2 = vadd.f32 %v1943_v53, %v1923_v8  ;;  %v8298_v46 = vrot.slane %v8253_v32, 3  ;;  %v2732_v44 = vadd.f32 %v8299_v26, %v2637_v33  ;;  %v2733_v61 = vadd.f32 %v8300_v51, %v2638_v41  ;;  %v8302_v8 = vld [vmem:[#allocation65_spill] sm:$0xff] }
 0x377   : > { %v1994_v21 = vadd.f32 %v1978_v31, %v1958_v25  ;;  %v2015_v60 = vmul.f32 %v5343_v57, %v6523_v39  ;;  %v6556_v5 = vsel %vm2042_vm3, %v2058_v23, %v7903_v35  ;;  %v2110_v63 = vmul.f32 %v8301_v1, %v6319_v19  ;;  %v8303_v33 = vld [vmem:[#allocation41_spill] sm:$0xff] }
 0x378   : > { %v6547_v62 = vsel %vm2042_vm3, %v8298_v46, %v2058_v23  ;;  %v1995_v10 = vadd.f32 %v1979_v6, %v1959_v2  ;;  %v2145_v30 = vmul.f32 %v5347_v59, %v6319_v19  ;;  %v2768_v11 = vadd.f32 %v6414_v58, %v2732_v44  ;;  %v8304_v6 = vld [vmem:[#allocation118_spill] sm:$0xff] }
 0x379   : > { %v2769_v15 = vadd.f32 %v6418_v18, %v2733_v61  ;;  %v2030_v12 = vadd.f32 %v2014_v13, %v1994_v21  ;;  %v2146_v53 = vmul.f32 %v5347_v59, %v8302_v8  ;;  %v2181_v41 = vmul.f32 %v8303_v33, %v8302_v8  ;;  %v8305_v46 = vld [vmem:[#allocation42_spill] sm:$0xff] }
 0x37a   : > { %v2031_v31 = vadd.f32 %v2015_v60, %v1995_v10  ;;  %v2261_v23 = vrot.slane %v8287_v4, 4  ;;  %v7902_v25 = vrot.slane %v8291_v36, 4  ;;  %v2804_v2 = vadd.f32 %v6422_v45, %v2768_v11  ;;  %v8308_v60 = vld [vmem:[#allocation43_spill] sm:$0xff] }
 0x37b   : > { %v2805_v19 = vadd.f32 %v6426_v9, %v2769_v15  ;;  %v2125_v58 = vadd.f32 %v8304_v6, %v2030_v12  ;;  %v2182_v18 = vmul.f32 %v8303_v33, %v6547_v62  ;;  %v2217_v26 = vmul.f32 %v8305_v46, %v6547_v62  ;;  %v8310_v15 = vld [vmem:[#allocation45_spill] sm:$0xff] }
 0x37c   : > { %v2126_v13 = vadd.f32 %v2110_v63, %v2031_v31  ;;  %v2218_v44 = vmul.f32 %v8305_v46, %v6556_v5  ;;  %v8306_v51 = vrot.slane %v8253_v32, 4  ;;  %v2840_v45 = vadd.f32 %v6430_v47, %v2804_v2  ;;  %v8311_v31 = vld [vmem:[#allocation61_spill] sm:$0xff]  ;;  %v8313_v2 = vld [vmem:[#allocation70_spill] sm:$0xff] }
 0x37d   : > { %v2841_v9 = vadd.f32 %v6438_v20, %v2805_v19  ;;  %v2161_v21 = vadd.f32 %v2145_v30, %v2125_v58  ;;  %v2313_v10 = vmul.f32 %v8308_v60, %v6343_v56  ;;  %v6591_v11 = vsel %vm2245_vm4, %v2261_v23, %v7902_v25  ;;  %v8314_v19 = vld [vmem:[#allocation46_spill] sm:$0xff] }
 0x37e   : > { %v6582_v61 = vsel %vm2245_vm4, %v8306_v51, %v2261_v23  ;;  %v2162_v63 = vadd.f32 %v2146_v53, %v2126_v13  ;;  %8309 = vst [vmem:[#allocation80_spill] sm:$0xff] %v6591_v11  ;;  %v2348_v12 = vmul.f32 %v8310_v15, %v6343_v56  ;;  %v2349_v6 = vmul.f32 %v8310_v15, %v8311_v31  ;;  %v8312_v51 = vld [vmem:[#allocation64_spill] sm:$0xff] }
 0x37f   : > { %8307 = vst [vmem:[#allocation77_spill] sm:$0xff] %v6582_v61  ;;  %v2935_v47 = vadd.f32 %v8312_v51, %v2840_v45  ;;  %v2936_v20 = vadd.f32 %v8313_v2, %v2841_v9  ;;  %v2197_v30 = vadd.f32 %v2181_v41, %v2161_v21  ;;  %v2384_v58 = vmul.f32 %v8314_v19, %v8311_v31  ;;  %v8315_v45 = vld [vmem:[#allocation44_spill] sm:$0xff]  ;;  %v8318_v51 = vld [vmem:[#allocation47_spill] sm:$0xff] }
 0x380   : > { %v2198_v53 = vadd.f32 %v2182_v18, %v2162_v63  ;;  %v2385_v13 = vmul.f32 %v8314_v19, %v6582_v61  ;;  %v2464_v23 = vrot.slane %v8287_v4, 5  ;;  %v7906_v25 = vrot.slane %v8291_v36, 5 }
 0x381   : > { %v2971_v56 = vadd.f32 %v6463_v54, %v2935_v47  ;;  %v2972_v35 = vadd.f32 %v6467_v40, %v2936_v20  ;;  %v2233_v27 = vadd.f32 %v2217_v26, %v2197_v30  ;;  %v2420_v9 = vmul.f32 %v8315_v45, %v6582_v61  ;;  %v8319_v26 = vld [vmem:[#allocation121_spill] sm:$0xff]  ;;  %v8320_v20 = vld [vmem:[#allocation48_spill] sm:$0xff] }
 0x382   : > { %v2234_v41 = vadd.f32 %v2218_v44, %v2198_v53  ;;  %v2421_v21 = vmul.f32 %v8315_v45, %v6591_v11  ;;  %v8316_v18 = vrot.slane %v8253_v32, 5  ;;  %v2516_v2 = vmul.f32 %v8318_v51, %v6369_v3  ;;  %v8322_v51 = vld [vmem:[#allocation49_spill] sm:$0xff] }
 0x383   : > { %v3007_v54 = vadd.f32 %v6471_v24, %v2971_v56  ;;  %v3008_v40 = vadd.f32 %v6475_v29, %v2972_v35  ;;  %v2328_v47 = vadd.f32 %v8319_v26, %v2233_v27  ;;  %v2551_v44 = vmul.f32 %v8320_v20, %v6369_v3 }
 0x384   : > { %v6614_v63 = vsel %vm2448_vm6, %v8316_v18, %v2464_v23  ;;  %v2329_v30 = vadd.f32 %v2313_v10, %v2234_v41  ;;  %v6626_v53 = vsel %vm2448_vm6, %v2464_v23, %v7906_v25  ;;  %v2552_v18 = vmul.f32 %v8320_v20, %v6374_v37  ;;  %v8323_v41 = vld [vmem:[#allocation63_spill] sm:$0xff] }
 0x385   : > { %8317 = vst [vmem:[#allocation81_spill] sm:$0xff] %v6614_v63  ;;  %8321 = vst [vmem:[#allocation105_spill] sm:$0xff] %v6626_v53  ;;  %v2587_v45 = vmul.f32 %v8322_v51, %v6374_v37  ;;  %v3043_v24 = vadd.f32 %v6482_v48, %v3007_v54  ;;  %v3044_v29 = vadd.f32 %v6518_v49, %v3008_v40  ;;  %v2667_v35 = vrot.slane %v8287_v4, 6  ;;  %v8326_v40 = vld [vmem:[#allocation50_spill] sm:$0xff] }
 0x386   : > { %v2364_v27 = vadd.f32 %v2348_v12, %v2328_v47  ;;  %v2365_v3 = vadd.f32 %v2349_v6, %v2329_v30  ;;  %v2588_v10 = vmul.f32 %v8322_v51, %v6614_v63  ;;  %v2623_v23 = vmul.f32 %v8229_v42, %v6614_v63 }
 0x387   : > { %v7911_v56 = vrot.slane %v8291_v36, 6  ;;  %v6641_v26 = vadd.f32 %v8323_v41, %v3043_v24  ;;  %v6644_v25 = vadd.f32 %v8323_v41, %v3044_v29  ;;  %v8324_v49 = vrot.slane %v8253_v32, 6 }
 0x388   : > { %v2400_v48 = vadd.f32 %v2384_v58, %v2364_v27  ;;  %v2401_v6 = vadd.f32 %v2385_v13, %v2365_v3  ;;  %v2624_v54 = vmul.f32 %v8229_v42, %v6626_v53  ;;  %v2719_v47 = vmul.f32 %v8326_v40, %v6401_v16  ;;  %v8328_v3 = vld [vmem:[#allocation60_spill] sm:$0xff]  ;;  %v8329_v42 = vld [vmem:[#allocation54_spill] sm:$0xff] }
 0x389   : > { %v6649_v12 = vsel %vm2651_vm7, %v8324_v49, %v2667_v35  ;;  %v2754_v30 = vmul.f32 %v8234_v28, %v6401_v16  ;;  %v3645_v24 = vmul.f32 -1.442695, %v6641_v26  ;;  %v3646_v29 = vmul.f32 -1.442695, %v6644_v25  ;;  %v8330_v16 = vld [vmem:[#allocation124_spill] sm:$0xff] }
 0x38a   : > { %8325 = vst [vmem:[#allocation69_spill] sm:$0xff] %v6649_v12  ;;  %v2436_v58 = vadd.f32 %v2420_v9, %v2400_v48  ;;  %v6662_v27 = vsel %vm2651_vm7, %v2667_v35, %v7911_v56  ;;  %v2437_v13 = vadd.f32 %v2421_v21, %v2401_v6  ;;  %v2755_v49 = vmul.f32 %v8234_v28, %v8328_v3  ;;  %v8331_v21 = vld [vmem:[#allocation55_spill] sm:$0xff] }
 0x38b   : > { %8327 = vst [vmem:[#allocation68_spill] sm:$0xff] %v6662_v27  ;;  %v2790_v40 = vmul.f32 %v8329_v42, %v8328_v3  ;;  %v2870_v51 = vrot.slane %v8287_v4, 7  ;;  %4062 = vpow2.f32 %v3645_v24  ;;  %v2791_v9 = vmul.f32 %v8329_v42, %v6649_v12  ;;  %v8334_v24 = vld [vmem:[#allocation66_spill] sm:$0xff]  ;;  %v8336_v42 = vld [vmem:[#allocation57_spill] sm:$0xff] }
 0x38c   : > { %v2531_v53 = vadd.f32 %v8330_v16, %v2436_v58  ;;  %4064 = vpow2.f32 %v3646_v29  ;;  %v2532_v35 = vadd.f32 %v2516_v2, %v2437_v13  ;;  %v2826_v6 = vmul.f32 %v8331_v21, %v6649_v12  ;;  %v8335_v58 = vld [vmem:[#allocation56_spill] sm:$0xff]  ;;  %v8344_v12 = vld [vmem:[#allocation79_spill] sm:$0xff] }
 0x38d   : > { %v8332_v56 = vrot.slane %v8253_v32, 7  ;;  %v2827_v4 = vmul.f32 %v8331_v21, %v6662_v27  ;;  %v2922_v16 = vmul.f32 %v8335_v58, %v8334_v24  ;;  %v6686_v48 = vmul.f32 %v8336_v42, %v8334_v24  ;;  %v8340_v24 = vld [vmem:[#allocation76_spill] sm:$0xff]  ;;  %v8343_v27 = vld [vmem:[#allocation83_spill] sm:$0xff] }
 0x38e   : > { %v2567_v3 = vadd.f32 %v2551_v44, %v2531_v53  ;;  %v2568_v2 = vadd.f32 %v2552_v18, %v2532_v35  ;;  %v8337_v29 = vrot.slane %v8291_v36, 7  ;;  %v6695_v32 = vmul.f32 %v8336_v42, %v6450_v17  ;;  %v8339_v44 = vld [vmem:[#allocation58_spill] sm:$0xff]  ;;  %v8342_v21 = vld [vmem:[#allocation84_spill] sm:$0xff] }
 0x38f   : > { %v6678_v28 = vsel %vm2854_vm8, %v8332_v56, %v2870_v51  ;;  %v6699_v53 = vmul.f32 %v8339_v44, %v6450_v17  ;;  %v8341_v18 = vld [vmem:[#allocation86_spill] sm:$0xff]  ;;  %v8345_v20 = vrot.slane %v8344_v12, 1  ;;  %v8346_v42 = vrot.slane %v8291_v36, 1  ;;  %v8347_v17 = vld [vmem:[#allocation59_spill] sm:$0xff] }
 0x390   : > { %8333 = vst [vmem:[#allocation71_spill] sm:$0xff] %v6678_v28  ;;  %v6691_v13 = vsel %vm2854_vm8, %v2870_v51, %v8337_v29  ;;  %v2603_v56 = vadd.f32 %v2587_v45, %v2567_v3  ;;  %v6703_v58 = vmul.f32 %v8339_v44, %v6678_v28  ;;  %v1606_v35 = vadd.f32 %v8341_v18, %v8340_v24  ;;  %v8348_v45 = vld [vmem:[#allocation34_spill] sm:$0xff] }
 0x391   : > { %8338 = vst [vmem:[#allocation74_spill] sm:$0xff] %v6691_v13  ;;  %v1607_v51 = vadd.f32 %v8343_v27, %v8342_v21  ;;  %v2604_v29 = vadd.f32 %v2588_v10, %v2568_v2  ;;  %v6714_v63 = vsel %vm1636_vm1, %v8346_v42, %v8345_v20  ;;  %v1705_v3 = vmul.f32 %v8348_v45, %v8347_v17  ;;  %v8349_v27 = vld [vmem:[#allocation85_spill] sm:$0xff] }
 0x392   : > { %v1706_v44 = vmul.f32 %v8348_v45, %v6459_v7  ;;  %v2639_v37 = vadd.f32 %v2623_v23, %v2603_v56  ;;  %v6722_v24 = vmul.f32 %v6226_v22, %v6678_v28  ;;  %v8350_v10 = vrot.slane %v8349_v27, 1  ;;  %v8352_v42 = vld [vmem:[#allocation37_spill] sm:$0xff]  ;;  %v8353_v56 = vld [vmem:[#allocation128_spill] sm:$0xff] }
 0x393   : > { %v8351_v21 = vmov %v8345_v20  ;;  %v1741_v20 = vmul.f32 %v8352_v42, %v6459_v7  ;;  %v2640_v18 = vadd.f32 %v2624_v54, %v2604_v29  ;;  %v1721_v17 = vadd.f32 %v1705_v3, %v1606_v35 }
 0x394   : > { %v6729_v2 = vsel %vm1636_vm1, %v8351_v21, %v8350_v10  ;;  %v1722_v19 = vadd.f32 %v1706_v44, %v1607_v51  ;;  %v1742_v23 = vmul.f32 %v8352_v42, %v6491_v52  ;;  %v2734_v45 = vadd.f32 %v8353_v56, %v2639_v37 }
 0x395   : > { %v1777_v28 = vmul.f32 %v5324_v38, %v6491_v52  ;;  %v1778_v11 = vmul.f32 %v5324_v38, %v6714_v63  ;;  %v1859_v10 = vrot.slane %v8344_v12, 2  ;;  %v2735_v21 = vadd.f32 %v2719_v47, %v2640_v18  ;;  %v4063_v54 = vpop.eup %4062 }
 0x396   : > { %v1757_v15 = vadd.f32 %v1741_v20, %v1721_v17  ;;  %v1758_v61 = vadd.f32 %v1742_v23, %v1722_v19  ;;  %v1813_v7 = vmul.f32 %v5331_v55, %v6714_v63  ;;  %v2770_v44 = vadd.f32 %v2754_v30, %v2734_v45  ;;  %v4065_v3 = vpop.eup %4064 }
 0x397   : > { %v1814_v35 = vmul.f32 %v5331_v55, %v6729_v2  ;;  %v8354_v37 = vrot.slane %v8291_v36, 2  ;;  %v7943_v29 = vrot.slane %v8349_v27, 2  ;;  %v3130_v56 = vadd.f32 1.0, %v4063_v54 }
 0x398   : > { %v2771_v47 = vadd.f32 %v2755_v49, %v2735_v21  ;;  %v1793_v20 = vadd.f32 %v1777_v28, %v1757_v15  ;;  %v1794_v19 = vadd.f32 %v1778_v11, %v1758_v61  ;;  %v3131_v18 = vadd.f32 1.0, %v4065_v3 }
 0x399   : > { %v6748_v51 = vsel %vm1839_vm2, %v8354_v37, %v1859_v10  ;;  %v2806_v17 = vadd.f32 %v2790_v40, %v2770_v44  ;;  %v1908_v30 = vmul.f32 %v8296_v34, %v6296_v43  ;;  %v1909_v45 = vmul.f32 %v8296_v34, %v6512_v14  ;;  %v8355_v40 = vld [vmem:[#allocation62_spill] sm:$0xff] }
 0x39a   : > { %4066 = vrcp.f32 %v3130_v56  ;;  %v2807_v23 = vadd.f32 %v2791_v9, %v2771_v47  ;;  %v1829_v55 = vadd.f32 %v1813_v7, %v1793_v20  ;;  %v1830_v37 = vadd.f32 %v1814_v35, %v1794_v19 }
 0x39b   : > { %4068 = vrcp.f32 %v3131_v18  ;;  %v2842_v38 = vadd.f32 %v2826_v6, %v2806_v17  ;;  %v6758_v49 = vsel %vm1839_vm2, %v1859_v10, %v7943_v29  ;;  %v1944_v28 = vmul.f32 %v5335_v50, %v6512_v14  ;;  %v8377_v29 = vld [vmem:[#allocation69_spill] sm:$0xff] }
 0x39c   : > { %v2843_v61 = vadd.f32 %v2827_v4, %v2807_v23  ;;  %v1924_v11 = vadd.f32 %v1908_v30, %v1829_v55  ;;  %v1925_v43 = vadd.f32 %v1909_v45, %v1830_v37  ;;  %v1945_v15 = vmul.f32 %v5335_v50, %v6523_v39 }
 0x39d   : > { %v2937_v9 = vadd.f32 %v8355_v40, %v2842_v38  ;;  %v1980_v21 = vmul.f32 %v5339_v0, %v6523_v39  ;;  %v1981_v6 = vmul.f32 %v5339_v0, %v6748_v51  ;;  %v2062_v10 = vrot.slane %v8344_v12, 3 }
 0x39e   : > { %v2938_v7 = vadd.f32 %v2922_v16, %v2843_v61  ;;  %v1960_v54 = vadd.f32 %v1944_v28, %v1924_v11  ;;  %v1961_v44 = vadd.f32 %v1945_v15, %v1925_v43  ;;  %v7942_v14 = vrot.slane %v8349_v27, 3 }
 0x39f   : > { %v2973_v55 = vadd.f32 %v6686_v48, %v2937_v9  ;;  %v3030_v4 = vmul.f32 %v6226_v22, %v6691_v13  ;;  %v2016_v38 = vmul.f32 %v5343_v57, %v6748_v51  ;;  %v2017_v35 = vmul.f32 %v5343_v57, %v6758_v49 }
 0x3a0   : > { %v2974_v3 = vadd.f32 %v6695_v32, %v2938_v7  ;;  %v1996_v56 = vadd.f32 %v1980_v21, %v1960_v54  ;;  %v1997_v47 = vadd.f32 %v1981_v6, %v1961_v44  ;;  %v8356_v16 = vrot.slane %v8291_v36, 3 }
 0x3a1   : > { %v3009_v48 = vadd.f32 %v6699_v53, %v2973_v55  ;;  %v6788_v19 = vsel %vm2042_vm3, %v2062_v10, %v7942_v14  ;;  %v2111_v18 = vmul.f32 %v8301_v1, %v8302_v8  ;;  %v2112_v32 = vmul.f32 %v8301_v1, %v6547_v62 }
 0x3a2   : > { %v6782_v20 = vsel %vm2042_vm3, %v8356_v16, %v2062_v10  ;;  %v3010_v17 = vadd.f32 %v6703_v58, %v2974_v3  ;;  %v2032_v30 = vadd.f32 %v2016_v38, %v1996_v56  ;;  %v2033_v45 = vadd.f32 %v2017_v35, %v1997_v47  ;;  %v8359_v16 = vld [vmem:[#allocation77_spill] sm:$0xff] }
 0x3a3   : > { %v2147_v23 = vmul.f32 %v5347_v59, %v6547_v62  ;;  %v3045_v53 = vadd.f32 %v6722_v24, %v3009_v48  ;;  %v2148_v37 = vmul.f32 %v5347_v59, %v6556_v5  ;;  %v2183_v28 = vmul.f32 %v8303_v33, %v6556_v5 }
 0x3a4   : > { %v2265_v8 = vrot.slane %v8344_v12, 4  ;;  %v4067_v61 = vpop.eup %4066  ;;  %v3046_v11 = vadd.f32 %v3030_v4, %v3010_v17  ;;  %v2127_v43 = vadd.f32 %v2111_v18, %v2032_v30  ;;  %v2128_v15 = vadd.f32 %v2112_v32, %v2033_v45  ;;  %v8360_v18 = vld [vmem:[#allocation45_spill] sm:$0xff]  ;;  %v8361_v30 = vld [vmem:[#allocation80_spill] sm:$0xff] }
 0x3a5   : > { %v2184_v58 = vmul.f32 %v8303_v33, %v6782_v20  ;;  %v4069_v40 = vpop.eup %4068  ;;  %v3178_v62 = vmul.f32 %v4067_v61, %v6641_v26  ;;  %v6807_v24 = vadd.f32 %v8323_v41, %v3045_v53  ;;  %v2219_v9 = vmul.f32 %v8305_v46, %v6782_v20 }
 0x3a6   : > { %v7941_v21 = vrot.slane %v8349_v27, 4  ;;  %v3179_v6 = vmul.f32 %v4069_v40, %v6644_v25  ;;  %v6814_v10 = vadd.f32 %v8323_v41, %v3046_v11  ;;  %v2163_v7 = vadd.f32 %v2147_v23, %v2127_v43  ;;  %v8362_v23 = vld [vmem:[#allocation46_spill] sm:$0xff]  ;;  %v8363_v43 = vld [vmem:[#allocation44_spill] sm:$0xff] }
 0x3a7   : > { %v2164_v54 = vadd.f32 %v2148_v37, %v2128_v15  ;;  %v3647_v44 = vmul.f32 -1.442695, %v6807_v24  ;;  %v2220_v26 = vmul.f32 %v8305_v46, %v6788_v19  ;;  %v8357_v55 = vrot.slane %v8291_v36, 4 }
 0x3a8   : > { %v2314_v38 = vmul.f32 %v8308_v60, %v8311_v31  ;;  %v3193_v35 = vpack.c.bf16 %v3179_v6, %v3178_v62  ;;  %v3648_v25 = vmul.f32 -1.442695, %v6814_v10  ;;  %v2199_v3 = vadd.f32 %v2183_v28, %v2163_v7  ;;  %v8367_v6 = vld [vmem:[#allocation67_spill] sm:$0xff] }
 0x3a9   : > { %v6822_v4 = vsel %vm2245_vm4, %v8357_v55, %v2265_v8  ;;  %v2200_v56 = vadd.f32 %v2184_v58, %v2164_v54  ;;  %4070 = vpow2.f32 %v3647_v44  ;;  %v6830_v47 = vsel %vm2245_vm4, %v2265_v8, %v7941_v21  ;;  %v8368_v7 = vld [vmem:[#allocation47_spill] sm:$0xff]  ;;  %v8369_v44 = vld [vmem:[#allocation81_spill] sm:$0xff]  ;;  %v8376_v21 = vld [vmem:[#allocation50_spill] sm:$0xff] }
 0x3aa   : > { %8358 = vst [vmem:[#allocation72_spill] sm:$0xff] %v6830_v47  ;;  %v2315_v48 = vmul.f32 %v8308_v60, %v8359_v16  ;;  %v2350_v32 = vmul.f32 %v8360_v18, %v8359_v16  ;;  %3713 = vmatmul.mubr.bf16.vlgmr.msra.gmra.mrb[0].mxu1 %v3193_v35  ;;  %4072 = vpow2.f32 %v3648_v25  ;;  %v2235_v31 = vadd.f32 %v2219_v9, %v2199_v3  ;;  %v8370_v35 = vld [vmem:[#allocation48_spill] sm:$0xff]  ;;  %v8371_v3 = vld [vmem:[#allocation105_spill] sm:$0xff] }
 0x3ab   : > { %v2236_v17 = vadd.f32 %v2220_v26, %v2200_v56  ;;  %v2351_v45 = vmul.f32 %v8360_v18, %v8361_v30  ;;  %v2386_v53 = vmul.f32 %v8362_v23, %v8361_v30  ;;  %v2387_v37 = vmul.f32 %v8362_v23, %v6822_v4  ;;  %v8372_v16 = vld [vmem:[#allocation49_spill] sm:$0xff] }
 0x3ac   : > { %v2468_v28 = vrot.slane %v8344_v12, 5  ;;  %v7940_v8 = vrot.slane %v8349_v27, 5  ;;  %v2330_v61 = vadd.f32 %v2314_v38, %v2235_v31  ;;  %v2422_v15 = vmul.f32 %v8363_v43, %v6822_v4 }
 0x3ad   : > { %v2331_v11 = vadd.f32 %v2315_v48, %v2236_v17  ;;  %v2423_v58 = vmul.f32 %v8363_v43, %v6830_v47  ;;  %v8364_v40 = vrot.slane %v8291_v36, 5  ;;  %v2517_v54 = vmul.f32 %v8368_v7, %v8367_v6  ;;  %v8383_v43 = vld [vmem:[#allocation75_spill] sm:$0xff] }
 0x3ae   : > { %v6856_v9 = vsel %vm2448_vm6, %v2468_v28, %v7940_v8  ;;  %v2518_v26 = vmul.f32 %v8368_v7, %v8369_v44  ;;  %v2366_v55 = vadd.f32 %v2350_v32, %v2330_v61  ;;  %v2553_v25 = vmul.f32 %v8370_v35, %v8369_v44  ;;  %v8373_v32 = vld [vmem:[#allocation52_spill] sm:$0xff]  ;;  %v8385_v47 = vld [vmem:[#allocation71_spill] sm:$0xff] }
 0x3af   : > { %v6851_v62 = vsel %vm2448_vm6, %v8364_v40, %v2468_v28  ;;  %8366 = vst [vmem:[#allocation78_spill] sm:$0xff] %v6856_v9  ;;  %v2367_v38 = vadd.f32 %v2351_v45, %v2331_v11  ;;  %v2554_v56 = vmul.f32 %v8370_v35, %v8371_v3  ;;  %v2589_v48 = vmul.f32 %v8372_v16, %v8371_v3  ;;  %v8375_v8 = vld [vmem:[#allocation60_spill] sm:$0xff] }
 0x3b0   : > { %8365 = vst [vmem:[#allocation73_spill] sm:$0xff] %v6851_v62  ;;  %v2590_v31 = vmul.f32 %v8372_v16, %v6851_v62  ;;  %v2671_v17 = vrot.slane %v8344_v12, 6  ;;  %v7953_v28 = vrot.slane %v8349_v27, 6  ;;  %v2402_v40 = vadd.f32 %v2386_v53, %v2366_v55  ;;  %v8378_v53 = vld [vmem:[#allocation53_spill] sm:$0xff] }
 0x3b1   : > { %v2403_v6 = vadd.f32 %v2387_v37, %v2367_v38  ;;  %v2625_v45 = vmul.f32 %v8373_v32, %v6851_v62  ;;  %v2626_v61 = vmul.f32 %v8373_v32, %v6856_v9  ;;  %v8374_v11 = vrot.slane %v8291_v36, 6  ;;  %v8380_v9 = vld [vmem:[#allocation68_spill] sm:$0xff]  ;;  %v8381_v62 = vld [vmem:[#allocation54_spill] sm:$0xff] }
 0x3b2   : > { %v2720_v14 = vmul.f32 %v8376_v21, %v8375_v8  ;;  %v2721_v16 = vmul.f32 %v8376_v21, %v8377_v29  ;;  %v2756_v37 = vmul.f32 %v8378_v53, %v8377_v29  ;;  %v2438_v55 = vadd.f32 %v2422_v15, %v2402_v40 }
 0x3b3   : > { %v6879_v44 = vsel %vm2651_vm7, %v8374_v11, %v2671_v17  ;;  %v2439_v38 = vadd.f32 %v2423_v58, %v2403_v6  ;;  %v6890_v32 = vsel %vm2651_vm7, %v2671_v17, %v7953_v28  ;;  %v2757_v11 = vmul.f32 %v8378_v53, %v8380_v9  ;;  %v4071_v35 = vpop.eup %4070  ;;  %v8382_v17 = vld [vmem:[#allocation55_spill] sm:$0xff] }
 0x3b4   : > { %8379 = vst [vmem:[#allocation123_spill] sm:$0xff] %v6890_v32  ;;  %v2792_v8 = vmul.f32 %v8381_v62, %v8380_v9  ;;  %v2793_v21 = vmul.f32 %v8381_v62, %v6879_v44  ;;  %v2874_v7 = vrot.slane %v8344_v12, 7  ;;  %v4073_v15 = vpop.eup %4072  ;;  %v3132_v58 = vadd.f32 1.0, %v4071_v35  ;;  %v8384_v9 = vld [vmem:[#allocation56_spill] sm:$0xff] }
 0x3b5   : > { %v2533_v40 = vadd.f32 %v2517_v54, %v2438_v55  ;;  %v2534_v6 = vadd.f32 %v2518_v26, %v2439_v38  ;;  %v2828_v28 = vmul.f32 %v8382_v17, %v6879_v44  ;;  %v3133_v3 = vadd.f32 1.0, %v4073_v15  ;;  %v8389_v38 = vld [vmem:[#allocation57_spill] sm:$0xff] }
 0x3b6   : > { %v2829_v53 = vmul.f32 %v8382_v17, %v6890_v32  ;;  %v2923_v23 = vmul.f32 %v8384_v9, %v8383_v43  ;;  %v2924_v62 = vmul.f32 %v8384_v9, %v8385_v47  ;;  %4074 = vrcp.f32 %v3132_v58 }
 0x3b7   : > { %v2569_v12 = vadd.f32 %v2553_v25, %v2533_v40  ;;  %v2570_v29 = vadd.f32 %v2554_v56, %v2534_v6  ;;  %v8386_v35 = vrot.slane %v8291_v36, 7  ;;  %4076 = vrcp.f32 %v3133_v3  ;;  %v8390_v56 = vld [vmem:[#allocation58_spill] sm:$0xff]  ;;  %v8391_v40 = vld [vmem:[#allocation87_spill] sm:$0xff] }
 0x3b8   : > { %v8388_v26 = vrot.slane %v8349_v27, 7  ;;  %v2959_v43 = vmul.f32 %v8389_v38, %v8385_v47  ;;  %v2960_v15 = vmul.f32 %v8389_v38, %v6691_v13  ;;  %v6924_v36 = vmul.f32 %v8390_v56, %v6691_v13  ;;  %v8392_v6 = vld [vmem:[#allocation94_spill] sm:$0xff] }
 0x3b9   : > { %v6911_v54 = vsel %vm2854_vm8, %v8386_v35, %v2874_v7  ;;  %v2605_v58 = vadd.f32 %v2589_v48, %v2569_v12  ;;  %v2606_v25 = vadd.f32 %v2590_v31, %v2570_v29  ;;  %v1608_v3 = vadd.f32 %v8392_v6, %v8391_v40  ;;  %v8395_v47 = vld [vmem:[#allocation34_spill] sm:$0xff]  ;;  %v8396_v40 = vld [vmem:[#allocation88_spill] sm:$0xff] }
 0x3ba   : > { %8387 = vst [vmem:[#allocation82_spill] sm:$0xff] %v6911_v54  ;;  %v6916_v55 = vsel %vm2854_vm8, %v2874_v7, %v8388_v26  ;;  %v6930_v35 = vmul.f32 %v8390_v56, %v6911_v54  ;;  %v8393_v7 = vld [vmem:[#allocation89_spill] sm:$0xff]  ;;  %v8394_v26 = vld [vmem:[#allocation90_spill] sm:$0xff]  ;;  %v1707_v17 = vmul.f32 %v8395_v47, %v6491_v52  ;;  %v1708_v48 = vmul.f32 %v8395_v47, %v6714_v63 }
 0x3bb   : > { %v1609_v9 = vadd.f32 %v8394_v26, %v8393_v7  ;;  %v2641_v31 = vadd.f32 %v2625_v45, %v2605_v58  ;;  %v2642_v29 = vadd.f32 %v2626_v61, %v2606_v25  ;;  %v6940_v12 = vmul.f32 %v6226_v22, %v6911_v54  ;;  %v8399_v47 = vld [vmem:[#allocation38_spill] sm:$0xff] }
 0x3bc   : > { %v8397_v6 = vrot.slane %v8396_v40, 1  ;;  %v8398_v56 = vrot.slane %v8349_v27, 1  ;;  %v1723_v7 = vadd.f32 %v1707_v17, %v1608_v3  ;;  %v1743_v52 = vmul.f32 %v8352_v42, %v6714_v63 }
 0x3bd   : > { %v1724_v26 = vadd.f32 %v1708_v48, %v1609_v9  ;;  %v1744_v45 = vmul.f32 %v8352_v42, %v6729_v2  ;;  %v2736_v61 = vadd.f32 %v2720_v14, %v2641_v31  ;;  %v2737_v58 = vadd.f32 %v2721_v16, %v2642_v29  ;;  %v8400_v9 = vld [vmem:[#allocation39_spill] sm:$0xff]  ;;  %v8401_v48 = vld [vmem:[#allocation96_spill] sm:$0xff] }
 0x3be   : > { %v6947_v38 = vsel %vm1636_vm1, %v8398_v56, %v8397_v6  ;;  %v3032_v25 = vmul.f32 %v6226_v22, %v6916_v55  ;;  %v1779_v54 = vmul.f32 %v8399_v47, %v6729_v2  ;;  %v1759_v13 = vadd.f32 %v1743_v52, %v1723_v7 }
 0x3bf   : > { %v1760_v32 = vadd.f32 %v1744_v45, %v1724_v26  ;;  %v1780_v17 = vmul.f32 %v8399_v47, %v6947_v38  ;;  %v1815_v56 = vmul.f32 %v8400_v9, %v6947_v38  ;;  %v2772_v63 = vadd.f32 %v2756_v37, %v2736_v61 }
 0x3c0   : > { %v2773_v3 = vadd.f32 %v2757_v11, %v2737_v58  ;;  %v1816_v14 = vmul.f32 %v8400_v9, %v8401_v48  ;;  %v8402_v16 = vrot.slane %v8396_v40, 2  ;;  %v8403_v31 = vrot.slane %v8349_v27, 2  ;;  %v4075_v37 = vpop.eup %4074 }
 0x3c1   : > { %v1795_v6 = vadd.f32 %v1779_v54, %v1759_v13  ;;  %v1796_v7 = vadd.f32 %v1780_v17, %v1760_v32  ;;  %v1910_v26 = vmul.f32 %v8296_v34, %v6523_v39  ;;  %v1911_v52 = vmul.f32 %v8296_v34, %v6748_v51  ;;  %v4077_v9 = vpop.eup %4076 }
 0x3c2   : > { %v6968_v29 = vsel %vm1839_vm2, %v8403_v31, %v8402_v16  ;;  %v2808_v11 = vadd.f32 %v2792_v8, %v2772_v63  ;;  %v2809_v45 = vadd.f32 %v2793_v21, %v2773_v3  ;;  %v1946_v61 = vmul.f32 %v5335_v50, %v6748_v51  ;;  %v8404_v3 = vld [vmem:[#allocation92_spill] sm:$0xff] }
 0x3c3   : > { %v1947_v58 = vmul.f32 %v5335_v50, %v6758_v49  ;;  %v3180_v16 = vmul.f32 %v4075_v37, %v6807_v24  ;;  %v1831_v13 = vadd.f32 %v1815_v56, %v1795_v6  ;;  %v1832_v32 = vadd.f32 %v1816_v14, %v1796_v7 }
 0x3c4   : > { %v1982_v39 = vmul.f32 %v5339_v0, %v6758_v49  ;;  %v3181_v54 = vmul.f32 %v4077_v9, %v6814_v10  ;;  %v2844_v17 = vadd.f32 %v2828_v28, %v2808_v11  ;;  %v2845_v31 = vadd.f32 %v2829_v53, %v2809_v45  ;;  %v8405_v10 = vld [vmem:[#allocation97_spill] sm:$0xff] }
 0x3c5   : > { %v2066_v21 = vrot.slane %v8396_v40, 3  ;;  %v1926_v8 = vadd.f32 %v1910_v26, %v1831_v13  ;;  %v1927_v63 = vadd.f32 %v1911_v52, %v1832_v32  ;;  %v1983_v51 = vmul.f32 %v5339_v0, %v6968_v29 }
 0x3c6   : > { %v7978_v50 = vrot.slane %v8404_v3, 3  ;;  %v3194_v34 = vpack.c.bf16 %v3181_v54, %v3180_v16  ;;  %v2939_v24 = vadd.f32 %v2923_v23, %v2844_v17  ;;  %v2940_v56 = vadd.f32 %v2924_v62, %v2845_v31 }
 0x3c7   : > { %v2018_v14 = vmul.f32 %v5343_v57, %v6968_v29  ;;  %v1962_v6 = vadd.f32 %v1946_v61, %v1926_v8  ;;  %v1963_v7 = vadd.f32 %v1947_v58, %v1927_v63  ;;  %v2019_v28 = vmul.f32 %v5343_v57, %v8405_v10 }
 0x3c8   : > { %v6993_v53 = vsel %vm2042_vm3, %v2066_v21, %v7978_v50  ;;  %3716 = vmatprep.mubr.bf16.mxu1 %v3194_v34  ;;  %v2975_v9 = vadd.f32 %v2959_v43, %v2939_v24  ;;  %v2976_v26 = vadd.f32 %v2960_v15, %v2940_v56  ;;  %v8406_v52 = vrot.slane %v8349_v27, 3 }
 0x3c9   : > { %v2113_v62 = vmul.f32 %v8301_v1, %v6556_v5  ;;  %v1998_v37 = vadd.f32 %v1982_v39, %v1962_v6  ;;  %v1999_v11 = vadd.f32 %v1983_v51, %v1963_v7  ;;  %v2114_v45 = vmul.f32 %v8301_v1, %v6782_v20 }
 0x3ca   : > { %v6998_v23 = vsel %vm2042_vm3, %v8406_v52, %v2066_v21  ;;  %v2149_v61 = vmul.f32 %v5347_v59, %v6782_v20  ;;  %v3011_v34 = vadd.f32 %v6924_v36, %v2975_v9  ;;  %v3012_v43 = vadd.f32 %v6930_v35, %v2976_v26  ;;  %v8411_v9 = vld [vmem:[#allocation46_spill] sm:$0xff] }
 0x3cb   : > { %v2150_v15 = vmul.f32 %v5347_v59, %v6788_v19  ;;  %v2185_v58 = vmul.f32 %v8303_v33, %v6788_v19  ;;  %v2034_v16 = vadd.f32 %v2018_v14, %v1998_v37  ;;  %v2035_v5 = vadd.f32 %v2019_v28, %v1999_v11  ;;  %v8410_v28 = vld [vmem:[#allocation72_spill] sm:$0xff] }
 0x3cc   : > { %v2269_v13 = vrot.slane %v8396_v40, 4  ;;  %v7977_v32 = vrot.slane %v8404_v3, 4  ;;  %v3047_v39 = vadd.f32 %v6940_v12, %v3011_v34  ;;  %v3048_v54 = vadd.f32 %v3032_v25, %v3012_v43 }
 0x3cd   : > { %v2186_v20 = vmul.f32 %v8303_v33, %v6998_v23  ;;  %v2221_v36 = vmul.f32 %v8305_v46, %v6998_v23  ;;  %v2129_v35 = vadd.f32 %v2113_v62, %v2034_v16  ;;  %v2130_v17 = vadd.f32 %v2114_v45, %v2035_v5  ;;  %v8412_v45 = vld [vmem:[#allocation44_spill] sm:$0xff] }
 0x3ce   : > { %v2222_v31 = vmul.f32 %v8305_v46, %v6993_v53  ;;  %v7024_v21 = vsel %vm2245_vm4, %v2269_v13, %v7977_v32  ;;  %v7027_v8 = vadd.f32 %v8323_v41, %v3047_v39  ;;  %v7030_v12 = vadd.f32 %v8323_v41, %v3048_v54  ;;  %v8417_v39 = vld [vmem:[#allocation47_spill] sm:$0xff] }
 0x3cf   : > { %8407 = vst [vmem:[#allocation126_spill] sm:$0xff] %v7024_v21  ;;  %v2316_v25 = vmul.f32 %v8308_v60, %v8361_v30  ;;  %v2317_v63 = vmul.f32 %v8308_v60, %v6822_v4  ;;  %v2165_v51 = vadd.f32 %v2149_v61, %v2129_v35  ;;  %v2166_v24 = vadd.f32 %v2150_v15, %v2130_v17  ;;  %v8419_v17 = vld [vmem:[#allocation48_spill] sm:$0xff] }
 0x3d0   : > { %v8408_v56 = vrot.slane %v8349_v27, 4  ;;  %v2352_v6 = vmul.f32 %v8360_v18, %v6822_v4  ;;  %v3649_v7 = vmul.f32 -1.442695, %v7027_v8  ;;  %v3650_v41 = vmul.f32 -1.442695, %v7030_v12 }
 0x3d1   : > { %v2353_v30 = vmul.f32 %v8360_v18, %v8410_v28  ;;  %v2388_v26 = vmul.f32 %v8411_v9, %v8410_v28  ;;  %v2201_v52 = vadd.f32 %v2185_v58, %v2165_v51  ;;  %v2202_v62 = vadd.f32 %v2186_v20, %v2166_v24  ;;  %v8418_v20 = vld [vmem:[#allocation73_spill] sm:$0xff]  ;;  %v8420_v24 = vld [vmem:[#allocation78_spill] sm:$0xff]  ;;  %v8442_v18 = vld [vmem:[#allocation100_spill] sm:$0xff] }
 0x3d2   : > { %v7039_v14 = vsel %vm2245_vm4, %v8408_v56, %v2269_v13  ;;  %v2472_v37 = vrot.slane %v8396_v40, 5  ;;  %v7976_v11 = vrot.slane %v8404_v3, 5  ;;  %4078 = vpow2.f32 %v3649_v7  ;;  %v8416_v13 = vld [vmem:[#allocation105_spill] sm:$0xff] }
 0x3d3   : > { %8409 = vst [vmem:[#allocation127_spill] sm:$0xff] %v7039_v14  ;;  %v2389_v4 = vmul.f32 %v8411_v9, %v7039_v14  ;;  %v2424_v61 = vmul.f32 %v8412_v45, %v7039_v14  ;;  %v2425_v34 = vmul.f32 %v8412_v45, %v7024_v21  ;;  %4080 = vpow2.f32 %v3650_v41  ;;  %v8421_v7 = vld [vmem:[#allocation49_spill] sm:$0xff]  ;;  %v8439_v45 = vld [vmem:[#allocation91_spill] sm:$0xff] }
 0x3d4   : > { %v2237_v43 = vadd.f32 %v2221_v36, %v2201_v52  ;;  %v2238_v15 = vadd.f32 %v2222_v31, %v2202_v62  ;;  %v8413_v58 = vrot.slane %v8349_v27, 5  ;;  %v7065_v5 = vsel %vm2448_vm6, %v2472_v37, %v7976_v11  ;;  %v8422_v62 = vld [vmem:[#allocation52_spill] sm:$0xff]  ;;  %v8441_v21 = vld [vmem:[#allocation95_spill] sm:$0xff] }
 0x3d5   : > { %8415 = vst [vmem:[#allocation65_spill] sm:$0xff] %v7065_v5  ;;  %v2519_v54 = vmul.f32 %v8417_v39, %v8416_v13  ;;  %v2520_v35 = vmul.f32 %v8417_v39, %v8418_v20  ;;  %v2555_v36 = vmul.f32 %v8419_v17, %v8418_v20  ;;  %v2556_v56 = vmul.f32 %v8419_v17, %v8420_v24 }
 0x3d6   : > { %v7060_v16 = vsel %vm2448_vm6, %v8413_v58, %v2472_v37  ;;  %v2332_v31 = vadd.f32 %v2316_v25, %v2237_v43  ;;  %v2333_v51 = vadd.f32 %v2317_v63, %v2238_v15  ;;  %v2591_v41 = vmul.f32 %v8421_v7, %v8420_v24  ;;  %v8423_v63 = vld [vmem:[#allocation68_spill] sm:$0xff]  ;;  %v8424_v43 = vld [vmem:[#allocation50_spill] sm:$0xff] }
 0x3d7   : > { %8414 = vst [vmem:[#allocation36_spill] sm:$0xff] %v7060_v16  ;;  %v2592_v52 = vmul.f32 %v8421_v7, %v7060_v16  ;;  %v2627_v37 = vmul.f32 %v8422_v62, %v7060_v16  ;;  %v2675_v58 = vrot.slane %v8396_v40, 6  ;;  %v7986_v13 = vrot.slane %v8404_v3, 6 }
 0x3d8   : > { %v2368_v11 = vadd.f32 %v2352_v6, %v2332_v31  ;;  %v2369_v20 = vadd.f32 %v2353_v30, %v2333_v51  ;;  %v2628_v25 = vmul.f32 %v8422_v62, %v7065_v5  ;;  %v2722_v15 = vmul.f32 %v8424_v43, %v8423_v63  ;;  %v8428_v62 = vld [vmem:[#allocation53_spill] sm:$0xff]  ;;  %v8429_v5 = vld [vmem:[#allocation123_spill] sm:$0xff] }
 0x3d9   : > { %v8425_v32 = vrot.slane %v8349_v27, 6  ;;  %v7095_v7 = vsel %vm2651_vm7, %v2675_v58, %v7986_v13  ;;  %v2723_v6 = vmul.f32 %v8424_v43, %v6879_v44  ;;  %v2878_v30 = vrot.slane %v8396_v40, 7  ;;  %v8431_v13 = vld [vmem:[#allocation55_spill] sm:$0xff] }
 0x3da   : > { %8427 = vst [vmem:[#allocation118_spill] sm:$0xff] %v7095_v7  ;;  %v2404_v31 = vadd.f32 %v2388_v26, %v2368_v11  ;;  %v2405_v51 = vadd.f32 %v2389_v4, %v2369_v20  ;;  %v2758_v63 = vmul.f32 %v8428_v62, %v6879_v44  ;;  %v2759_v17 = vmul.f32 %v8428_v62, %v8429_v5 }
 0x3db   : > { %v7090_v50 = vsel %vm2651_vm7, %v8425_v32, %v2675_v58  ;;  %v8430_v32 = vld [vmem:[#allocation54_spill] sm:$0xff]  ;;  %v7997_v40 = vrot.slane %v8404_v3, 7  ;;  %v7119_v44 = vmul.f32 %v8431_v13, %v7095_v7  ;;  %v8432_v4 = vrot.slane %v8349_v27, 7 }
 0x3dc   : > { %8426 = vst [vmem:[#allocation41_spill] sm:$0xff] %v7090_v50  ;;  %v7106_v16 = vmul.f32 %v8430_v32, %v8429_v5  ;;  %v7110_v58 = vmul.f32 %v8430_v32, %v7090_v50  ;;  %v7114_v43 = vmul.f32 %v8431_v13, %v7090_v50  ;;  %v2440_v26 = vadd.f32 %v2424_v61, %v2404_v31  ;;  %v4079_v62 = vpop.eup %4078  ;;  %v8434_v50 = vld [vmem:[#allocation74_spill] sm:$0xff]  ;;  %v8435_v5 = vld [vmem:[#allocation56_spill] sm:$0xff]  ;;  %v8437_v31 = vld [vmem:[#allocation57_spill] sm:$0xff] }
 0x3dd   : > { %v2441_v11 = vadd.f32 %v2425_v34, %v2405_v51  ;;  %v7124_v20 = vsel %vm2854_vm8, %v8432_v4, %v2878_v30  ;;  %v7129_v32 = vsel %vm2854_vm8, %v2878_v30, %v7997_v40  ;;  %v7133_v39 = vmul.f32 %v8435_v5, %v8434_v50  ;;  %v8436_v61 = vld [vmem:[#allocation82_spill] sm:$0xff]  ;;  %v4081_v51 = vpop.eup %4080 }
 0x3de   : > { %8433 = vst [vmem:[#allocation42_spill] sm:$0xff] %v7129_v32  ;;  %v7137_v34 = vmul.f32 %v8435_v5, %v8436_v61  ;;  %v7141_v27 = vmul.f32 %v8437_v31, %v8436_v61  ;;  %v3134_v4 = vadd.f32 1.0, %v4079_v62  ;;  %v2535_v13 = vadd.f32 %v2519_v54, %v2440_v26  ;;  %v8438_v50 = vld [vmem:[#allocation58_spill] sm:$0xff]  ;;  %v8440_v5 = vld [vmem:[#allocation93_spill] sm:$0xff] }
 0x3df   : > { %v2536_v7 = vadd.f32 %v2520_v35, %v2441_v11  ;;  %v7145_v30 = vmul.f32 %v8437_v31, %v6916_v55  ;;  %v3135_v40 = vadd.f32 1.0, %v4081_v51  ;;  %v7149_v24 = vmul.f32 %v8438_v50, %v6916_v55  ;;  %v8443_v54 = vld [vmem:[#allocation34_spill] sm:$0xff] }
 0x3e0   : > { %v1610_v9 = vadd.f32 %v8440_v5, %v8439_v45  ;;  %v1611_v61 = vadd.f32 %v8442_v18, %v8441_v21  ;;  %4082 = vrcp.f32 %v3134_v4  ;;  %v2571_v14 = vadd.f32 %v2555_v36, %v2535_v13 }
 0x3e1   : > { %v2572_v62 = vadd.f32 %v2556_v56, %v2536_v7  ;;  %v1709_v35 = vmul.f32 %v8443_v54, %v6729_v2  ;;  %4084 = vrcp.f32 %v3135_v40  ;;  %v7159_v26 = vmul.f32 %v8438_v50, %v7124_v20 }
 0x3e2   : > { %v7163_v11 = vmul.f32 %v6226_v22, %v7124_v20  ;;  %v1710_v45 = vmul.f32 %v8443_v54, %v6947_v38  ;;  %v2607_v5 = vadd.f32 %v2591_v41, %v2571_v14  ;;  %v1745_v36 = vmul.f32 %v8352_v42, %v6947_v38  ;;  %v8444_v14 = vld [vmem:[#allocation101_spill] sm:$0xff]  ;;  %v8445_v41 = vld [vmem:[#allocation39_spill] sm:$0xff] }
 0x3e3   : > { %v2608_v18 = vadd.f32 %v2592_v52, %v2572_v62  ;;  %v1725_v21 = vadd.f32 %v1709_v35, %v1610_v9  ;;  %v7171_v2 = vmul.f32 %v6226_v22, %v7129_v32  ;;  %v1746_v7 = vmul.f32 %v8352_v42, %v8401_v48  ;;  %v8446_v62 = vld [vmem:[#allocation35_spill] sm:$0xff] }
 0x3e4   : > { %v1726_v56 = vadd.f32 %v1710_v45, %v1611_v61  ;;  %v1781_v13 = vmul.f32 %v8399_v47, %v8401_v48  ;;  %v2643_v40 = vadd.f32 %v2627_v37, %v2607_v5  ;;  %v1817_v9 = vmul.f32 %v8445_v41, %v8444_v14  ;;  %v8447_v48 = vld [vmem:[#allocation40_spill] sm:$0xff] }
 0x3e5   : > { %v2644_v51 = vadd.f32 %v2628_v25, %v2608_v18  ;;  %v1761_v4 = vadd.f32 %v1745_v36, %v1725_v21  ;;  %v1782_v38 = vmul.f32 %v8399_v47, %v8444_v14  ;;  %v1912_v54 = vmul.f32 %v8446_v62, %v6758_v49  ;;  %v8448_v47 = vld [vmem:[#allocation98_spill] sm:$0xff] }
 0x3e6   : > { %v1762_v52 = vadd.f32 %v1746_v7, %v1726_v56  ;;  %v1913_v61 = vmul.f32 %v8446_v62, %v6968_v29  ;;  %v2738_v42 = vadd.f32 %v2722_v15, %v2643_v40  ;;  %v1948_v37 = vmul.f32 %v8447_v48, %v6968_v29  ;;  %v8451_v7 = vld [vmem:[#allocation103_spill] sm:$0xff] }
 0x3e7   : > { %v2739_v35 = vadd.f32 %v2723_v6, %v2644_v51  ;;  %v1797_v45 = vadd.f32 %v1781_v13, %v1761_v4  ;;  %v1949_v5 = vmul.f32 %v8447_v48, %v8405_v10  ;;  %v1984_v18 = vmul.f32 %v5339_v0, %v8405_v10  ;;  %v8452_v13 = vld [vmem:[#allocation109_spill] sm:$0xff]  ;;  %v8453_v4 = vld [vmem:[#allocation106_spill] sm:$0xff] }
 0x3e8   : > { %v1798_v25 = vadd.f32 %v1782_v38, %v1762_v52  ;;  %v8449_v21 = vrot.slane %v8448_v47, 3  ;;  %v8450_v49 = vrot.slane %v8404_v3, 3  ;;  %v2774_v15 = vadd.f32 %v2758_v63, %v2738_v42 }
 0x3e9   : > { %v2775_v6 = vadd.f32 %v2759_v17, %v2739_v35  ;;  %v1833_v56 = vadd.f32 %v1817_v9, %v1797_v45  ;;  %v1985_v29 = vmul.f32 %v5339_v0, %v8451_v7  ;;  %v2020_v51 = vmul.f32 %v5343_v57, %v8451_v7  ;;  %v8457_v7 = vld [vmem:[#allocation113_spill] sm:$0xff] }
 0x3ea   : > { %v7196_v36 = vsel %vm2042_vm3, %v8450_v49, %v8449_v21  ;;  %v1834_v40 = vadd.f32 %v8452_v13, %v1798_v25  ;;  %v2021_v10 = vmul.f32 %v5343_v57, %v8453_v4  ;;  %v2115_v14 = vmul.f32 %v8301_v1, %v6788_v19  ;;  %v4083_v41 = vpop.eup %4082  ;;  %v8458_v4 = vld [vmem:[#allocation127_spill] sm:$0xff] }
 0x3eb   : > { %v2810_v52 = vadd.f32 %v7106_v16, %v2774_v15  ;;  %v2811_v17 = vadd.f32 %v7110_v58, %v2775_v6  ;;  %v1928_v63 = vadd.f32 %v1912_v54, %v1833_v56  ;;  %v2116_v9 = vmul.f32 %v8301_v1, %v6998_v23  ;;  %v4085_v38 = vpop.eup %4084 }
 0x3ec   : > { %v3182_v62 = vmul.f32 %v4083_v41, %v7027_v8  ;;  %v1929_v42 = vadd.f32 %v1913_v61, %v1834_v40  ;;  %v2151_v35 = vmul.f32 %v5347_v59, %v6998_v23  ;;  %v2152_v45 = vmul.f32 %v5347_v59, %v6993_v53 }
 0x3ed   : > { %v3183_v19 = vmul.f32 %v4085_v38, %v7030_v12  ;;  %v2846_v16 = vadd.f32 %v7114_v43, %v2810_v52  ;;  %v2847_v58 = vadd.f32 %v7119_v44, %v2811_v17  ;;  %v1964_v54 = vadd.f32 %v1948_v37, %v1928_v63  ;;  %v8459_v52 = vld [vmem:[#allocation45_spill] sm:$0xff] }
 0x3ee   : > { %v1965_v48 = vadd.f32 %v1949_v5, %v1929_v42  ;;  %v2187_v25 = vmul.f32 %v8303_v33, %v6993_v53  ;;  %v2188_v8 = vmul.f32 %v8303_v33, %v7196_v36  ;;  %v2273_v61 = vrot.slane %v8448_v47, 4  ;;  %v8455_v5 = vld [vmem:[#allocation99_spill] sm:$0xff] }
 0x3ef   : > { %v3195_v23 = vpack.c.bf16 %v3183_v19, %v3182_v62  ;;  %v2941_v21 = vadd.f32 %v7133_v39, %v2846_v16  ;;  %v2942_v49 = vadd.f32 %v7137_v34, %v2847_v58  ;;  %v2000_v12 = vadd.f32 %v1984_v18, %v1964_v54 }
 0x3f0   : > { %v2001_v15 = vadd.f32 %v1985_v29, %v1965_v48  ;;  %v2223_v43 = vmul.f32 %v8305_v46, %v7196_v36  ;;  %v8454_v44 = vrot.slane %v8404_v3, 4  ;;  %v8456_v6 = vrot.slane %v8455_v5, 4 }
 0x3f1   : > { %3717 = vmatmul.mubr.bf16.gmra.mrb[4].mxu1 %v3195_v23  ;;  %v2977_v39 = vadd.f32 %v7141_v27, %v2941_v21  ;;  %v2978_v34 = vadd.f32 %v7145_v30, %v2942_v49  ;;  %v2036_v18 = vadd.f32 %v2020_v51, %v2000_v12  ;;  %v2224_v29 = vmul.f32 %v8305_v46, %v8457_v7  ;;  %v8460_v30 = vld [vmem:[#allocation126_spill] sm:$0xff] }
 0x3f2   : > { %v7231_v37 = vsel %vm2245_vm4, %v8454_v44, %v2273_v61  ;;  %v7236_v56 = vsel %vm2245_vm4, %v2273_v61, %v8456_v6  ;;  %v2037_v13 = vadd.f32 %v2021_v10, %v2001_v15  ;;  %v2318_v40 = vmul.f32 %v8308_v60, %v8410_v28  ;;  %v8461_v10 = vld [vmem:[#allocation46_spill] sm:$0xff]  ;;  %v8466_v15 = vld [vmem:[#allocation47_spill] sm:$0xff]  ;;  %v8467_v6 = vld [vmem:[#allocation36_spill] sm:$0xff] }
 0x3f3   : > { %v2319_v41 = vmul.f32 %v8308_v60, %v8458_v4  ;;  %v2354_v17 = vmul.f32 %v8459_v52, %v8458_v4  ;;  %v3013_v63 = vadd.f32 %v7149_v24, %v2977_v39  ;;  %v3014_v27 = vadd.f32 %v7159_v26, %v2978_v34  ;;  %v8465_v12 = vld [vmem:[#allocation78_spill] sm:$0xff]  ;;  %v8468_v34 = vld [vmem:[#allocation48_spill] sm:$0xff] }
 0x3f4   : > { %v2131_v38 = vadd.f32 %v2115_v14, %v2036_v18  ;;  %v2355_v51 = vmul.f32 %v8459_v52, %v8460_v30  ;;  %v2132_v62 = vadd.f32 %v2116_v9, %v2037_v13  ;;  %v2390_v42 = vmul.f32 %v8461_v10, %v8460_v30  ;;  %v8462_v14 = vld [vmem:[#allocation44_spill] sm:$0xff] }
 0x3f5   : > { %v2476_v28 = vrot.slane %v8448_v47, 5  ;;  %v8007_v19 = vrot.slane %v8455_v5, 5  ;;  %v3049_v16 = vadd.f32 %v7163_v11, %v3013_v63  ;;  %v3050_v58 = vadd.f32 %v7171_v2, %v3014_v27  ;;  %v7275_v11 = vld [vmem:[%s8262_s14] ss:$0 sm:$0xff]  ;;  %v8469_v27 = vld [vmem:[#allocation65_spill] sm:$0xff] }
 0x3f6   : > { %v2167_v54 = vadd.f32 %v2151_v35, %v2131_v38  ;;  %v2391_v24 = vmul.f32 %v8461_v10, %v7231_v37  ;;  %v2168_v26 = vadd.f32 %v2152_v45, %v2132_v62  ;;  %v2426_v48 = vmul.f32 %v8462_v14, %v7231_v37  ;;  %8464 = vst [vmem:[#allocation43_spill] sm:$0xff] %v7275_v11 }
 0x3f7   : > { %v8463_v9 = vrot.slane %v8404_v3, 5  ;;  %v7270_v23 = vsel %vm2448_vm6, %v2476_v28, %v8007_v19  ;;  %v7278_v2 = vadd.f32 %v7275_v11, %v3049_v16  ;;  %v7281_v35 = vadd.f32 %v7275_v11, %v3050_v58  ;;  %v8477_v19 = vld [vmem:[#allocation41_spill] sm:$0xff]  ;;  %v8479_v11 = vld [vmem:[#allocation118_spill] sm:$0xff] }
 0x3f8   : > { %v2203_v45 = vadd.f32 %v2187_v25, %v2167_v54  ;;  %v2427_v21 = vmul.f32 %v8462_v14, %v7236_v56  ;;  %v2204_v49 = vadd.f32 %v2188_v8, %v2168_v26  ;;  %v2521_v44 = vmul.f32 %v8466_v15, %v8465_v12  ;;  %v8470_v8 = vld [vmem:[#allocation49_spill] sm:$0xff]  ;;  %v8471_v26 = vld [vmem:[#allocation52_spill] sm:$0xff] }
 0x3f9   : > { %v7265_v61 = vsel %vm2448_vm6, %v8463_v9, %v2476_v28  ;;  %v2522_v39 = vmul.f32 %v8466_v15, %v8467_v6  ;;  %v2557_v18 = vmul.f32 %v8468_v34, %v8467_v6  ;;  %v3651_v13 = vmul.f32 -1.442695, %v7278_v2  ;;  %v8475_v6 = vld [vmem:[#allocation123_spill] sm:$0xff] }
 0x3fa   : > { %v3652_v4 = vmul.f32 -1.442695, %v7281_v35  ;;  %v2239_v63 = vadd.f32 %v2223_v43, %v2203_v45  ;;  %v2558_v25 = vmul.f32 %v8468_v34, %v8469_v27  ;;  %v2240_v38 = vadd.f32 %v2224_v29, %v2204_v49 }
 0x3fb   : > { %v2593_v62 = vmul.f32 %v8470_v8, %v8469_v27  ;;  %v2679_v28 = vrot.slane %v8448_v47, 6  ;;  %v8011_v16 = vrot.slane %v8455_v5, 6  ;;  %4086 = vpow2.f32 %v3651_v13  ;;  %v8476_v13 = vld [vmem:[#allocation50_spill] sm:$0xff] }
 0x3fc   : > { %v2334_v58 = vadd.f32 %v2318_v40, %v2239_v63  ;;  %v2594_v54 = vmul.f32 %v8470_v8, %v7265_v61  ;;  %v2629_v9 = vmul.f32 %v8471_v26, %v7265_v61  ;;  %4088 = vpow2.f32 %v3652_v4 }
 0x3fd   : > { %v2335_v43 = vadd.f32 %v2319_v41, %v2240_v38  ;;  %v8472_v45 = vrot.slane %v8404_v3, 6  ;;  %v7311_v49 = vsel %vm2651_vm7, %v2679_v28, %v8011_v16  ;;  %v2630_v40 = vmul.f32 %v8471_v26, %v7270_v23  ;;  %v8478_v38 = vld [vmem:[#allocation53_spill] sm:$0xff] }
 0x3fe   : > { %8474 = vst [vmem:[#allocation64_spill] sm:$0xff] %v7311_v49  ;;  %v2370_v12 = vadd.f32 %v2354_v17, %v2334_v58  ;;  %v2724_v63 = vmul.f32 %v8476_v13, %v8475_v6  ;;  %v2725_v41 = vmul.f32 %v8476_v13, %v8477_v19  ;;  %v7323_v8 = vmul.f32 %v8478_v38, %v8479_v11 }
 0x3ff   : > { %v7306_v29 = vsel %vm2651_vm7, %v8472_v45, %v2679_v28  ;;  %v2371_v4 = vadd.f32 %v2355_v51, %v2335_v43  ;;  %v2760_v45 = vmul.f32 %v8478_v38, %v8477_v19  ;;  %v8480_v28 = vld [vmem:[#allocation54_spill] sm:$0xff]  ;;  %v2882_v6 = vrot.slane %v8448_v47, 7  ;;  %v8481_v19 = vld [vmem:[#allocation55_spill] sm:$0xff] }
 0x400   : > { %8473 = vst [vmem:[#allocation61_spill] sm:$0xff] %v7306_v29  ;;  %v7327_v17 = vmul.f32 %v8480_v28, %v8479_v11  ;;  %v2406_v58 = vadd.f32 %v2390_v42, %v2370_v12  ;;  %v7331_v16 = vmul.f32 %v8480_v28, %v7306_v29  ;;  %v8017_v51 = vrot.slane %v8455_v5, 7  ;;  %v8482_v11 = vld [vmem:[#allocation56_spill] sm:$0xff] }
 0x401   : > { %v2407_v43 = vadd.f32 %v2391_v24, %v2371_v4  ;;  %v7337_v13 = vmul.f32 %v8481_v19, %v7306_v29  ;;  %v7341_v38 = vmul.f32 %v8481_v19, %v7311_v49  ;;  %v7345_v42 = vmul.f32 %v8482_v11, %v6916_v55 }
 0x402   : > { %v2442_v12 = vadd.f32 %v2426_v48, %v2406_v58  ;;  %v8483_v28 = vrot.slane %v8404_v3, 7  ;;  %v7355_v24 = vsel %vm2854_vm8, %v2882_v6, %v8017_v51  ;;  %v7359_v4 = vmul.f32 %v8482_v11, %v7124_v20  ;;  %v8486_v58 = vld [vmem:[#allocation107_spill] sm:$0xff]  ;;  %v8487_v51 = vld [vmem:[#allocation110_spill] sm:$0xff]  ;;  %v8488_v11 = vld [vmem:[#allocation112_spill] sm:$0xff] }
 0x403   : > { %8485 = vst [vmem:[#allocation121_spill] sm:$0xff] %v7355_v24  ;;  %v2443_v19 = vadd.f32 %v2427_v21, %v2407_v43  ;;  %v7363_v55 = vmul.f32 %v8437_v31, %v7124_v20  ;;  %v7367_v3 = vmul.f32 %v8437_v31, %v7129_v32  ;;  %v7371_v48 = vmul.f32 %v8438_v50, %v7129_v32  ;;  %v8490_v32 = vld [vmem:[#allocation111_spill] sm:$0xff] }
 0x404   : > { %v7350_v47 = vsel %vm2854_vm8, %v8483_v28, %v2882_v6  ;;  %v2537_v28 = vadd.f32 %v2521_v44, %v2442_v12  ;;  %v1987_v6 = vmul.f32 %v5339_v0, %v8486_v58  ;;  %v2002_v49 = vadd.f32 %v8488_v11, %v8487_v51 }
 0x405   : > { %8484 = vst [vmem:[#allocation70_spill] sm:$0xff] %v7350_v47  ;;  %v2022_v21 = vmul.f32 %v5343_v57, %v8486_v58  ;;  %v2538_v20 = vadd.f32 %v2522_v39, %v2443_v19  ;;  %v7381_v43 = vmul.f32 %v8438_v50, %v7350_v47  ;;  %v7385_v31 = vmul.f32 %v6226_v22, %v7350_v47  ;;  %v4087_v0 = vpop.eup %4086 }
 0x406   : > { %v7389_v44 = vmul.f32 %v6226_v22, %v7355_v24  ;;  %v2573_v12 = vadd.f32 %v2557_v18, %v2537_v28  ;;  %v2003_v11 = vadd.f32 %v1987_v6, %v8490_v32  ;;  %v2117_v57 = vmul.f32 %v8301_v1, %v6993_v53  ;;  %v4089_v39 = vpop.eup %4088  ;;  %v8491_v24 = vld [vmem:[#allocation116_spill] sm:$0xff] }
 0x407   : > { %v2038_v51 = vadd.f32 %v2022_v21, %v2002_v49  ;;  %v3136_v19 = vadd.f32 1.0, %v4087_v0  ;;  %v2574_v58 = vadd.f32 %v2558_v25, %v2538_v20  ;;  %v2118_v50 = vmul.f32 %v8301_v1, %v7196_v36  ;;  %v8492_v21 = vld [vmem:[#allocation114_spill] sm:$0xff] }
 0x408   : > { %8489 = vst [vmem:[#allocation63_spill] sm:$0xff] %v7389_v44  ;;  %v2153_v47 = vmul.f32 %v5347_v59, %v7196_v36  ;;  %v3137_v29 = vadd.f32 1.0, %v4089_v39  ;;  %v2609_v22 = vadd.f32 %v2593_v62, %v2573_v12  ;;  %v2039_v44 = vadd.f32 %v8491_v24, %v2003_v11  ;;  %v8493_v24 = vld [vmem:[#allocation104_spill] sm:$0xff] }
 0x409   : > { %v2133_v18 = vadd.f32 %v2117_v57, %v2038_v51  ;;  %4090 = vrcp.f32 %v3136_v19  ;;  %v2610_v32 = vadd.f32 %v2594_v54, %v2574_v58  ;;  %v2154_v49 = vmul.f32 %v5347_v59, %v8457_v7  ;;  %v8494_v59 = vld [vmem:[#allocation115_spill] sm:$0xff] }
 0x40a   : > { %v2189_v53 = vmul.f32 %v8303_v33, %v8457_v7  ;;  %4092 = vrcp.f32 %v3137_v29  ;;  %v2645_v25 = vadd.f32 %v2629_v9, %v2609_v22  ;;  %v2134_v28 = vadd.f32 %v2118_v50, %v2039_v44  ;;  %v8495_v22 = vld [vmem:[#allocation102_spill] sm:$0xff] }
 0x40b   : > { %v2169_v1 = vadd.f32 %v2153_v47, %v2133_v18  ;;  %v2646_v6 = vadd.f32 %v2630_v40, %v2610_v32  ;;  %v2190_v36 = vmul.f32 %v8303_v33, %v8492_v21  ;;  %v2225_v62 = vmul.f32 %v8305_v46, %v8492_v21  ;;  %v8497_v18 = vld [vmem:[#allocation117_spill] sm:$0xff] }
 0x40c   : > { %v2279_v20 = vrot.slane %v8493_v24, 4  ;;  %v2740_v54 = vadd.f32 %v2724_v63, %v2645_v25  ;;  %v2170_v0 = vadd.f32 %v2154_v49, %v2134_v28  ;;  %v2226_v11 = vmul.f32 %v8305_v46, %v8494_v59 }
 0x40d   : > { %v2205_v12 = vadd.f32 %v2189_v53, %v2169_v1  ;;  %v2741_v7 = vadd.f32 %v2725_v41, %v2646_v6  ;;  %v8496_v50 = vrot.slane %v8495_v22, 4  ;;  %v2320_v33 = vmul.f32 %v8308_v60, %v8460_v30 }
 0x40e   : > { %v2321_v29 = vmul.f32 %v8308_v60, %v7231_v37  ;;  %v2776_v40 = vadd.f32 %v2760_v45, %v2740_v54  ;;  %v2206_v63 = vadd.f32 %v2190_v36, %v2170_v0  ;;  %v2356_v46 = vmul.f32 %v8459_v52, %v7231_v37 }
 0x40f   : > { %v7415_v9 = vsel %vm2245_vm4, %v8496_v50, %v2279_v20  ;;  %v2241_v47 = vadd.f32 %v2225_v62, %v2205_v12  ;;  %v2777_v41 = vadd.f32 %v7323_v8, %v2741_v7  ;;  %v2357_v44 = vmul.f32 %v8459_v52, %v7236_v56 }
 0x410   : > { %v2392_v51 = vmul.f32 %v8461_v10, %v7236_v56  ;;  %v2480_v57 = vrot.slane %v8495_v22, 5  ;;  %v2812_v30 = vadd.f32 %v7327_v17, %v2776_v40  ;;  %v2242_v39 = vadd.f32 %v2226_v11, %v2206_v63 }
 0x411   : > { %v2336_v19 = vadd.f32 %v2320_v33, %v2241_v47  ;;  %v2482_v45 = vrot.slane %v8493_v24, 5  ;;  %v2813_v58 = vadd.f32 %v7331_v16, %v2777_v41  ;;  %v2393_v37 = vmul.f32 %v8461_v10, %v8497_v18 }
 0x412   : > { %v2428_v8 = vmul.f32 %v8462_v14, %v8497_v18  ;;  %v8498_v32 = vrot.slane %v8455_v5, 5  ;;  %v2848_v53 = vadd.f32 %v7337_v13, %v2812_v30  ;;  %v2337_v17 = vadd.f32 %v2321_v29, %v2242_v39  ;;  %v8501_v39 = vld [vmem:[#allocation63_spill] sm:$0xff] }
 0x413   : > { %v2372_v25 = vadd.f32 %v2356_v46, %v2336_v19  ;;  %v7445_v28 = vsel %vm2448_vm6, %v2480_v57, %v2482_v45  ;;  %v4091_v16 = vpop.eup %4090  ;;  %v2849_v1 = vadd.f32 %v7341_v38, %v2813_v58  ;;  %v2429_v6 = vmul.f32 %v8462_v14, %v7415_v9  ;;  %v8502_v58 = vld [vmem:[#allocation118_spill] sm:$0xff] }
 0x414   : > { %v7439_v49 = vsel %vm2448_vm6, %v8498_v32, %v2480_v57  ;;  %v2523_v21 = vmul.f32 %v8466_v15, %v8469_v27  ;;  %v2524_v36 = vmul.f32 %v8466_v15, %v7265_v61  ;;  %v4093_v13 = vpop.eup %4092  ;;  %v2943_v62 = vadd.f32 %v7345_v42, %v2848_v53  ;;  %v8499_v42 = vld [vmem:[#allocation49_spill] sm:$0xff] }
 0x415   : > { %v2373_v54 = vadd.f32 %v2357_v44, %v2337_v17  ;;  %v2408_v0 = vadd.f32 %v2392_v51, %v2372_v25  ;;  %v2559_v12 = vmul.f32 %v8468_v34, %v7265_v61  ;;  %v3184_v59 = vmul.f32 %v4091_v16, %v7278_v2  ;;  %v8504_v32 = vld [vmem:[#allocation61_spill] sm:$0xff]  ;;  %v8506_v16 = vld [vmem:[#allocation43_spill] sm:$0xff] }
 0x416   : > { %v3185_v38 = vmul.f32 %v4093_v13, %v7281_v35  ;;  %v2944_v11 = vadd.f32 %v7359_v4, %v2849_v1  ;;  %v2560_v27 = vmul.f32 %v8468_v34, %v7270_v23  ;;  %v2979_v7 = vadd.f32 %v7363_v55, %v2943_v62  ;;  %v8505_v17 = vld [vmem:[#allocation53_spill] sm:$0xff]  ;;  %v8508_v62 = vld [vmem:[#allocation54_spill] sm:$0xff] }
 0x417   : > { %v2409_v50 = vadd.f32 %v2393_v37, %v2373_v54  ;;  %v2444_v33 = vadd.f32 %v2428_v8, %v2408_v0  ;;  %v2595_v29 = vmul.f32 %v8499_v42, %v7270_v23  ;;  %v2683_v61 = vrot.slane %v8495_v22, 6  ;;  %v8503_v37 = vld [vmem:[#allocation50_spill] sm:$0xff] }
 0x418   : > { %v3196_v40 = vpack.c.bf16 %v3185_v38, %v3184_v59  ;;  %v2980_v63 = vadd.f32 %v7367_v3, %v2944_v11  ;;  %v2685_v2 = vrot.slane %v8493_v24, 6  ;;  %v3015_v35 = vadd.f32 %v7371_v48, %v2979_v7 }
 0x419   : > { %v2445_v4 = vadd.f32 %v2429_v6, %v2409_v50  ;;  %v2539_v47 = vadd.f32 %v2523_v21, %v2444_v33  ;;  %v2596_v46 = vmul.f32 %v8499_v42, %v7439_v49  ;;  %v2631_v41 = vmul.f32 %v8471_v26, %v7439_v49  ;;  %v8507_v21 = vld [vmem:[#allocation64_spill] sm:$0xff]  ;;  %v8509_v50 = vld [vmem:[#allocation55_spill] sm:$0xff] }
 0x41a   : > { %3720 = vmatprep.mubr.bf16.mxu1 %v3196_v40  ;;  %v3016_v55 = vadd.f32 %v7381_v43, %v2980_v63  ;;  %v8500_v44 = vrot.slane %v8455_v5, 6  ;;  %v7482_v48 = vsel %vm2651_vm7, %v2683_v61, %v2685_v2  ;;  %v3051_v51 = vadd.f32 %v7385_v31, %v3015_v35 }
 0x41b   : > { %v2540_v57 = vadd.f32 %v2524_v36, %v2445_v4  ;;  %v2575_v30 = vadd.f32 %v2559_v12, %v2539_v47  ;;  %v2632_v43 = vmul.f32 %v8471_v26, %v7445_v28  ;;  %v2726_v8 = vmul.f32 %v8503_v37, %v8502_v58  ;;  %v8511_v4 = vld [vmem:[#allocation42_spill] sm:$0xff]  ;;  %v8512_v47 = vld [vmem:[#allocation56_spill] sm:$0xff] }
 0x41c   : > { %v7477_v3 = vsel %vm2651_vm7, %v8500_v44, %v2683_v61  ;;  %v3052_v19 = vadd.f32 %v8501_v39, %v3016_v55  ;;  %v2727_v53 = vmul.f32 %v8503_v37, %v8504_v32  ;;  %v2762_v25 = vmul.f32 %v8505_v17, %v8504_v32  ;;  %v8513_v55 = vld [vmem:[#allocation70_spill] sm:$0xff] }
 0x41d   : > { %v7495_v1 = vadd.f32 %v8506_v16, %v3051_v51  ;;  %v2576_v31 = vadd.f32 %v2560_v27, %v2540_v57  ;;  %v2611_v6 = vadd.f32 %v2595_v29, %v2575_v30  ;;  %v2763_v36 = vmul.f32 %v8505_v17, %v8507_v21  ;;  %v8515_v30 = vld [vmem:[#allocation121_spill] sm:$0xff] }
 0x41e   : > { %v7500_v13 = vadd.f32 %v8506_v16, %v3052_v19  ;;  %v2798_v54 = vmul.f32 %v8508_v62, %v8507_v21  ;;  %v2886_v0 = vrot.slane %v8495_v22, 7  ;;  %v2888_v12 = vrot.slane %v8493_v24, 7 }
 0x41f   : > { %v3653_v59 = vmul.f32 -1.442695, %v7495_v1  ;;  %v2612_v38 = vadd.f32 %v2596_v46, %v2576_v31  ;;  %v2647_v11 = vadd.f32 %v2631_v41, %v2611_v6  ;;  %v2799_v27 = vmul.f32 %v8508_v62, %v7477_v3  ;;  %v8514_v41 = vld [vmem:[#allocation57_spill] sm:$0xff] }
 0x420   : > { %v3654_v7 = vmul.f32 -1.442695, %v7500_v13  ;;  %v2834_v33 = vmul.f32 %v8509_v50, %v7477_v3  ;;  %v8510_v29 = vrot.slane %v8455_v5, 7  ;;  %v7520_v22 = vsel %vm2854_vm8, %v2886_v0, %v2888_v12 }
 0x421   : > { %4094 = vpow2.f32 %v3653_v59  ;;  %v2648_v63 = vadd.f32 %v2632_v43, %v2612_v38  ;;  %v2742_v61 = vadd.f32 %v2726_v8, %v2647_v11  ;;  %v2835_v35 = vmul.f32 %v8509_v50, %v7482_v48  ;;  %v8516_v43 = vld [vmem:[#allocation58_spill] sm:$0xff]  ;;  %v8517_v8 = vld [vmem:[#allocation108_spill] sm:$0xff]  ;;  %v8519_v59 = vld [vmem:[#allocation51_spill] sm:$0xff] }
 0x422   : > { %v7515_v40 = vsel %vm2854_vm8, %v8510_v29, %v2886_v0  ;;  %4096 = vpow2.f32 %v3654_v7  ;;  %v2929_v46 = vmul.f32 %v8512_v47, %v8511_v4  ;;  %v2930_v5 = vmul.f32 %v8512_v47, %v8513_v55  ;;  %v8520_v7 = vld [vmem:[#allocation119_spill] sm:$0xff] }
 0x423   : > { %v2965_v44 = vmul.f32 %v8514_v41, %v8513_v55  ;;  %v2743_v51 = vadd.f32 %v2727_v53, %v2648_v63  ;;  %v2778_v57 = vadd.f32 %v2762_v25, %v2742_v61  ;;  %v2966_v39 = vmul.f32 %v8514_v41, %v8515_v30  ;;  %v8521_v63 = vld [vmem:[#allocation125_spill] sm:$0xff] }
 0x424   : > { %v3001_v19 = vmul.f32 %v8516_v43, %v8515_v30  ;;  %v3002_v58 = vmul.f32 %v8516_v43, %v7515_v40  ;;  %v8518_v32 = vrot.slane %v8517_v8, 4  ;;  %v2322_v6 = vmul.f32 %v8308_v60, %v7236_v56 }
 0x425   : > { %v2359_v53 = vmul.f32 %v8459_v52, %v7415_v9  ;;  %v2779_v25 = vadd.f32 %v2763_v36, %v2743_v51  ;;  %v2814_v0 = vadd.f32 %v2798_v54, %v2778_v57  ;;  %v3037_v38 = vmul.f32 %v8519_v59, %v7515_v40 }
 0x426   : > { %v2282_v31 = vsel %vm2245_vm4, %v2279_v20, %v8518_v32  ;;  %v2358_v11 = vmul.f32 %v8459_v52, %v8497_v18  ;;  %v2338_v29 = vadd.f32 %v2322_v6, %v8520_v7  ;;  %v2484_v4 = vrot.slane %v8517_v8, 5  ;;  %v8522_v18 = vld [vmem:[#allocation120_spill] sm:$0xff] }
 0x427   : > { %v2375_v61 = vadd.f32 %v2359_v53, %v8521_v63  ;;  %v2395_v20 = vmul.f32 %v8461_v10, %v2282_v31  ;;  %v2815_v60 = vadd.f32 %v2799_v27, %v2779_v25  ;;  %v2850_v56 = vadd.f32 %v2834_v33, %v2814_v0  ;;  %v8524_v0 = vld [vmem:[#allocation122_spill] sm:$0xff] }
 0x428   : > { %v3038_v36 = vmul.f32 %v8519_v59, %v7520_v22  ;;  %v2394_v54 = vmul.f32 %v8461_v10, %v7415_v9  ;;  %v2374_v55 = vadd.f32 %v2358_v11, %v2338_v29  ;;  %v2485_v52 = vsel %vm2448_vm6, %v2482_v45, %v2484_v4 }
 0x429   : > { %v2411_v51 = vadd.f32 %v2395_v20, %v2375_v61  ;;  %v8523_v57 = vrot.slane %v8522_v18, 5  ;;  %v2851_v6 = vadd.f32 %v2835_v35, %v2815_v60  ;;  %v2945_v53 = vadd.f32 %v2929_v46, %v2850_v56 }
 0x42a   : > { %v2430_v27 = vmul.f32 %v8462_v14, %v2282_v31  ;;  %v2525_v33 = vmul.f32 %v8466_v15, %v7270_v23  ;;  %v2410_v25 = vadd.f32 %v2394_v54, %v2374_v55  ;;  %v2526_v9 = vmul.f32 %v8466_v15, %v7439_v49 }
 0x42b   : > { %v2487_v32 = vsel %vm2448_vm6, %v2484_v4, %v8523_v57  ;;  %v2447_v10 = vadd.f32 %v8524_v0, %v2411_v51  ;;  %v2561_v45 = vmul.f32 %v8468_v34, %v7439_v49  ;;  %v4095_v11 = vpop.eup %4094  ;;  %v2946_v7 = vadd.f32 %v2930_v5, %v2851_v6 }
 0x42c   : > { %v2981_v29 = vadd.f32 %v2965_v44, %v2945_v53  ;;  %v2562_v35 = vmul.f32 %v8468_v34, %v7445_v28  ;;  %v2598_v14 = vmul.f32 %v8499_v42, %v2485_v52  ;;  %v4097_v46 = vpop.eup %4096  ;;  %v3138_v31 = vadd.f32 1.0, %v4095_v11 }
 0x42d   : > { %v2446_v23 = vadd.f32 %v2430_v27, %v2410_v25  ;;  %v2542_v63 = vadd.f32 %v2526_v9, %v2447_v10  ;;  %v2687_v61 = vrot.slane %v8517_v8, 6  ;;  %v3139_v20 = vadd.f32 1.0, %v4097_v46 }
 0x42e   : > { %v2982_v4 = vadd.f32 %v2966_v39, %v2946_v7  ;;  %v3017_v15 = vadd.f32 %v3001_v19, %v2981_v29  ;;  %v2689_v60 = vrot.slane %v8522_v18, 6  ;;  %4098 = vrcp.f32 %v3138_v31 }
 0x42f   : > { %v2541_v49 = vadd.f32 %v2525_v33, %v2446_v23  ;;  %v2578_v5 = vadd.f32 %v2562_v35, %v2542_v63  ;;  %v2688_v34 = vsel %vm2651_vm7, %v2685_v2, %v2687_v61  ;;  %4100 = vrcp.f32 %v3139_v20 }
 0x430   : > { %v3018_v44 = vadd.f32 %v3002_v58, %v2982_v4  ;;  %v3053_v56 = vadd.f32 %v3037_v38, %v3017_v15  ;;  %v2690_v54 = vsel %vm2651_vm7, %v2687_v61, %v2689_v60  ;;  %v2597_v51 = vmul.f32 %v8499_v42, %v7445_v28 }
 0x431   : > { %v2577_v55 = vadd.f32 %v2561_v45, %v2541_v49  ;;  %v2614_v39 = vadd.f32 %v2598_v14, %v2578_v5  ;;  %v2634_v19 = vmul.f32 %v8471_v26, %v2487_v32  ;;  %v2633_v27 = vmul.f32 %v8471_v26, %v2485_v52 }
 0x432   : > { %v3054_v57 = vadd.f32 %v3038_v36, %v3018_v44  ;;  %v7584_v6 = vadd.f32 %v8506_v16, %v3053_v56  ;;  %v2729_v58 = vmul.f32 %v8503_v37, %v7477_v3  ;;  %v2728_v28 = vmul.f32 %v8503_v37, %v8507_v21 }
 0x433   : > { %v2613_v53 = vadd.f32 %v2597_v51, %v2577_v55  ;;  %v2650_v2 = vadd.f32 %v2634_v19, %v2614_v39  ;;  %v2765_v42 = vmul.f32 %v8505_v17, %v7482_v48  ;;  %v2890_v25 = vrot.slane %v8517_v8, 7 }
 0x434   : > { %v3077_v38 = vadd.f32 %v8506_v16, %v3054_v57  ;;  %v3655_v33 = vmul.f32 -1.442695, %v7584_v6  ;;  %v2892_v26 = vrot.slane %v8522_v18, 7  ;;  %v2764_v0 = vmul.f32 %v8505_v17, %v7477_v3 }
 0x435   : > { %v2649_v36 = vadd.f32 %v2633_v27, %v2613_v53  ;;  %v2745_v32 = vadd.f32 %v2729_v58, %v2650_v2  ;;  %v2801_v10 = vmul.f32 %v8508_v62, %v2688_v34  ;;  %v2891_v37 = vsel %vm2854_vm8, %v2888_v12, %v2890_v25 }
 0x436   : > { %4102 = vpow2.f32 %v3655_v33  ;;  %v3656_v52 = vmul.f32 -1.442695, %v3077_v38  ;;  %v2893_v21 = vsel %vm2854_vm8, %v2890_v25, %v2892_v26  ;;  %v2800_v18 = vmul.f32 %v8508_v62, %v7482_v48 }
 0x437   : > { %v2744_v9 = vadd.f32 %v2728_v28, %v2649_v36  ;;  %v2781_v45 = vadd.f32 %v2765_v42, %v2745_v32  ;;  %v2837_v29 = vmul.f32 %v8509_v50, %v2690_v54  ;;  %v2836_v17 = vmul.f32 %v8509_v50, %v2688_v34 }
 0x438   : > { %4104 = vpow2.f32 %v3656_v52  ;;  %v4099_v11 = vpop.eup %4098  ;;  %v2932_v35 = vmul.f32 %v8512_v47, %v7515_v40  ;;  %v2931_v31 = vmul.f32 %v8512_v47, %v8515_v30  ;;  %v2968_v63 = vmul.f32 %v8514_v41, %v7520_v22 }
 0x439   : > { %v2780_v8 = vadd.f32 %v2764_v0, %v2744_v9  ;;  %v2817_v7 = vadd.f32 %v2801_v10, %v2781_v45  ;;  %v4101_v3 = vpop.eup %4100  ;;  %v3186_v24 = vmul.f32 %v4099_v11, %v7495_v1  ;;  %v2967_v61 = vmul.f32 %v8514_v41, %v7515_v40 }
 0x43a   : > { %v3187_v12 = vmul.f32 %v4101_v3, %v7500_v13  ;;  %v3004_v1 = vmul.f32 %v8516_v43, %v2891_v37  ;;  %v3003_v4 = vmul.f32 %v8516_v43, %v7520_v22  ;;  %v3040_v60 = vmul.f32 %v8519_v59, %v2893_v21 }
 0x43b   : > { %v2816_v14 = vadd.f32 %v2800_v18, %v2780_v8  ;;  %v2853_v46 = vadd.f32 %v2837_v29, %v2817_v7  ;;  %v3039_v5 = vmul.f32 %v8519_v59, %v2891_v37 }
 0x43c   : > { %v3197_v23 = vpack.c.bf16 %v3187_v12, %v3186_v24 }
 0x43d   : > { %v2852_v48 = vadd.f32 %v2836_v17, %v2816_v14  ;;  %v2948_v62 = vadd.f32 %v2932_v35, %v2853_v46 }
 0x43e   : > { %3721 = vmatmul.mubr.bf16.gmra.mrb[8].mxu1 %v3197_v23 }
 0x43f   : > { %v2947_v50 = vadd.f32 %v2931_v31, %v2852_v48  ;;  %v2984_v20 = vadd.f32 %v2968_v63, %v2948_v62 }
 0x440   : > { %v4103_v13 = vpop.eup %4102 }
 0x441   : > { %v3140_v15 = vadd.f32 1.0, %v4103_v13  ;;  %v2983_v47 = vadd.f32 %v2967_v61, %v2947_v50  ;;  %v3020_v30 = vadd.f32 %v3004_v1, %v2984_v20 }
 0x442   : > { %v4105_v49 = vpop.eup %4104 }
 0x443   : > { %v3141_v34 = vadd.f32 1.0, %v4105_v49  ;;  %4106 = vrcp.f32 %v3140_v15  ;;  %v3019_v44 = vadd.f32 %v3003_v4, %v2983_v47  ;;  %v3056_v56 = vadd.f32 %v3040_v60, %v3020_v30 }
 0x445   : > { %4108 = vrcp.f32 %v3141_v34  ;;  %v3055_v40 = vadd.f32 %v3039_v5, %v3019_v44  ;;  %v3079_v41 = vadd.f32 %v8506_v16, %v3056_v56 }
 0x447   : > { %v3078_v54 = vadd.f32 %v8506_v16, %v3055_v40  ;;  %v3658_v55 = vmul.f32 -1.442695, %v3079_v41 }
 0x449   : > { %v3657_v22 = vmul.f32 -1.442695, %v3078_v54  ;;  %4110 = vpow2.f32 %v3658_v55 }
 0x44b   : > { %4112 = vpow2.f32 %v3657_v22 }
 0x44d   : > { %v4107_v43 = vpop.eup %4106 }
 0x44e   : > { %v3188_v39 = vmul.f32 %v4107_v43, %v7584_v6  ;;  %v3659_v6 = vld [vmem:[%s8525_s3] ss:$0 sm:$0xff]  ;;  %s4300_s3 = scalar_lea.vmem %s4299_s12, 4096 }
 0x44f   : > { %v4109_v51 = vpop.eup %4108  ;;  %p4302_p1 = scmp.lt.s32.totalorder %s4300_s3, %s4294_s29 }
 0x450   : > { %v3189_v19 = vmul.f32 %v4109_v51, %v3077_v38 }
 0x451   : > { %p4303_p2 = por %p4302_p1, %p4301_p7 }
 0x452   : > { %v3198_v59 = vpack.c.bf16 %v3189_v19, %v3188_v39 }
 0x453   : > { %v4111_v57 = vpop.eup %4110  ;;  %p4304_p11 = pnand %p4303_p2, %p4297_p0 }
 0x454   : > { %3724 = vmatprep.mubr.bf16.mxu1 %v3198_v59  ;;  %v3143_v53 = vadd.f32 1.0, %v4111_v57 }
 0x455   : > { %v4113_v27 = vpop.eup %4112 }
 0x456   : > { %v3142_v2 = vadd.f32 1.0, %v4113_v27  ;;  %4114 = vrcp.f32 %v3143_v53 }
 0x458   : > { %4116 = vrcp.f32 %v3142_v2 }
 0x460   : > { %v4115_v58 = vpop.eup %4114 }
 0x461   : > { %v3191_v16 = vmul.f32 %v4115_v58, %v3079_v41 }
 0x462   : > { %v4117_v33 = vpop.eup %4116 }
 0x463   : > { %v3190_v28 = vmul.f32 %v4117_v33, %v3078_v54 }
 0x465   : > { %v3199_v42 = vpack.c.bf16 %v3191_v16, %v3190_v28 }
 0x467   : > { %3725 = vmatmul.mubr.bf16.gmra.mrb[12].mxu1 %v3199_v42 }
 0x47d   : > { %v3714_v38 = vpop.f32.mrb[0].mxu1 }
 0x47e   : > { %v3314_v36 = vadd.f32 %v3714_v38, %v3659_v6  ;;  %v3305_v32 = vpop.f32.mrb[1].mxu1 }
 0x47f   : > { %v3306_v25 = vadd.f32 %v3659_v6, %v3305_v32  ;;  %v3715_v26 = vpop.f32.mrb[2].mxu1 }
 0x480   : > { %3370 = vst [vmem:[%s7630_s7 + $0x10] sm:$0xff] %v3314_v36  ;;  %v3317_v52 = vadd.f32 %v3715_v26, %v3659_v6  ;;  %v3308_v0 = vpop.f32.mrb[3].mxu1 }
 0x481   : > { %3368 = vst [vmem:[%s7630_s7] sm:$0xff] %v3306_v25  ;;  %v3309_v10 = vadd.f32 %v3659_v6, %v3308_v0 }
 0x482   : > { %3371 = vst [vmem:[%s7630_s7 + $0x18] sm:$0xff] %v3317_v52 }
 0x483   : > { %3369 = vst [vmem:[%s7630_s7 + $0x8] sm:$0xff] %v3309_v10 }
 0x4c4   : > { %v3718_v9 = vpop.f32.mrb[4].mxu1 }
 0x4c5   : > { %v3330_v45 = vadd.f32 %v3718_v9, %v3659_v6  ;;  %v3321_v37 = vpop.f32.mrb[5].mxu1 }
 0x4c6   : > { %v3322_v21 = vadd.f32 %v3659_v6, %v3321_v37  ;;  %v3719_v11 = vpop.f32.mrb[6].mxu1 }
 0x4c7   : > { %3374 = vst [vmem:[%s7630_s7 + $0x30] sm:$0xff] %v3330_v45  ;;  %v3333_v8 = vadd.f32 %v3719_v11, %v3659_v6  ;;  %v3324_v18 = vpop.f32.mrb[7].mxu1 }
 0x4c8   : > { %3372 = vst [vmem:[%s7630_s7 + $0x20] sm:$0xff] %v3322_v21  ;;  %v3325_v7 = vadd.f32 %v3659_v6, %v3324_v18 }
 0x4c9   : > { %3375 = vst [vmem:[%s7630_s7 + $0x38] sm:$0xff] %v3333_v8 }
 0x4ca   : > { %3373 = vst [vmem:[%s7630_s7 + $0x28] sm:$0xff] %v3325_v7 }
 0x511   : > { %v3722_v29 = vpop.f32.mrb[8].mxu1 }
 0x512   : > { %v3346_v3 = vadd.f32 %v3722_v29, %v3659_v6  ;;  %v3337_v17 = vpop.f32.mrb[9].mxu1 }
 0x513   : > { %v3338_v35 = vadd.f32 %v3659_v6, %v3337_v17  ;;  %v3723_v24 = vpop.f32.mrb[10].mxu1 }
 0x514   : > { %3378 = vst [vmem:[%s7630_s7 + $0x50] sm:$0xff] %v3346_v3  ;;  %v3349_v12 = vadd.f32 %v3723_v24, %v3659_v6  ;;  %v3340_v14 = vpop.f32.mrb[11].mxu1 }
 0x515   : > { %3376 = vst [vmem:[%s7630_s7 + $0x40] sm:$0xff] %v3338_v35  ;;  %v3341_v46 = vadd.f32 %v3659_v6, %v3340_v14 }
 0x516   : > { %3379 = vst [vmem:[%s7630_s7 + $0x58] sm:$0xff] %v3349_v12 }
 0x517   : > { %3377 = vst [vmem:[%s7630_s7 + $0x48] sm:$0xff] %v3341_v46 }
 0x53a   : > { %v3726_v31 = vpop.f32.mrb[12].mxu1 }
 0x53b   : > { %v3362_v23 = vadd.f32 %v3726_v31, %v3659_v6  ;;  %v3353_v48 = vpop.f32.mrb[13].mxu1 }
 0x53c   : > { %v3354_v62 = vadd.f32 %v3659_v6, %v3353_v48  ;;  %v3727_v63 = vpop.f32.mrb[14].mxu1 }
 0x53d   : > { %3382 = vst [vmem:[%s7630_s7 + $0x70] sm:$0xff] %v3362_v23  ;;  %v3365_v50 = vadd.f32 %v3727_v63, %v3659_v6  ;;  %v3356_v61 = vpop.f32.mrb[15].mxu1 }
 0x53e   : > { %3380 = vst [vmem:[%s7630_s7 + $0x60] sm:$0xff] %v3354_v62  ;;  %v3357_v20 = vadd.f32 %v3659_v6, %v3356_v61 }
 0x53f   : > { %3383 = vst [vmem:[%s7630_s7 + $0x78] sm:$0xff] %v3365_v50 }
 0x540   : > { %3381 = vst [vmem:[%s7630_s7 + $0x68] sm:$0xff] %v3357_v20 }
 0x541   : > { %4307 = shalt.err (!%p4304_p11)
}
 0x542   : > { %s4308_s23 = scalar_lea.hbm %s7654_s10, 2048  ;;  %s4312_s17 = scalar_lea.hbm %s8529_s4, 8192 }
 0x543   : > { %p4309_p3 = scmp.ne.s32.totalorder %s7654_s10, %s4308_s23  ;;  %p4313_p13 = scmp.lt.u32.totalorder %s7654_s10, %s8529_s4 }
 0x544   : > { %p4314_p6 = scmp.lt.u32.totalorder %s4312_s17, %s4308_s23  ;;  %p4316_p5 = scmp.lt.u32.totalorder %s4308_s23, %s7654_s10 }
 0x545   : > { %p4310_p10 = pnand %p4309_p3, %p8530_p9 }
 0x546   : > { %p4315_p8 = por %p4314_p6, %p4313_p13 }
 0x547   : > { %p4311_p4 = pneg %p4310_p10 }
 0x548   : > { %p4317_p12 = por %p4316_p5, %p4315_p8 }
 0x54a   : > { %p4318_p0 = pnand %p4317_p12, %p4311_p4 }
 0x54c   : > { %4321 = shalt.err (!%p4318_p0)
}
 0x54d   : > { %s4470_s27 = smov 128   ;;  %s4471_s20 = smov 8  }
 0x54e   : > { %3746 = dma.vmem_to_hbm [thread:$0]  (%p8530_p9), %s7648_s26, 2048, %s7654_s10, %s7660_s16, %s4470_s27, %s4470_s27, %s4471_s20  }
 0x54f PF: > { %s8531_s13 = sld [smem:[#allocation23_spill]]  ;;  %s8532_s19 = sld [smem:[#allocation32_spill]] }
 0x550   : > { %p3779_p7 = scmp.ge.s32.totalorder %s4456_s30, 2 }
 0x555   : > { %s3415_s18 = sand.u32 1, %s8531_s13   ;;  %p8533_p1 = scmp.ne.s32.totalorder %s8532_s19, 0 }
 0x556   : > { %s3416_s29 = scalar_lea.sflag [#allocation4], %s3415_s18 }
 0x557   : > { %p3769_p2 = pnand %p3779_p7, %p8533_p1 }
 0x559   : > { %4399 = dma.done.wait (!%p3769_p2), %s3416_s29, 2048  }
 0x55a   : > { %4401 = vsyncadd (!%p3769_p2), %s3416_s29, 4294965248  ;;  %s32_s30 = sadd.s32 1, %s4456_s30   ;;  %s8535_s17 = sld [smem:[#allocation21_spill]] }
 0x55b   : > { %p7689_p11 = scmp.ge.s32.totalorder %s32_s30, 6   ;;  %s8536_s18 = sld [smem:[#allocation22_spill]] }
 0x55c   : > { %s8537_s20 = sld [smem:[#allocation24_spill]]  ;;  %s8538_s27 = sld [smem:[#allocation27_spill]] }
 0x55d   : > { %s8539_s15 = sld [smem:[#allocation29_spill]]  ;;  %s8540_s29 = sld [smem:[#allocation33_spill]] }
 0x55e   : > { %s8541_s19 = smov %s8564_s9  ;;  %s8542_s21 = smov %s4424_s22 }
 0x55f   : > { %s8543_s22 = smov %s4822_s2  ;;  %s8544_s23 = smov %s4432_s24 }
 0x560   : > { %s8545_s24 = smov %s4436_s25  ;;  %s8546_s25 = smov %s4817_s1 }
 0x561   : > { %s8547_s26 = smov %s4448_s28  ;;  %31 = sbr.rel (!%p7689_p11) target bundleno = 26 (0x1a), region = 145 }
 0x563   : > { %s8548_s28 = smov %s8539_s15 }
 0x568   :  { %3421 = vsyncpa [#allocation3], 1 }
 0x569   :  { %3423 = vsyncpa [#allocation3 + $0x1], 1 }
 0x56a   :  { %3424 = vsyncpa [#allocation6], 1 }
 0x56b   :  { %3426 = vsyncpa [#allocation6 + $0x1], 1 }
 0x56c   :  { %3427 = vsyncpa [#allocation9], 1 }
 0x56d   :  { %3428 = vsyncpa [#allocation12], 1 }
 0x56e   :  { %3429 = vsyncpa [#allocation4], 1 }
 0x56f   :  { %3431 = vsyncpa [#allocation4 + $0x1], 1 }

</bundles_post_ra>
